<compile_context>
chip_gen: v7x
topology: tpu7x:2x2x1
jax: 0.10.0
libtpu: 0.0.40
codegen_flags: <defaults>
</compile_context>

<pallas_src>
import functools
import math

import numpy as np
import jax
import jax.numpy as jnp
from jax import lax
from jax.experimental import pallas as pl
from jax.experimental.pallas import tpu as pltpu

PARAM_NAMES = ('wq_s', 'wk_s', 'wv_s', 'wo_s',
               'wq_c', 'wk_c', 'wv_c', 'wo_c',
               'w1', 'w2', 'wp0', 'wp1', 'wp2')

LANE = 128


def _round_up(n, m):
    return ((n + m - 1) // m) * m


def build_moving_avg_matrix(seq_len, kernel_size):
    # Equivalent to: replicate-pad (k-1)//2 on each side of the seq axis,
    # then AvgPool1d(kernel_size, stride=1).
    pad = (kernel_size - 1) // 2
    A = np.zeros((seq_len, seq_len), dtype=np.float32)
    for i in range(seq_len):
        for t in range(kernel_size):
            j = min(max(i + t - pad, 0), seq_len - 1)
            A[i, j] += 1.0 / kernel_size
    return A


# ------------------------------ Pallas kernel --------------------------------

def decoder_layer_kernel(x_ref, cross_ref, A_ref,
                         wqkv_s_ref, wo_s_ref,
                         wq_c_ref, wkv_c_ref, wo_c_ref,
                         w1_ref, w2_ref, wproj_ref,
                         x_out_ref, trend_out_ref, *, scale, bb):
    f32, bf16 = jnp.float32, jnp.bfloat16
    Dp = x_ref.shape[1]
    Lq = x_ref.shape[0] // bb       # query tokens per batch element
    Lk = cross_ref.shape[0] // bb   # cross tokens per batch element

    def mm(a_bf, w_ref):
        # Flat 2-D matmul on the MXU: bf16 operands, f32 accumulation.
        return jnp.dot(a_bf, w_ref[...], preferred_element_type=f32)

    def attn_core(q_bf, k_bf, v_bf):
        # Per-batch scaled-dot-product attention.  (The implicit k^T costs an
        # XLU transpose -- negligible at these sequence lengths.)
        s = lax.dot_general(q_bf, k_bf, (((1,), (1,)), ((), ())),
                            preferred_element_type=f32) * scale
        s = s - jnp.max(s, axis=-1, keepdims=True)
        p = jnp.exp(s)
        p = p * pl.reciprocal(jnp.sum(p, axis=-1, keepdims=True), approx=True)
        return jnp.dot(p.astype(bf16), v_bf, preferred_element_type=f32)

    def decomp(z):
        # trend = per-batch moving average; A is block-diagonal over the bb
        # batch elements and kept in f32 for fidelity to torch's f32 decomp.
        trend = jnp.dot(A_ref[...], z, preferred_element_type=f32)
        return z - trend, trend

    x_bf = x_ref[...]               # (bb*Lq, Dp) bf16
    cross_bf = cross_ref[...]       # (bb*Lk, Dp) bf16
    x = x_bf.astype(f32)            # f32 residual chain

    # ---- x = x + dropout(self_attn(x, x, x)); decomp1 (fused QKV) ----
    qkv_bf = mm(x_bf, wqkv_s_ref).astype(bf16)          # (bb*Lq, 3*Dp)
    outs = []
    for b in range(bb):
        r = slice(b * Lq, (b + 1) * Lq)
        outs.append(attn_core(qkv_bf[r, 0:Dp],
                              qkv_bf[r, Dp:2 * Dp],
                              qkv_bf[r, 2 * Dp:3 * Dp]))
    o_bf = (outs[0] if bb == 1 else jnp.concatenate(outs, axis=0)).astype(bf16)
    x = x + mm(o_bf, wo_s_ref)
    x, residual_trend = decomp(x)
    x_bf = x.astype(bf16)

    # ---- x = x + dropout(cross_attn(x, cross, cross)); decomp2 (fused KV) ----
    q_bf = mm(x_bf, wq_c_ref).astype(bf16)              # (bb*Lq, Dp)
    kv_bf = mm(cross_bf, wkv_c_ref).astype(bf16)        # (bb*Lk, 2*Dp)
    outs = []
    for b in range(bb):
        rq = slice(b * Lq, (b + 1) * Lq)
        rk = slice(b * Lk, (b + 1) * Lk)
        outs.append(attn_core(q_bf[rq], kv_bf[rk, 0:Dp], kv_bf[rk, Dp:2 * Dp]))
    o_bf = (outs[0] if bb == 1 else jnp.concatenate(outs, axis=0)).astype(bf16)
    x = x + mm(o_bf, wo_c_ref)
    x, trend2 = decomp(x)
    residual_trend = residual_trend + trend2            # accumulate in place
    x_bf = x.astype(bf16)

    # ---- FFN: conv1 (1x1) -> ReLU -> conv2 (1x1); decomp3 ----
    h_bf = jnp.maximum(mm(x_bf, w1_ref), 0.0).astype(bf16)
    y = mm(h_bf, w2_ref)
    x, trend3 = decomp(x + y)
    residual_trend = residual_trend + trend3

    # ---- projection Conv1d(d_model, c_out, k=3, padding=1, circular) ----
    # Gather the l-1 / l+1 taps per batch element with XLU sublane rolls and
    # fuse all three taps into one (bb*Lq, 3*Dp) x (3*Dp, Cp) MXU matmul.
    slabs = []
    for b in range(bb):
        rt = residual_trend[b * Lq:(b + 1) * Lq]
        prev = pltpu.roll(rt, 1, 0)        # row l <- rt[l-1]  (circular)
        nxt = pltpu.roll(rt, Lq - 1, 0)    # row l <- rt[l+1]  (circular)
        slabs.append(jnp.concatenate([prev, rt, nxt], axis=1))
    stacked = slabs[0] if bb == 1 else jnp.concatenate(slabs, axis=0)
    proj = jnp.dot(stacked.astype(bf16), wproj_ref[...],
                   preferred_element_type=f32)          # (bb*Lq, Cp)

    x_out_ref[...] = x.astype(x_out_ref.dtype)
    trend_out_ref[...] = proj.astype(trend_out_ref.dtype)


# ------------------------------ host wrapper ---------------------------------

def _pick_batch_block(B):
    """Batch elements per grid step.

    Single-TC chips (v5e/v6e): flatten the whole batch into one fat step so
    the matmul M dimension is as large as possible.  v7x has 2 TensorCores,
    so keep >= 2 "parallel" grid steps when the batch allows it.
    """
    try:
        kind = jax.devices()[0].device_kind.lower()
    except Exception:  # pragma: no cover
        kind = ''
    target = max(1, B // 2) if ('v7' in kind and B >= 2) else B
    for bb in range(target, 0, -1):
        if B % bb == 0:
            return bb
    return 1


def decoder_layer(x, cross, params, moving_avg=25, batch_block=None):
    B, L, D = x.shape
    Lc = cross.shape[1]
    F = params['w1'].shape[1]
    c_out = params['wp0'].shape[1]
    Dp = _round_up(D, LANE)
    Fp = _round_up(F, LANE)
    Cp = _round_up(c_out, LANE)
    bf16 = jnp.bfloat16

    bb = _pick_batch_block(B) if batch_block is None else batch_block
    assert B % bb == 0, 'batch_block must divide the batch size'
    assert (bb * L) % 8 == 0 and (bb * Lc) % 8 == 0, \
        'flattened token blocks must be sublane (8) aligned'

    def pad_act(a, to):
        # pad features to a lane multiple, cast to bf16 (halves DMA bytes),
        # and flatten (batch, seq) into the matmul M dimension.
        a = jnp.pad(a, ((0, 0), (0, 0), (0, to - a.shape[-1]))).astype(bf16)
        return a.reshape(a.shape[0] * a.shape[1], to)

    def pad_w(w, rows, cols):
        return jnp.pad(w, ((0, rows - w.shape[0]),
                           (0, cols - w.shape[1]))).astype(bf16)

    xp = pad_act(x, Dp)              # (B*L,  Dp) bf16
    crossp = pad_act(cross, Dp)      # (B*Lc, Dp) bf16

    # Block-diagonal f32 moving-average matrix over the bb batch elements of
    # one grid step (kept f32 so the 25-tap average does not round to bf16).
    A1 = build_moving_avg_matrix(L, moving_avg)
    A = jnp.asarray(np.kron(np.eye(bb, dtype=np.float32), A1))

    # Fused projection weights: [wq|wk|wv] for self-attn, [wk|wv] for
    # cross-attn, and the three circular-conv taps stacked along rows.
    wqkv_s = jnp.concatenate([pad_w(params[n], Dp, Dp)
                              for n in ('wq_s', 'wk_s', 'wv_s')], axis=1)
    wo_s = pad_w(params['wo_s'], Dp, Dp)
    wq_c = pad_w(params['wq_c'], Dp, Dp)
    wkv_c = jnp.concatenate([pad_w(params[n], Dp, Dp)
                             for n in ('wk_c', 'wv_c')], axis=1)
    wo_c = pad_w(params['wo_c'], Dp, Dp)
    w1 = pad_w(params['w1'], Dp, Fp)
    w2 = pad_w(params['w2'], Fp, Dp)
    wproj = jnp.concatenate([pad_w(params['wp0'], Dp, Cp),
                             pad_w(params['wp1'], Dp, Cp),
                             pad_w(params['wp2'], Dp, Cp)], axis=0)

    inputs = (xp, crossp, A, wqkv_s, wo_s, wq_c, wkv_c, wo_c, w1, w2, wproj)

    def tok_spec(rows, cols):
        return pl.BlockSpec((rows, cols), lambda i: (i, 0))

    # Right-sized VMEM request: 2x (double-buffer) the I/O + weight blocks
    # plus slack for kernel-body temporaries (instead of a blanket 32 MiB).
    io_bytes = sum(int(np.prod(a.shape)) * a.dtype.itemsize for a in inputs)
    io_bytes += (B * L * Dp + B * L * Cp) * 4
    vmem_limit = int(min(max(2 * io_bytes + (6 << 20), 8 << 20), 64 << 20))

    kernel = functools.partial(decoder_layer_kernel,
                               scale=1.0 / math.sqrt(D), bb=bb)

    def call(weight_pm):
        def const_spec(arr):
            nd = arr.ndim
            kw = {} if weight_pm is None else {'pipeline_mode': weight_pm}
            return pl.BlockSpec(arr.shape, lambda i, _nd=nd: (0,) * _nd, **kw)

        in_specs = ([tok_spec(bb * L, Dp), tok_spec(bb * Lc, Dp)]
                    + [const_spec(a) for a in inputs[2:]])
        return pl.pallas_call(
            kernel,
            grid=(B // bb,),
            in_specs=in_specs,
            out_specs=(tok_spec(bb * L, Dp), tok_spec(bb * L, Cp)),
            out_shape=(jax.ShapeDtypeStruct((B * L, Dp), jnp.float32),
                       jax.ShapeDtypeStruct((B * L, Cp), jnp.float32)),
            compiler_params=pltpu.CompilerParams(
                dimension_semantics=("parallel",),
                vmem_limit_bytes=vmem_limit),
        )(*inputs)

    try:
        # Weights never change across the grid -> single-buffer them.
        x_out, trend_out = call(pl.Buffered(1))
    except Exception:
        # Fallback for jax versions where BlockSpec.pipeline_mode /
        # single-buffering is unsupported (default double-buffering).
        x_out, trend_out = call(None)

    # un-flatten the token axis and strip the lane padding back off
    x_out = x_out.reshape(B, L, Dp)[:, :, :D]
    trend_out = trend_out.reshape(B, L, Cp)[:, :, :c_out]
    return x_out, trend_out


# ------------------------------ reference & params ---------------------------

def reference(x, cross, params, moving_avg):
    # Pure-JAX mirror of the forward pass with the same precision policy as
    # the kernel: bf16 inputs / MXU operands, f32 accumulation, f32 decomp.
    f32, bf16 = jnp.float32, jnp.bfloat16
    B, L, D = x.shape
    scale = 1.0 / math.sqrt(D)
    A = jnp.asarray(build_moving_avg_matrix(L, moving_avg))   # f32

    x = x.astype(bf16).astype(f32)
    cross = cross.astype(bf16).astype(f32)

    def mm(a, w):
        return jnp.einsum('bld,de->ble', a.astype(bf16), w.astype(bf16),
                          preferred_element_type=f32)

    def attn(q_in, kv_in, wq, wk, wv, wo):
        q, k, v = mm(q_in, wq), mm(kv_in, wk), mm(kv_in, wv)
        s = jnp.einsum('bqe,bke->bqk', q.astype(bf16), k.astype(bf16),
                       preferred_element_type=f32) * scale
        s = s - jnp.max(s, axis=-1, keepdims=True)
        p = jnp.exp(s)
        p = p / jnp.sum(p, axis=-1, keepdims=True)
        o = jnp.einsum('bqk,bke->bqe', p.astype(bf16), v.astype(bf16),
                       preferred_element_type=f32)
        return mm(o, wo)

    def decomp(z):
        trend = jnp.einsum('ls,bsd->bld', A, z, preferred_element_type=f32)
        return z - trend, trend

    p = params
    x = x + attn(x, x, p['wq_s'], p['wk_s'], p['wv_s'], p['wo_s'])
    x, t1 = decomp(x)
    x = x + attn(x, cross, p['wq_c'], p['wk_c'], p['wv_c'], p['wo_c'])
    x, t2 = decomp(x)
    h = jnp.maximum(mm(x, p['w1']), 0.0)
    y = mm(h, p['w2'])
    x, t3 = decomp(x + y)
    rt = t1 + t2 + t3
    prev = jnp.roll(rt, 1, axis=1)
    nxt = jnp.roll(rt, -1, axis=1)
    proj = mm(prev, p['wp0']) + mm(rt, p['wp1']) + mm(nxt, p['wp2'])
    return x, proj


def init_params(key, d_model, d_ff, c_out):
    keys = jax.random.split(key, len(PARAM_NAMES))
    shapes = {
        'wq_s': (d_model, d_model), 'wk_s': (d_model, d_model),
        'wv_s': (d_model, d_model), 'wo_s': (d_model, d_model),
        'wq_c': (d_model, d_model), 'wk_c': (d_model, d_model),
        'wv_c': (d_model, d_model), 'wo_c': (d_model, d_model),
        'w1': (d_model, d_ff),        # conv1 (1x1), (in, out)
        'w2': (d_ff, d_model),        # conv2 (1x1), (in, out)
        'wp0': (d_model, c_out),      # projection conv tap t=0 (input l-1)
        'wp1': (d_model, c_out),      # tap t=1 (input l)
        'wp2': (d_model, c_out),      # tap t=2 (input l+1)
    }
    params = {}
    for name, k in zip(PARAM_NAMES, keys):
        shape = shapes[name]
        params[name] = (jax.random.normal(k, shape, jnp.float32)
                        / np.sqrt(float(shape[0])))
    return params


if __name__ == "__main__":
    B, L, Lc = 2, 32, 48
    d_model, c_out = 128, 16
    d_ff = 4 * d_model
    moving_avg = 25

    key = jax.random.PRNGKey(0)
    kx, kc, kp = jax.random.split(key, 3)
    x = jax.random.normal(kx, (B, L, d_model), jnp.float32)
    cross = jax.random.normal(kc, (B, Lc, d_model), jnp.float32)
    params = init_params(kp, d_model, d_ff, c_out)

    x_out, trend_out = jax.block_until_ready(
        decoder_layer(x, cross, params, moving_avg))

    x_ref, trend_ref = reference(x, cross, params, moving_avg)
    assert x_out.shape == (B, L, d_model)
    assert trend_out.shape == (B, L, c_out)
    # Tolerance covers the approximate EUP reciprocal in the kernel's softmax
    # (the bf16 MXU / f32-decomp policy is mirrored exactly by the reference).
    assert np.allclose(np.asarray(x_out), np.asarray(x_ref),
                       rtol=5e-2, atol=5e-2)
    assert np.allclose(np.asarray(trend_out), np.asarray(trend_ref),
                       rtol=5e-2, atol=5e-2)

    print("KERNEL_OK")
</pallas_src>

<mosaic_0001>
module attributes {stable_mosaic.version = 11 : i64} {
  func.func @decoder_layer_kernel(%arg0: i32, %arg1: memref<64x128xbf16, #tpu.memory_space<vmem>>, %arg2: memref<96x128xbf16, #tpu.memory_space<vmem>>, %arg3: memref<64x64xf32, #tpu.memory_space<vmem>>, %arg4: memref<128x384xbf16, #tpu.memory_space<vmem>>, %arg5: memref<128x128xbf16, #tpu.memory_space<vmem>>, %arg6: memref<128x128xbf16, #tpu.memory_space<vmem>>, %arg7: memref<128x256xbf16, #tpu.memory_space<vmem>>, %arg8: memref<128x128xbf16, #tpu.memory_space<vmem>>, %arg9: memref<128x512xbf16, #tpu.memory_space<vmem>>, %arg10: memref<512x128xbf16, #tpu.memory_space<vmem>>, %arg11: memref<384x128xbf16, #tpu.memory_space<vmem>>, %arg12: memref<64x128xf32, #tpu.memory_space<vmem>>, %arg13: memref<64x128xf32, #tpu.memory_space<vmem>>) attributes {dimension_semantics = [#tpu.dimension_semantics<parallel>], iteration_bounds = array<i64: 1>, scalar_prefetch = 0 : i64, scratch_operands = 0 : i64, tpu.core_type = #tpu.core_type<tc>, window_params = [{transform_indices = @transform_0, window_bounds = array<i64: 64, 128>}, {transform_indices = @transform_1, window_bounds = array<i64: 96, 128>}, {pipeline_mode = #tpu.pipeline_mode<synchronous>, transform_indices = @transform_2, window_bounds = array<i64: 64, 64>}, {pipeline_mode = #tpu.pipeline_mode<synchronous>, transform_indices = @transform_3, window_bounds = array<i64: 128, 384>}, {pipeline_mode = #tpu.pipeline_mode<synchronous>, transform_indices = @transform_4, window_bounds = array<i64: 128, 128>}, {pipeline_mode = #tpu.pipeline_mode<synchronous>, transform_indices = @transform_5, window_bounds = array<i64: 128, 128>}, {pipeline_mode = #tpu.pipeline_mode<synchronous>, transform_indices = @transform_6, window_bounds = array<i64: 128, 256>}, {pipeline_mode = #tpu.pipeline_mode<synchronous>, transform_indices = @transform_7, window_bounds = array<i64: 128, 128>}, {pipeline_mode = #tpu.pipeline_mode<synchronous>, transform_indices = @transform_8, window_bounds = array<i64: 128, 512>}, {pipeline_mode = #tpu.pipeline_mode<synchronous>, transform_indices = @transform_9, window_bounds = array<i64: 512, 128>}, {pipeline_mode = #tpu.pipeline_mode<synchronous>, transform_indices = @transform_10, window_bounds = array<i64: 384, 128>}, {transform_indices = @transform_11, window_bounds = array<i64: 64, 128>}, {transform_indices = @transform_12, window_bounds = array<i64: 64, 128>}]} {
    %c0 = arith.constant 0 : index
    %c0_0 = arith.constant 0 : index
    %0 = vector.load %arg1[%c0, %c0_0] : memref<64x128xbf16, #tpu.memory_space<vmem>>, vector<64x128xbf16>
    %c0_1 = arith.constant 0 : index
    %c0_2 = arith.constant 0 : index
    %1 = vector.load %arg2[%c0_1, %c0_2] : memref<96x128xbf16, #tpu.memory_space<vmem>>, vector<96x128xbf16>
    %2 = arith.extf %0 : vector<64x128xbf16> to vector<64x128xf32>
    %c0_3 = arith.constant 0 : index
    %c0_4 = arith.constant 0 : index
    %3 = vector.load %arg4[%c0_3, %c0_4] : memref<128x384xbf16, #tpu.memory_space<vmem>>, vector<128x384xbf16>
    %cst = arith.constant dense<0.000000e+00> : vector<64x384xf32>
    %4 = tpu.matmul %0, %3, %cst {dimension_numbers = #tpu.dot_dimension_numbers<[1], [0], [0], [1], [0, 0, 1, 1], [], []>} : vector<64x128xbf16>, vector<128x384xbf16>, vector<64x384xf32> -> vector<64x384xf32>
    %5 = arith.truncf %4 : vector<64x384xf32> to vector<64x384xbf16>
    %6 = vector.extract_strided_slice %5 {offsets = [0, 0], sizes = [32, 128], strides = [1, 1]} : vector<64x384xbf16> to vector<32x128xbf16>
    %7 = vector.extract_strided_slice %5 {offsets = [0, 128], sizes = [32, 128], strides = [1, 1]} : vector<64x384xbf16> to vector<32x128xbf16>
    %8 = vector.extract_strided_slice %5 {offsets = [0, 256], sizes = [32, 128], strides = [1, 1]} : vector<64x384xbf16> to vector<32x128xbf16>
    %cst_5 = arith.constant dense<0.000000e+00> : vector<32x32xf32>
    %9 = tpu.matmul %6, %7, %cst_5 {dimension_numbers = #tpu.dot_dimension_numbers<[1], [1], [0], [0], [0, 0, 1, 0], [], []>} : vector<32x128xbf16>, vector<32x128xbf16>, vector<32x32xf32> -> vector<32x32xf32>
    %cst_6 = arith.constant 0.0883883461 : f32
    %10 = vector.broadcast %cst_6 : f32 to vector<32x32xf32>
    %11 = arith.mulf %9, %10 : vector<32x32xf32>
    %cst_7 = arith.constant dense<0xFF800000> : vector<32xf32>
    %12 = vector.multi_reduction <maximumf>, %11, %cst_7 [1] : vector<32x32xf32> to vector<32xf32>
    %13 = vector.shape_cast %12 : vector<32xf32> to vector<32x1xf32>
    %14 = vector.broadcast %13 : vector<32x1xf32> to vector<32x32xf32>
    %15 = arith.subf %11, %14 : vector<32x32xf32>
    %16 = math.exp %15 : vector<32x32xf32>
    %cst_8 = arith.constant dense<0.000000e+00> : vector<32xf32>
    %17 = vector.multi_reduction <add>, %16, %cst_8 [1] : vector<32x32xf32> to vector<32xf32>
    %18 = vector.shape_cast %17 : vector<32xf32> to vector<32x1xf32>
    %19 = tpu.reciprocal %18 {approx = true} : vector<32x1xf32> -> vector<32x1xf32>
    %20 = vector.broadcast %19 : vector<32x1xf32> to vector<32x32xf32>
    %21 = arith.mulf %16, %20 : vector<32x32xf32>
    %22 = arith.truncf %21 : vector<32x32xf32> to vector<32x32xbf16>
    %cst_9 = arith.constant dense<0.000000e+00> : vector<32x128xf32>
    %23 = tpu.matmul %22, %8, %cst_9 {dimension_numbers = #tpu.dot_dimension_numbers<[1], [0], [0], [1], [0, 0, 1, 1], [], []>} : vector<32x32xbf16>, vector<32x128xbf16>, vector<32x128xf32> -> vector<32x128xf32>
    %24 = vector.extract_strided_slice %5 {offsets = [32, 0], sizes = [32, 128], strides = [1, 1]} : vector<64x384xbf16> to vector<32x128xbf16>
    %25 = vector.extract_strided_slice %5 {offsets = [32, 128], sizes = [32, 128], strides = [1, 1]} : vector<64x384xbf16> to vector<32x128xbf16>
    %26 = vector.extract_strided_slice %5 {offsets = [32, 256], sizes = [32, 128], strides = [1, 1]} : vector<64x384xbf16> to vector<32x128xbf16>
    %cst_10 = arith.constant dense<0.000000e+00> : vector<32x32xf32>
    %27 = tpu.matmul %24, %25, %cst_10 {dimension_numbers = #tpu.dot_dimension_numbers<[1], [1], [0], [0], [0, 0, 1, 0], [], []>} : vector<32x128xbf16>, vector<32x128xbf16>, vector<32x32xf32> -> vector<32x32xf32>
    %cst_11 = arith.constant 0.0883883461 : f32
    %28 = vector.broadcast %cst_11 : f32 to vector<32x32xf32>
    %29 = arith.mulf %27, %28 : vector<32x32xf32>
    %cst_12 = arith.constant dense<0xFF800000> : vector<32xf32>
    %30 = vector.multi_reduction <maximumf>, %29, %cst_12 [1] : vector<32x32xf32> to vector<32xf32>
    %31 = vector.shape_cast %30 : vector<32xf32> to vector<32x1xf32>
    %32 = vector.broadcast %31 : vector<32x1xf32> to vector<32x32xf32>
    %33 = arith.subf %29, %32 : vector<32x32xf32>
    %34 = math.exp %33 : vector<32x32xf32>
    %cst_13 = arith.constant dense<0.000000e+00> : vector<32xf32>
    %35 = vector.multi_reduction <add>, %34, %cst_13 [1] : vector<32x32xf32> to vector<32xf32>
    %36 = vector.shape_cast %35 : vector<32xf32> to vector<32x1xf32>
    %37 = tpu.reciprocal %36 {approx = true} : vector<32x1xf32> -> vector<32x1xf32>
    %38 = vector.broadcast %37 : vector<32x1xf32> to vector<32x32xf32>
    %39 = arith.mulf %34, %38 : vector<32x32xf32>
    %40 = arith.truncf %39 : vector<32x32xf32> to vector<32x32xbf16>
    %cst_14 = arith.constant dense<0.000000e+00> : vector<32x128xf32>
    %41 = tpu.matmul %40, %26, %cst_14 {dimension_numbers = #tpu.dot_dimension_numbers<[1], [0], [0], [1], [0, 0, 1, 1], [], []>} : vector<32x32xbf16>, vector<32x128xbf16>, vector<32x128xf32> -> vector<32x128xf32>
    %42 = tpu.concatenate %23, %41 in 0 : vector<32x128xf32>, vector<32x128xf32> -> vector<64x128xf32>
    %43 = arith.truncf %42 : vector<64x128xf32> to vector<64x128xbf16>
    %c0_15 = arith.constant 0 : index
    %c0_16 = arith.constant 0 : index
    %44 = vector.load %arg5[%c0_15, %c0_16] : memref<128x128xbf16, #tpu.memory_space<vmem>>, vector<128x128xbf16>
    %cst_17 = arith.constant dense<0.000000e+00> : vector<64x128xf32>
    %45 = tpu.matmul %43, %44, %cst_17 {dimension_numbers = #tpu.dot_dimension_numbers<[1], [0], [0], [1], [0, 0, 1, 1], [], []>} : vector<64x128xbf16>, vector<128x128xbf16>, vector<64x128xf32> -> vector<64x128xf32>
    %46 = arith.addf %2, %45 : vector<64x128xf32>
    %c0_18 = arith.constant 0 : index
    %c0_19 = arith.constant 0 : index
    %47 = vector.load %arg3[%c0_18, %c0_19] : memref<64x64xf32, #tpu.memory_space<vmem>>, vector<64x64xf32>
    %cst_20 = arith.constant dense<0.000000e+00> : vector<64x128xf32>
    %48 = tpu.matmul %47, %46, %cst_20 {dimension_numbers = #tpu.dot_dimension_numbers<[1], [0], [0], [1], [0, 0, 1, 1], [], []>} : vector<64x64xf32>, vector<64x128xf32>, vector<64x128xf32> -> vector<64x128xf32>
    %49 = arith.subf %46, %48 : vector<64x128xf32>
    %50 = arith.truncf %49 : vector<64x128xf32> to vector<64x128xbf16>
    %c0_21 = arith.constant 0 : index
    %c0_22 = arith.constant 0 : index
    %51 = vector.load %arg6[%c0_21, %c0_22] : memref<128x128xbf16, #tpu.memory_space<vmem>>, vector<128x128xbf16>
    %cst_23 = arith.constant dense<0.000000e+00> : vector<64x128xf32>
    %52 = tpu.matmul %50, %51, %cst_23 {dimension_numbers = #tpu.dot_dimension_numbers<[1], [0], [0], [1], [0, 0, 1, 1], [], []>} : vector<64x128xbf16>, vector<128x128xbf16>, vector<64x128xf32> -> vector<64x128xf32>
    %53 = arith.truncf %52 : vector<64x128xf32> to vector<64x128xbf16>
    %c0_24 = arith.constant 0 : index
    %c0_25 = arith.constant 0 : index
    %54 = vector.load %arg7[%c0_24, %c0_25] : memref<128x256xbf16, #tpu.memory_space<vmem>>, vector<128x256xbf16>
    %cst_26 = arith.constant dense<0.000000e+00> : vector<96x256xf32>
    %55 = tpu.matmul %1, %54, %cst_26 {dimension_numbers = #tpu.dot_dimension_numbers<[1], [0], [0], [1], [0, 0, 1, 1], [], []>} : vector<96x128xbf16>, vector<128x256xbf16>, vector<96x256xf32> -> vector<96x256xf32>
    %56 = arith.truncf %55 : vector<96x256xf32> to vector<96x256xbf16>
    %57 = vector.extract_strided_slice %53 {offsets = [0, 0], sizes = [32, 128], strides = [1, 1]} : vector<64x128xbf16> to vector<32x128xbf16>
    %58 = vector.extract_strided_slice %56 {offsets = [0, 0], sizes = [48, 128], strides = [1, 1]} : vector<96x256xbf16> to vector<48x128xbf16>
    %59 = vector.extract_strided_slice %56 {offsets = [0, 128], sizes = [48, 128], strides = [1, 1]} : vector<96x256xbf16> to vector<48x128xbf16>
    %cst_27 = arith.constant dense<0.000000e+00> : vector<32x48xf32>
    %60 = tpu.matmul %57, %58, %cst_27 {dimension_numbers = #tpu.dot_dimension_numbers<[1], [1], [0], [0], [0, 0, 1, 0], [], []>} : vector<32x128xbf16>, vector<48x128xbf16>, vector<32x48xf32> -> vector<32x48xf32>
    %cst_28 = arith.constant 0.0883883461 : f32
    %61 = vector.broadcast %cst_28 : f32 to vector<32x48xf32>
    %62 = arith.mulf %60, %61 : vector<32x48xf32>
    %cst_29 = arith.constant dense<0xFF800000> : vector<32xf32>
    %63 = vector.multi_reduction <maximumf>, %62, %cst_29 [1] : vector<32x48xf32> to vector<32xf32>
    %64 = vector.shape_cast %63 : vector<32xf32> to vector<32x1xf32>
    %65 = vector.broadcast %64 : vector<32x1xf32> to vector<32x48xf32>
    %66 = arith.subf %62, %65 : vector<32x48xf32>
    %67 = math.exp %66 : vector<32x48xf32>
    %cst_30 = arith.constant dense<0.000000e+00> : vector<32xf32>
    %68 = vector.multi_reduction <add>, %67, %cst_30 [1] : vector<32x48xf32> to vector<32xf32>
    %69 = vector.shape_cast %68 : vector<32xf32> to vector<32x1xf32>
    %70 = tpu.reciprocal %69 {approx = true} : vector<32x1xf32> -> vector<32x1xf32>
    %71 = vector.broadcast %70 : vector<32x1xf32> to vector<32x48xf32>
    %72 = arith.mulf %67, %71 : vector<32x48xf32>
    %73 = arith.truncf %72 : vector<32x48xf32> to vector<32x48xbf16>
    %cst_31 = arith.constant dense<0.000000e+00> : vector<32x128xf32>
    %74 = tpu.matmul %73, %59, %cst_31 {dimension_numbers = #tpu.dot_dimension_numbers<[1], [0], [0], [1], [0, 0, 1, 1], [], []>} : vector<32x48xbf16>, vector<48x128xbf16>, vector<32x128xf32> -> vector<32x128xf32>
    %75 = vector.extract_strided_slice %53 {offsets = [32, 0], sizes = [32, 128], strides = [1, 1]} : vector<64x128xbf16> to vector<32x128xbf16>
    %76 = vector.extract_strided_slice %56 {offsets = [48, 0], sizes = [48, 128], strides = [1, 1]} : vector<96x256xbf16> to vector<48x128xbf16>
    %77 = vector.extract_strided_slice %56 {offsets = [48, 128], sizes = [48, 128], strides = [1, 1]} : vector<96x256xbf16> to vector<48x128xbf16>
    %cst_32 = arith.constant dense<0.000000e+00> : vector<32x48xf32>
    %78 = tpu.matmul %75, %76, %cst_32 {dimension_numbers = #tpu.dot_dimension_numbers<[1], [1], [0], [0], [0, 0, 1, 0], [], []>} : vector<32x128xbf16>, vector<48x128xbf16>, vector<32x48xf32> -> vector<32x48xf32>
    %cst_33 = arith.constant 0.0883883461 : f32
    %79 = vector.broadcast %cst_33 : f32 to vector<32x48xf32>
    %80 = arith.mulf %78, %79 : vector<32x48xf32>
    %cst_34 = arith.constant dense<0xFF800000> : vector<32xf32>
    %81 = vector.multi_reduction <maximumf>, %80, %cst_34 [1] : vector<32x48xf32> to vector<32xf32>
    %82 = vector.shape_cast %81 : vector<32xf32> to vector<32x1xf32>
    %83 = vector.broadcast %82 : vector<32x1xf32> to vector<32x48xf32>
    %84 = arith.subf %80, %83 : vector<32x48xf32>
    %85 = math.exp %84 : vector<32x48xf32>
    %cst_35 = arith.constant dense<0.000000e+00> : vector<32xf32>
    %86 = vector.multi_reduction <add>, %85, %cst_35 [1] : vector<32x48xf32> to vector<32xf32>
    %87 = vector.shape_cast %86 : vector<32xf32> to vector<32x1xf32>
    %88 = tpu.reciprocal %87 {approx = true} : vector<32x1xf32> -> vector<32x1xf32>
    %89 = vector.broadcast %88 : vector<32x1xf32> to vector<32x48xf32>
    %90 = arith.mulf %85, %89 : vector<32x48xf32>
    %91 = arith.truncf %90 : vector<32x48xf32> to vector<32x48xbf16>
    %cst_36 = arith.constant dense<0.000000e+00> : vector<32x128xf32>
    %92 = tpu.matmul %91, %77, %cst_36 {dimension_numbers = #tpu.dot_dimension_numbers<[1], [0], [0], [1], [0, 0, 1, 1], [], []>} : vector<32x48xbf16>, vector<48x128xbf16>, vector<32x128xf32> -> vector<32x128xf32>
    %93 = tpu.concatenate %74, %92 in 0 : vector<32x128xf32>, vector<32x128xf32> -> vector<64x128xf32>
    %94 = arith.truncf %93 : vector<64x128xf32> to vector<64x128xbf16>
    %c0_37 = arith.constant 0 : index
    %c0_38 = arith.constant 0 : index
    %95 = vector.load %arg8[%c0_37, %c0_38] : memref<128x128xbf16, #tpu.memory_space<vmem>>, vector<128x128xbf16>
    %cst_39 = arith.constant dense<0.000000e+00> : vector<64x128xf32>
    %96 = tpu.matmul %94, %95, %cst_39 {dimension_numbers = #tpu.dot_dimension_numbers<[1], [0], [0], [1], [0, 0, 1, 1], [], []>} : vector<64x128xbf16>, vector<128x128xbf16>, vector<64x128xf32> -> vector<64x128xf32>
    %97 = arith.addf %49, %96 : vector<64x128xf32>
    %c0_40 = arith.constant 0 : index
    %c0_41 = arith.constant 0 : index
    %98 = vector.load %arg3[%c0_40, %c0_41] : memref<64x64xf32, #tpu.memory_space<vmem>>, vector<64x64xf32>
    %cst_42 = arith.constant dense<0.000000e+00> : vector<64x128xf32>
    %99 = tpu.matmul %98, %97, %cst_42 {dimension_numbers = #tpu.dot_dimension_numbers<[1], [0], [0], [1], [0, 0, 1, 1], [], []>} : vector<64x64xf32>, vector<64x128xf32>, vector<64x128xf32> -> vector<64x128xf32>
    %100 = arith.subf %97, %99 : vector<64x128xf32>
    %101 = arith.addf %48, %99 : vector<64x128xf32>
    %102 = arith.truncf %100 : vector<64x128xf32> to vector<64x128xbf16>
    %c0_43 = arith.constant 0 : index
    %c0_44 = arith.constant 0 : index
    %103 = vector.load %arg9[%c0_43, %c0_44] : memref<128x512xbf16, #tpu.memory_space<vmem>>, vector<128x512xbf16>
    %cst_45 = arith.constant dense<0.000000e+00> : vector<64x512xf32>
    %104 = tpu.matmul %102, %103, %cst_45 {dimension_numbers = #tpu.dot_dimension_numbers<[1], [0], [0], [1], [0, 0, 1, 1], [], []>} : vector<64x128xbf16>, vector<128x512xbf16>, vector<64x512xf32> -> vector<64x512xf32>
    %cst_46 = arith.constant 0.000000e+00 : f32
    %105 = vector.broadcast %cst_46 : f32 to vector<64x512xf32>
    %106 = arith.maximumf %104, %105 : vector<64x512xf32>
    %107 = arith.truncf %106 : vector<64x512xf32> to vector<64x512xbf16>
    %c0_47 = arith.constant 0 : index
    %c0_48 = arith.constant 0 : index
    %108 = vector.load %arg10[%c0_47, %c0_48] : memref<512x128xbf16, #tpu.memory_space<vmem>>, vector<512x128xbf16>
    %cst_49 = arith.constant dense<0.000000e+00> : vector<64x128xf32>
    %109 = tpu.matmul %107, %108, %cst_49 {dimension_numbers = #tpu.dot_dimension_numbers<[1], [0], [0], [1], [0, 0, 1, 1], [], []>} : vector<64x512xbf16>, vector<512x128xbf16>, vector<64x128xf32> -> vector<64x128xf32>
    %110 = arith.addf %100, %109 : vector<64x128xf32>
    %c0_50 = arith.constant 0 : index
    %c0_51 = arith.constant 0 : index
    %111 = vector.load %arg3[%c0_50, %c0_51] : memref<64x64xf32, #tpu.memory_space<vmem>>, vector<64x64xf32>
    %cst_52 = arith.constant dense<0.000000e+00> : vector<64x128xf32>
    %112 = tpu.matmul %111, %110, %cst_52 {dimension_numbers = #tpu.dot_dimension_numbers<[1], [0], [0], [1], [0, 0, 1, 1], [], []>} : vector<64x64xf32>, vector<64x128xf32>, vector<64x128xf32> -> vector<64x128xf32>
    %113 = arith.subf %110, %112 : vector<64x128xf32>
    %114 = arith.addf %101, %112 : vector<64x128xf32>
    %115 = vector.extract_strided_slice %114 {offsets = [0, 0], sizes = [32, 128], strides = [1, 1]} : vector<64x128xf32> to vector<32x128xf32>
    %c1_i32 = arith.constant 1 : i32
    %116 = tpu.dynamic_rotate %115 by %c1_i32 dim 0 : vector<32x128xf32>, i32 -> vector<32x128xf32>
    %c31_i32 = arith.constant 31 : i32
    %117 = tpu.dynamic_rotate %115 by %c31_i32 dim 0 : vector<32x128xf32>, i32 -> vector<32x128xf32>
    %118 = tpu.concatenate %116, %115, %117 in 1 : vector<32x128xf32>, vector<32x128xf32>, vector<32x128xf32> -> vector<32x384xf32>
    %119 = vector.extract_strided_slice %114 {offsets = [32, 0], sizes = [32, 128], strides = [1, 1]} : vector<64x128xf32> to vector<32x128xf32>
    %c1_i32_53 = arith.constant 1 : i32
    %120 = tpu.dynamic_rotate %119 by %c1_i32_53 dim 0 : vector<32x128xf32>, i32 -> vector<32x128xf32>
    %c31_i32_54 = arith.constant 31 : i32
    %121 = tpu.dynamic_rotate %119 by %c31_i32_54 dim 0 : vector<32x128xf32>, i32 -> vector<32x128xf32>
    %122 = tpu.concatenate %120, %119, %121 in 1 : vector<32x128xf32>, vector<32x128xf32>, vector<32x128xf32> -> vector<32x384xf32>
    %123 = tpu.concatenate %118, %122 in 0 : vector<32x384xf32>, vector<32x384xf32> -> vector<64x384xf32>
    %124 = arith.truncf %123 : vector<64x384xf32> to vector<64x384xbf16>
    %c0_55 = arith.constant 0 : index
    %c0_56 = arith.constant 0 : index
    %125 = vector.load %arg11[%c0_55, %c0_56] : memref<384x128xbf16, #tpu.memory_space<vmem>>, vector<384x128xbf16>
    %cst_57 = arith.constant dense<0.000000e+00> : vector<64x128xf32>
    %126 = tpu.matmul %124, %125, %cst_57 {dimension_numbers = #tpu.dot_dimension_numbers<[1], [0], [0], [1], [0, 0, 1, 1], [], []>} : vector<64x384xbf16>, vector<384x128xbf16>, vector<64x128xf32> -> vector<64x128xf32>
    %c0_58 = arith.constant 0 : index
    %c0_59 = arith.constant 0 : index
    %127 = vector.load %arg12[%c0_58, %c0_59] : memref<64x128xf32, #tpu.memory_space<vmem>>, vector<64x128xf32>
    tpu.vector_store %arg12[%c0_58, %c0_59], %113 {strides = array<i32>} : memref<64x128xf32, #tpu.memory_space<vmem>>, vector<64x128xf32>,
    %c0_60 = arith.constant 0 : index
    %c0_61 = arith.constant 0 : index
    %128 = vector.load %arg13[%c0_60, %c0_61] : memref<64x128xf32, #tpu.memory_space<vmem>>, vector<64x128xf32>
    tpu.vector_store %arg13[%c0_60, %c0_61], %126 {strides = array<i32>} : memref<64x128xf32, #tpu.memory_space<vmem>>, vector<64x128xf32>,
    return
  }
  func.func @transform_0(%arg0: i32) -> (i32, i32) {
    %c0_i32 = arith.constant 0 : i32
    %c0_i32_0 = arith.constant 0 : i32
    return %arg0, %c0_i32 : i32, i32
  }
  func.func @transform_1(%arg0: i32) -> (i32, i32) {
    %c0_i32 = arith.constant 0 : i32
    %c0_i32_0 = arith.constant 0 : i32
    return %arg0, %c0_i32 : i32, i32
  }
  func.func @transform_2(%arg0: i32) -> (i32, i32) {
    %c0_i32 = arith.constant 0 : i32
    %c0_i32_0 = arith.constant 0 : i32
    %c0_i32_1 = arith.constant 0 : i32
    return %c0_i32, %c0_i32_0 : i32, i32
  }
  func.func @transform_3(%arg0: i32) -> (i32, i32) {
    %c0_i32 = arith.constant 0 : i32
    %c0_i32_0 = arith.constant 0 : i32
    %c0_i32_1 = arith.constant 0 : i32
    return %c0_i32, %c0_i32_0 : i32, i32
  }
  func.func @transform_4(%arg0: i32) -> (i32, i32) {
    %c0_i32 = arith.constant 0 : i32
    %c0_i32_0 = arith.constant 0 : i32
    %c0_i32_1 = arith.constant 0 : i32
    return %c0_i32, %c0_i32_0 : i32, i32
  }
  func.func @transform_5(%arg0: i32) -> (i32, i32) {
    %c0_i32 = arith.constant 0 : i32
    %c0_i32_0 = arith.constant 0 : i32
    %c0_i32_1 = arith.constant 0 : i32
    return %c0_i32, %c0_i32_0 : i32, i32
  }
  func.func @transform_6(%arg0: i32) -> (i32, i32) {
    %c0_i32 = arith.constant 0 : i32
    %c0_i32_0 = arith.constant 0 : i32
    %c0_i32_1 = arith.constant 0 : i32
    return %c0_i32, %c0_i32_0 : i32, i32
  }
  func.func @transform_7(%arg0: i32) -> (i32, i32) {
    %c0_i32 = arith.constant 0 : i32
    %c0_i32_0 = arith.constant 0 : i32
    %c0_i32_1 = arith.constant 0 : i32
    return %c0_i32, %c0_i32_0 : i32, i32
  }
  func.func @transform_8(%arg0: i32) -> (i32, i32) {
    %c0_i32 = arith.constant 0 : i32
    %c0_i32_0 = arith.constant 0 : i32
    %c0_i32_1 = arith.constant 0 : i32
    return %c0_i32, %c0_i32_0 : i32, i32
  }
  func.func @transform_9(%arg0: i32) -> (i32, i32) {
    %c0_i32 = arith.constant 0 : i32
    %c0_i32_0 = arith.constant 0 : i32
    %c0_i32_1 = arith.constant 0 : i32
    return %c0_i32, %c0_i32_0 : i32, i32
  }
  func.func @transform_10(%arg0: i32) -> (i32, i32) {
    %c0_i32 = arith.constant 0 : i32
    %c0_i32_0 = arith.constant 0 : i32
    %c0_i32_1 = arith.constant 0 : i32
    return %c0_i32, %c0_i32_0 : i32, i32
  }
  func.func @transform_11(%arg0: i32) -> (i32, i32) {
    %c0_i32 = arith.constant 0 : i32
    %c0_i32_0 = arith.constant 0 : i32
    return %arg0, %c0_i32 : i32, i32
  }
  func.func @transform_12(%arg0: i32) -> (i32, i32) {
    %c0_i32 = arith.constant 0 : i32
    %c0_i32_0 = arith.constant 0 : i32
    return %arg0, %c0_i32 : i32, i32
  }
}

module attributes {stable_mosaic.version = 11 : i64} {
  func.func @decoder_layer_kernel(%arg0: i32, %arg1: memref<64x128xbf16, #tpu.memory_space<vmem>>, %arg2: memref<96x128xbf16, #tpu.memory_space<vmem>>, %arg3: memref<64x64xf32, #tpu.memory_space<vmem>>, %arg4: memref<128x384xbf16, #tpu.memory_space<vmem>>, %arg5: memref<128x128xbf16, #tpu.memory_space<vmem>>, %arg6: memref<128x128xbf16, #tpu.memory_space<vmem>>, %arg7: memref<128x256xbf16, #tpu.memory_space<vmem>>, %arg8: memref<128x128xbf16, #tpu.memory_space<vmem>>, %arg9: memref<128x512xbf16, #tpu.memory_space<vmem>>, %arg10: memref<512x128xbf16, #tpu.memory_space<vmem>>, %arg11: memref<384x128xbf16, #tpu.memory_space<vmem>>, %arg12: memref<64x128xf32, #tpu.memory_space<vmem>>, %arg13: memref<64x128xf32, #tpu.memory_space<vmem>>) attributes {dimension_semantics = [#tpu.dimension_semantics<parallel>], iteration_bounds = array<i64: 1>, scalar_prefetch = 0 : i64, scratch_operands = 0 : i64, tpu.core_type = #tpu.core_type<tc>, window_params = [{transform_indices = @transform_0, window_bounds = array<i64: 64, 128>}, {transform_indices = @transform_1, window_bounds = array<i64: 96, 128>}, {pipeline_mode = #tpu.pipeline_mode<synchronous>, transform_indices = @transform_2, window_bounds = array<i64: 64, 64>}, {pipeline_mode = #tpu.pipeline_mode<synchronous>, transform_indices = @transform_3, window_bounds = array<i64: 128, 384>}, {pipeline_mode = #tpu.pipeline_mode<synchronous>, transform_indices = @transform_4, window_bounds = array<i64: 128, 128>}, {pipeline_mode = #tpu.pipeline_mode<synchronous>, transform_indices = @transform_5, window_bounds = array<i64: 128, 128>}, {pipeline_mode = #tpu.pipeline_mode<synchronous>, transform_indices = @transform_6, window_bounds = array<i64: 128, 256>}, {pipeline_mode = #tpu.pipeline_mode<synchronous>, transform_indices = @transform_7, window_bounds = array<i64: 128, 128>}, {pipeline_mode = #tpu.pipeline_mode<synchronous>, transform_indices = @transform_8, window_bounds = array<i64: 128, 512>}, {pipeline_mode = #tpu.pipeline_mode<synchronous>, transform_indices = @transform_9, window_bounds = array<i64: 512, 128>}, {pipeline_mode = #tpu.pipeline_mode<synchronous>, transform_indices = @transform_10, window_bounds = array<i64: 384, 128>}, {transform_indices = @transform_11, window_bounds = array<i64: 64, 128>}, {transform_indices = @transform_12, window_bounds = array<i64: 64, 128>}]} {
    %c0 = arith.constant 0 : index
    %c0_0 = arith.constant 0 : index
    %0 = vector.load %arg1[%c0, %c0_0] : memref<64x128xbf16, #tpu.memory_space<vmem>>, vector<64x128xbf16>
    %c0_1 = arith.constant 0 : index
    %c0_2 = arith.constant 0 : index
    %1 = vector.load %arg2[%c0_1, %c0_2] : memref<96x128xbf16, #tpu.memory_space<vmem>>, vector<96x128xbf16>
    %2 = arith.extf %0 : vector<64x128xbf16> to vector<64x128xf32>
    %c0_3 = arith.constant 0 : index
    %c0_4 = arith.constant 0 : index
    %3 = vector.load %arg4[%c0_3, %c0_4] : memref<128x384xbf16, #tpu.memory_space<vmem>>, vector<128x384xbf16>
    %cst = arith.constant dense<0.000000e+00> : vector<64x384xf32>
    %4 = tpu.matmul %0, %3, %cst {dimension_numbers = #tpu.dot_dimension_numbers<[1], [0], [0], [1], [0, 0, 1, 1], [], []>} : vector<64x128xbf16>, vector<128x384xbf16>, vector<64x384xf32> -> vector<64x384xf32>
    %5 = arith.truncf %4 : vector<64x384xf32> to vector<64x384xbf16>
    %6 = vector.extract_strided_slice %5 {offsets = [0, 0], sizes = [32, 128], strides = [1, 1]} : vector<64x384xbf16> to vector<32x128xbf16>
    %7 = vector.extract_strided_slice %5 {offsets = [0, 128], sizes = [32, 128], strides = [1, 1]} : vector<64x384xbf16> to vector<32x128xbf16>
    %8 = vector.extract_strided_slice %5 {offsets = [0, 256], sizes = [32, 128], strides = [1, 1]} : vector<64x384xbf16> to vector<32x128xbf16>
    %cst_5 = arith.constant dense<0.000000e+00> : vector<32x32xf32>
    %9 = tpu.matmul %6, %7, %cst_5 {dimension_numbers = #tpu.dot_dimension_numbers<[1], [1], [0], [0], [0, 0, 1, 0], [], []>} : vector<32x128xbf16>, vector<32x128xbf16>, vector<32x32xf32> -> vector<32x32xf32>
    %cst_6 = arith.constant 0.0883883461 : f32
    %10 = vector.broadcast %cst_6 : f32 to vector<32x32xf32>
    %11 = arith.mulf %9, %10 : vector<32x32xf32>
    %cst_7 = arith.constant dense<0xFF800000> : vector<32xf32>
    %12 = vector.multi_reduction <maximumf>, %11, %cst_7 [1] : vector<32x32xf32> to vector<32xf32>
    %13 = vector.shape_cast %12 : vector<32xf32> to vector<32x1xf32>
    %14 = vector.broadcast %13 : vector<32x1xf32> to vector<32x32xf32>
    %15 = arith.subf %11, %14 : vector<32x32xf32>
    %16 = math.exp %15 : vector<32x32xf32>
    %cst_8 = arith.constant dense<0.000000e+00> : vector<32xf32>
    %17 = vector.multi_reduction <add>, %16, %cst_8 [1] : vector<32x32xf32> to vector<32xf32>
    %18 = vector.shape_cast %17 : vector<32xf32> to vector<32x1xf32>
    %19 = tpu.reciprocal %18 {approx = true} : vector<32x1xf32> -> vector<32x1xf32>
    %20 = vector.broadcast %19 : vector<32x1xf32> to vector<32x32xf32>
    %21 = arith.mulf %16, %20 : vector<32x32xf32>
    %22 = arith.truncf %21 : vector<32x32xf32> to vector<32x32xbf16>
    %cst_9 = arith.constant dense<0.000000e+00> : vector<32x128xf32>
    %23 = tpu.matmul %22, %8, %cst_9 {dimension_numbers = #tpu.dot_dimension_numbers<[1], [0], [0], [1], [0, 0, 1, 1], [], []>} : vector<32x32xbf16>, vector<32x128xbf16>, vector<32x128xf32> -> vector<32x128xf32>
    %24 = vector.extract_strided_slice %5 {offsets = [32, 0], sizes = [32, 128], strides = [1, 1]} : vector<64x384xbf16> to vector<32x128xbf16>
    %25 = vector.extract_strided_slice %5 {offsets = [32, 128], sizes = [32, 128], strides = [1, 1]} : vector<64x384xbf16> to vector<32x128xbf16>
    %26 = vector.extract_strided_slice %5 {offsets = [32, 256], sizes = [32, 128], strides = [1, 1]} : vector<64x384xbf16> to vector<32x128xbf16>
    %cst_10 = arith.constant dense<0.000000e+00> : vector<32x32xf32>
    %27 = tpu.matmul %24, %25, %cst_10 {dimension_numbers = #tpu.dot_dimension_numbers<[1], [1], [0], [0], [0, 0, 1, 0], [], []>} : vector<32x128xbf16>, vector<32x128xbf16>, vector<32x32xf32> -> vector<32x32xf32>
    %cst_11 = arith.constant 0.0883883461 : f32
    %28 = vector.broadcast %cst_11 : f32 to vector<32x32xf32>
    %29 = arith.mulf %27, %28 : vector<32x32xf32>
    %cst_12 = arith.constant dense<0xFF800000> : vector<32xf32>
    %30 = vector.multi_reduction <maximumf>, %29, %cst_12 [1] : vector<32x32xf32> to vector<32xf32>
    %31 = vector.shape_cast %30 : vector<32xf32> to vector<32x1xf32>
    %32 = vector.broadcast %31 : vector<32x1xf32> to vector<32x32xf32>
    %33 = arith.subf %29, %32 : vector<32x32xf32>
    %34 = math.exp %33 : vector<32x32xf32>
    %cst_13 = arith.constant dense<0.000000e+00> : vector<32xf32>
    %35 = vector.multi_reduction <add>, %34, %cst_13 [1] : vector<32x32xf32> to vector<32xf32>
    %36 = vector.shape_cast %35 : vector<32xf32> to vector<32x1xf32>
    %37 = tpu.reciprocal %36 {approx = true} : vector<32x1xf32> -> vector<32x1xf32>
    %38 = vector.broadcast %37 : vector<32x1xf32> to vector<32x32xf32>
    %39 = arith.mulf %34, %38 : vector<32x32xf32>
    %40 = arith.truncf %39 : vector<32x32xf32> to vector<32x32xbf16>
    %cst_14 = arith.constant dense<0.000000e+00> : vector<32x128xf32>
    %41 = tpu.matmul %40, %26, %cst_14 {dimension_numbers = #tpu.dot_dimension_numbers<[1], [0], [0], [1], [0, 0, 1, 1], [], []>} : vector<32x32xbf16>, vector<32x128xbf16>, vector<32x128xf32> -> vector<32x128xf32>
    %42 = tpu.concatenate %23, %41 in 0 : vector<32x128xf32>, vector<32x128xf32> -> vector<64x128xf32>
    %43 = arith.truncf %42 : vector<64x128xf32> to vector<64x128xbf16>
    %c0_15 = arith.constant 0 : index
    %c0_16 = arith.constant 0 : index
    %44 = vector.load %arg5[%c0_15, %c0_16] : memref<128x128xbf16, #tpu.memory_space<vmem>>, vector<128x128xbf16>
    %cst_17 = arith.constant dense<0.000000e+00> : vector<64x128xf32>
    %45 = tpu.matmul %43, %44, %cst_17 {dimension_numbers = #tpu.dot_dimension_numbers<[1], [0], [0], [1], [0, 0, 1, 1], [], []>} : vector<64x128xbf16>, vector<128x128xbf16>, vector<64x128xf32> -> vector<64x128xf32>
    %46 = arith.addf %2, %45 : vector<64x128xf32>
    %c0_18 = arith.constant 0 : index
    %c0_19 = arith.constant 0 : index
    %47 = vector.load %arg3[%c0_18, %c0_19] : memref<64x64xf32, #tpu.memory_space<vmem>>, vector<64x64xf32>
    %cst_20 = arith.constant dense<0.000000e+00> : vector<64x128xf32>
    %48 = tpu.matmul %47, %46, %cst_20 {dimension_numbers = #tpu.dot_dimension_numbers<[1], [0], [0], [1], [0, 0, 1, 1], [], []>} : vector<64x64xf32>, vector<64x128xf32>, vector<64x128xf32> -> vector<64x128xf32>
    %49 = arith.subf %46, %48 : vector<64x128xf32>
    %50 = arith.truncf %49 : vector<64x128xf32> to vector<64x128xbf16>
    %c0_21 = arith.constant 0 : index
    %c0_22 = arith.constant 0 : index
    %51 = vector.load %arg6[%c0_21, %c0_22] : memref<128x128xbf16, #tpu.memory_space<vmem>>, vector<128x128xbf16>
    %cst_23 = arith.constant dense<0.000000e+00> : vector<64x128xf32>
    %52 = tpu.matmul %50, %51, %cst_23 {dimension_numbers = #tpu.dot_dimension_numbers<[1], [0], [0], [1], [0, 0, 1, 1], [], []>} : vector<64x128xbf16>, vector<128x128xbf16>, vector<64x128xf32> -> vector<64x128xf32>
    %53 = arith.truncf %52 : vector<64x128xf32> to vector<64x128xbf16>
    %c0_24 = arith.constant 0 : index
    %c0_25 = arith.constant 0 : index
    %54 = vector.load %arg7[%c0_24, %c0_25] : memref<128x256xbf16, #tpu.memory_space<vmem>>, vector<128x256xbf16>
    %cst_26 = arith.constant dense<0.000000e+00> : vector<96x256xf32>
    %55 = tpu.matmul %1, %54, %cst_26 {dimension_numbers = #tpu.dot_dimension_numbers<[1], [0], [0], [1], [0, 0, 1, 1], [], []>} : vector<96x128xbf16>, vector<128x256xbf16>, vector<96x256xf32> -> vector<96x256xf32>
    %56 = arith.truncf %55 : vector<96x256xf32> to vector<96x256xbf16>
    %57 = vector.extract_strided_slice %53 {offsets = [0, 0], sizes = [32, 128], strides = [1, 1]} : vector<64x128xbf16> to vector<32x128xbf16>
    %58 = vector.extract_strided_slice %56 {offsets = [0, 0], sizes = [48, 128], strides = [1, 1]} : vector<96x256xbf16> to vector<48x128xbf16>
    %59 = vector.extract_strided_slice %56 {offsets = [0, 128], sizes = [48, 128], strides = [1, 1]} : vector<96x256xbf16> to vector<48x128xbf16>
    %cst_27 = arith.constant dense<0.000000e+00> : vector<32x48xf32>
    %60 = tpu.matmul %57, %58, %cst_27 {dimension_numbers = #tpu.dot_dimension_numbers<[1], [1], [0], [0], [0, 0, 1, 0], [], []>} : vector<32x128xbf16>, vector<48x128xbf16>, vector<32x48xf32> -> vector<32x48xf32>
    %cst_28 = arith.constant 0.0883883461 : f32
    %61 = vector.broadcast %cst_28 : f32 to vector<32x48xf32>
    %62 = arith.mulf %60, %61 : vector<32x48xf32>
    %cst_29 = arith.constant dense<0xFF800000> : vector<32xf32>
    %63 = vector.multi_reduction <maximumf>, %62, %cst_29 [1] : vector<32x48xf32> to vector<32xf32>
    %64 = vector.shape_cast %63 : vector<32xf32> to vector<32x1xf32>
    %65 = vector.broadcast %64 : vector<32x1xf32> to vector<32x48xf32>
    %66 = arith.subf %62, %65 : vector<32x48xf32>
    %67 = math.exp %66 : vector<32x48xf32>
    %cst_30 = arith.constant dense<0.000000e+00> : vector<32xf32>
    %68 = vector.multi_reduction <add>, %67, %cst_30 [1] : vector<32x48xf32> to vector<32xf32>
    %69 = vector.shape_cast %68 : vector<32xf32> to vector<32x1xf32>
    %70 = tpu.reciprocal %69 {approx = true} : vector<32x1xf32> -> vector<32x1xf32>
    %71 = vector.broadcast %70 : vector<32x1xf32> to vector<32x48xf32>
    %72 = arith.mulf %67, %71 : vector<32x48xf32>
    %73 = arith.truncf %72 : vector<32x48xf32> to vector<32x48xbf16>
    %cst_31 = arith.constant dense<0.000000e+00> : vector<32x128xf32>
    %74 = tpu.matmul %73, %59, %cst_31 {dimension_numbers = #tpu.dot_dimension_numbers<[1], [0], [0], [1], [0, 0, 1, 1], [], []>} : vector<32x48xbf16>, vector<48x128xbf16>, vector<32x128xf32> -> vector<32x128xf32>
    %75 = vector.extract_strided_slice %53 {offsets = [32, 0], sizes = [32, 128], strides = [1, 1]} : vector<64x128xbf16> to vector<32x128xbf16>
    %76 = vector.extract_strided_slice %56 {offsets = [48, 0], sizes = [48, 128], strides = [1, 1]} : vector<96x256xbf16> to vector<48x128xbf16>
    %77 = vector.extract_strided_slice %56 {offsets = [48, 128], sizes = [48, 128], strides = [1, 1]} : vector<96x256xbf16> to vector<48x128xbf16>
    %cst_32 = arith.constant dense<0.000000e+00> : vector<32x48xf32>
    %78 = tpu.matmul %75, %76, %cst_32 {dimension_numbers = #tpu.dot_dimension_numbers<[1], [1], [0], [0], [0, 0, 1, 0], [], []>} : vector<32x128xbf16>, vector<48x128xbf16>, vector<32x48xf32> -> vector<32x48xf32>
    %cst_33 = arith.constant 0.0883883461 : f32
    %79 = vector.broadcast %cst_33 : f32 to vector<32x48xf32>
    %80 = arith.mulf %78, %79 : vector<32x48xf32>
    %cst_34 = arith.constant dense<0xFF800000> : vector<32xf32>
    %81 = vector.multi_reduction <maximumf>, %80, %cst_34 [1] : vector<32x48xf32> to vector<32xf32>
    %82 = vector.shape_cast %81 : vector<32xf32> to vector<32x1xf32>
    %83 = vector.broadcast %82 : vector<32x1xf32> to vector<32x48xf32>
    %84 = arith.subf %80, %83 : vector<32x48xf32>
    %85 = math.exp %84 : vector<32x48xf32>
    %cst_35 = arith.constant dense<0.000000e+00> : vector<32xf32>
    %86 = vector.multi_reduction <add>, %85, %cst_35 [1] : vector<32x48xf32> to vector<32xf32>
    %87 = vector.shape_cast %86 : vector<32xf32> to vector<32x1xf32>
    %88 = tpu.reciprocal %87 {approx = true} : vector<32x1xf32> -> vector<32x1xf32>
    %89 = vector.broadcast %88 : vector<32x1xf32> to vector<32x48xf32>
    %90 = arith.mulf %85, %89 : vector<32x48xf32>
    %91 = arith.truncf %90 : vector<32x48xf32> to vector<32x48xbf16>
    %cst_36 = arith.constant dense<0.000000e+00> : vector<32x128xf32>
    %92 = tpu.matmul %91, %77, %cst_36 {dimension_numbers = #tpu.dot_dimension_numbers<[1], [0], [0], [1], [0, 0, 1, 1], [], []>} : vector<32x48xbf16>, vector<48x128xbf16>, vector<32x128xf32> -> vector<32x128xf32>
    %93 = tpu.concatenate %74, %92 in 0 : vector<32x128xf32>, vector<32x128xf32> -> vector<64x128xf32>
    %94 = arith.truncf %93 : vector<64x128xf32> to vector<64x128xbf16>
    %c0_37 = arith.constant 0 : index
    %c0_38 = arith.constant 0 : index
    %95 = vector.load %arg8[%c0_37, %c0_38] : memref<128x128xbf16, #tpu.memory_space<vmem>>, vector<128x128xbf16>
    %cst_39 = arith.constant dense<0.000000e+00> : vector<64x128xf32>
    %96 = tpu.matmul %94, %95, %cst_39 {dimension_numbers = #tpu.dot_dimension_numbers<[1], [0], [0], [1], [0, 0, 1, 1], [], []>} : vector<64x128xbf16>, vector<128x128xbf16>, vector<64x128xf32> -> vector<64x128xf32>
    %97 = arith.addf %49, %96 : vector<64x128xf32>
    %c0_40 = arith.constant 0 : index
    %c0_41 = arith.constant 0 : index
    %98 = vector.load %arg3[%c0_40, %c0_41] : memref<64x64xf32, #tpu.memory_space<vmem>>, vector<64x64xf32>
    %cst_42 = arith.constant dense<0.000000e+00> : vector<64x128xf32>
    %99 = tpu.matmul %98, %97, %cst_42 {dimension_numbers = #tpu.dot_dimension_numbers<[1], [0], [0], [1], [0, 0, 1, 1], [], []>} : vector<64x64xf32>, vector<64x128xf32>, vector<64x128xf32> -> vector<64x128xf32>
    %100 = arith.subf %97, %99 : vector<64x128xf32>
    %101 = arith.addf %48, %99 : vector<64x128xf32>
    %102 = arith.truncf %100 : vector<64x128xf32> to vector<64x128xbf16>
    %c0_43 = arith.constant 0 : index
    %c0_44 = arith.constant 0 : index
    %103 = vector.load %arg9[%c0_43, %c0_44] : memref<128x512xbf16, #tpu.memory_space<vmem>>, vector<128x512xbf16>
    %cst_45 = arith.constant dense<0.000000e+00> : vector<64x512xf32>
    %104 = tpu.matmul %102, %103, %cst_45 {dimension_numbers = #tpu.dot_dimension_numbers<[1], [0], [0], [1], [0, 0, 1, 1], [], []>} : vector<64x128xbf16>, vector<128x512xbf16>, vector<64x512xf32> -> vector<64x512xf32>
    %cst_46 = arith.constant 0.000000e+00 : f32
    %105 = vector.broadcast %cst_46 : f32 to vector<64x512xf32>
    %106 = arith.maximumf %104, %105 : vector<64x512xf32>
    %107 = arith.truncf %106 : vector<64x512xf32> to vector<64x512xbf16>
    %c0_47 = arith.constant 0 : index
    %c0_48 = arith.constant 0 : index
    %108 = vector.load %arg10[%c0_47, %c0_48] : memref<512x128xbf16, #tpu.memory_space<vmem>>, vector<512x128xbf16>
    %cst_49 = arith.constant dense<0.000000e+00> : vector<64x128xf32>
    %109 = tpu.matmul %107, %108, %cst_49 {dimension_numbers = #tpu.dot_dimension_numbers<[1], [0], [0], [1], [0, 0, 1, 1], [], []>} : vector<64x512xbf16>, vector<512x128xbf16>, vector<64x128xf32> -> vector<64x128xf32>
    %110 = arith.addf %100, %109 : vector<64x128xf32>
    %c0_50 = arith.constant 0 : index
    %c0_51 = arith.constant 0 : index
    %111 = vector.load %arg3[%c0_50, %c0_51] : memref<64x64xf32, #tpu.memory_space<vmem>>, vector<64x64xf32>
    %cst_52 = arith.constant dense<0.000000e+00> : vector<64x128xf32>
    %112 = tpu.matmul %111, %110, %cst_52 {dimension_numbers = #tpu.dot_dimension_numbers<[1], [0], [0], [1], [0, 0, 1, 1], [], []>} : vector<64x64xf32>, vector<64x128xf32>, vector<64x128xf32> -> vector<64x128xf32>
    %113 = arith.subf %110, %112 : vector<64x128xf32>
    %114 = arith.addf %101, %112 : vector<64x128xf32>
    %115 = vector.extract_strided_slice %114 {offsets = [0, 0], sizes = [32, 128], strides = [1, 1]} : vector<64x128xf32> to vector<32x128xf32>
    %c1_i32 = arith.constant 1 : i32
    %116 = tpu.dynamic_rotate %115 by %c1_i32 dim 0 : vector<32x128xf32>, i32 -> vector<32x128xf32>
    %c31_i32 = arith.constant 31 : i32
    %117 = tpu.dynamic_rotate %115 by %c31_i32 dim 0 : vector<32x128xf32>, i32 -> vector<32x128xf32>
    %118 = tpu.concatenate %116, %115, %117 in 1 : vector<32x128xf32>, vector<32x128xf32>, vector<32x128xf32> -> vector<32x384xf32>
    %119 = vector.extract_strided_slice %114 {offsets = [32, 0], sizes = [32, 128], strides = [1, 1]} : vector<64x128xf32> to vector<32x128xf32>
    %c1_i32_53 = arith.constant 1 : i32
    %120 = tpu.dynamic_rotate %119 by %c1_i32_53 dim 0 : vector<32x128xf32>, i32 -> vector<32x128xf32>
    %c31_i32_54 = arith.constant 31 : i32
    %121 = tpu.dynamic_rotate %119 by %c31_i32_54 dim 0 : vector<32x128xf32>, i32 -> vector<32x128xf32>
    %122 = tpu.concatenate %120, %119, %121 in 1 : vector<32x128xf32>, vector<32x128xf32>, vector<32x128xf32> -> vector<32x384xf32>
    %123 = tpu.concatenate %118, %122 in 0 : vector<32x384xf32>, vector<32x384xf32> -> vector<64x384xf32>
    %124 = arith.truncf %123 : vector<64x384xf32> to vector<64x384xbf16>
    %c0_55 = arith.constant 0 : index
    %c0_56 = arith.constant 0 : index
    %125 = vector.load %arg11[%c0_55, %c0_56] : memref<384x128xbf16, #tpu.memory_space<vmem>>, vector<384x128xbf16>
    %cst_57 = arith.constant dense<0.000000e+00> : vector<64x128xf32>
    %126 = tpu.matmul %124, %125, %cst_57 {dimension_numbers = #tpu.dot_dimension_numbers<[1], [0], [0], [1], [0, 0, 1, 1], [], []>} : vector<64x384xbf16>, vector<384x128xbf16>, vector<64x128xf32> -> vector<64x128xf32>
    %c0_58 = arith.constant 0 : index
    %c0_59 = arith.constant 0 : index
    %127 = vector.load %arg12[%c0_58, %c0_59] : memref<64x128xf32, #tpu.memory_space<vmem>>, vector<64x128xf32>
    tpu.vector_store %arg12[%c0_58, %c0_59], %113 {strides = array<i32>} : memref<64x128xf32, #tpu.memory_space<vmem>>, vector<64x128xf32>,
    %c0_60 = arith.constant 0 : index
    %c0_61 = arith.constant 0 : index
    %128 = vector.load %arg13[%c0_60, %c0_61] : memref<64x128xf32, #tpu.memory_space<vmem>>, vector<64x128xf32>
    tpu.vector_store %arg13[%c0_60, %c0_61], %126 {strides = array<i32>} : memref<64x128xf32, #tpu.memory_space<vmem>>, vector<64x128xf32>,
    return
  }
  func.func @transform_0(%arg0: i32) -> (i32, i32) {
    %c0_i32 = arith.constant 0 : i32
    %c0_i32_0 = arith.constant 0 : i32
    return %arg0, %c0_i32 : i32, i32
  }
  func.func @transform_1(%arg0: i32) -> (i32, i32) {
    %c0_i32 = arith.constant 0 : i32
    %c0_i32_0 = arith.constant 0 : i32
    return %arg0, %c0_i32 : i32, i32
  }
  func.func @transform_2(%arg0: i32) -> (i32, i32) {
    %c0_i32 = arith.constant 0 : i32
    %c0_i32_0 = arith.constant 0 : i32
    %c0_i32_1 = arith.constant 0 : i32
    return %c0_i32, %c0_i32_0 : i32, i32
  }
  func.func @transform_3(%arg0: i32) -> (i32, i32) {
    %c0_i32 = arith.constant 0 : i32
    %c0_i32_0 = arith.constant 0 : i32
    %c0_i32_1 = arith.constant 0 : i32
    return %c0_i32, %c0_i32_0 : i32, i32
  }
  func.func @transform_4(%arg0: i32) -> (i32, i32) {
    %c0_i32 = arith.constant 0 : i32
    %c0_i32_0 = arith.constant 0 : i32
    %c0_i32_1 = arith.constant 0 : i32
    return %c0_i32, %c0_i32_0 : i32, i32
  }
  func.func @transform_5(%arg0: i32) -> (i32, i32) {
    %c0_i32 = arith.constant 0 : i32
    %c0_i32_0 = arith.constant 0 : i32
    %c0_i32_1 = arith.constant 0 : i32
    return %c0_i32, %c0_i32_0 : i32, i32
  }
  func.func @transform_6(%arg0: i32) -> (i32, i32) {
    %c0_i32 = arith.constant 0 : i32
    %c0_i32_0 = arith.constant 0 : i32
    %c0_i32_1 = arith.constant 0 : i32
    return %c0_i32, %c0_i32_0 : i32, i32
  }
  func.func @transform_7(%arg0: i32) -> (i32, i32) {
    %c0_i32 = arith.constant 0 : i32
    %c0_i32_0 = arith.constant 0 : i32
    %c0_i32_1 = arith.constant 0 : i32
    return %c0_i32, %c0_i32_0 : i32, i32
  }
  func.func @transform_8(%arg0: i32) -> (i32, i32) {
    %c0_i32 = arith.constant 0 : i32
    %c0_i32_0 = arith.constant 0 : i32
    %c0_i32_1 = arith.constant 0 : i32
    return %c0_i32, %c0_i32_0 : i32, i32
  }
  func.func @transform_9(%arg0: i32) -> (i32, i32) {
    %c0_i32 = arith.constant 0 : i32
    %c0_i32_0 = arith.constant 0 : i32
    %c0_i32_1 = arith.constant 0 : i32
    return %c0_i32, %c0_i32_0 : i32, i32
  }
  func.func @transform_10(%arg0: i32) -> (i32, i32) {
    %c0_i32 = arith.constant 0 : i32
    %c0_i32_0 = arith.constant 0 : i32
    %c0_i32_1 = arith.constant 0 : i32
    return %c0_i32, %c0_i32_0 : i32, i32
  }
  func.func @transform_11(%arg0: i32) -> (i32, i32) {
    %c0_i32 = arith.constant 0 : i32
    %c0_i32_0 = arith.constant 0 : i32
    return %arg0, %c0_i32 : i32, i32
  }
  func.func @transform_12(%arg0: i32) -> (i32, i32) {
    %c0_i32 = arith.constant 0 : i32
    %c0_i32_0 = arith.constant 0 : i32
    return %arg0, %c0_i32 : i32, i32
  }
}

</mosaic_0001>

<bundles_post_ra>
// kernel: tpu_custom_call.1
= control target key start
LH: loop header
LB: loop body
LE: loop exit
PB: predicated region body
PF: predicated region fallthrough
CT: control target
= control target key end

     0   :  { %18 = vsyncpa [#allocation3], 0  ;;  %s5540_s0 = inlined_call_operand.hbm [shape: bf16[64,128], index: 0, kind: input, shape index: {}]   ;;  %s5541_s1 = inlined_call_operand.hbm [shape: bf16[96,128], index: 1, kind: input, shape index: {}]   ;;  %s5542_s2 = inlined_call_operand.hbm [shape: f32[64,64], index: 2, kind: input, shape index: {}]   ;;  %s5543_s3 = inlined_call_operand.hbm [shape: bf16[128,384], index: 3, kind: input, shape index: {}]   ;;  %s5544_s4 = inlined_call_operand.hbm [shape: bf16[128,128], index: 4, kind: input, shape index: {}]   ;;  %s5545_s5 = inlined_call_operand.hbm [shape: bf16[128,128], index: 5, kind: input, shape index: {}]   ;;  %s5546_s6 = inlined_call_operand.hbm [shape: bf16[128,256], index: 6, kind: input, shape index: {}]   ;;  %s5547_s7 = inlined_call_operand.hbm [shape: bf16[128,128], index: 7, kind: input, shape index: {}]   ;;  %s5548_s8 = inlined_call_operand.hbm [shape: bf16[128,512], index: 8, kind: input, shape index: {}]   ;;  %s5549_s9 = inlined_call_operand.hbm [shape: bf16[512,128], index: 9, kind: input, shape index: {}]   ;;  %s5550_s10 = inlined_call_operand.hbm [shape: bf16[384,128], index: 10, kind: input, shape index: {}]   ;;  %s5551_s11 = inlined_call_operand.hbm [shape: f32[64,128], index: 11, kind: output, shape index: {0}]   ;;  %s5552_s12 = inlined_call_operand.hbm [shape: f32[64,128], index: 12, kind: output, shape index: {1}]  }
   0x1   :  { %19 = vsyncpa [#allocation6], 0 }
   0x2   :  { %20 = vsyncpa [#allocation9], 0 }
   0x3   :  { %21 = vsyncpa [#allocation12], 0 }
   0x4   :  { %22 = vsyncpa [#allocation15], 0 }
   0x5   :  { %23 = vsyncpa [#allocation18], 0 }
   0x6   :  { %24 = vsyncpa [#allocation4], 0 }
   0x7   :  { %25 = vsyncpa [#allocation22], 0  ;;  %s4801_s21 = smov [#allocation5]   ;;  %s4802_s23 = smov [#allocation8]  }
   0x8   :  { %s43_s22 = sshll.u32 %s4801_s21, 4  ;;  %s67_s24 = sshll.u32 %s4802_s23, 4  ;;  %s44_s22 = int_to_ptr.vmem [resolvable:$true] %s43_s22  ;;  %s4888_s24 = int_to_ptr.vmem [resolvable:$true] %s67_s24 }
   0x9   :  { %s4499_s27 = scalar_lea.hbm %s5541_s1, 768 }
   0xa   :  { %p4500_p0 = scmp.ne.s32.totalorder %s5541_s1, %s4499_s27  ;;  %p4503_p1 = scmp.lt.u32.totalorder %s4499_s27, %s5541_s1 }
   0xc   :  { %p4505_p2 = pnand %p4503_p1, %p4500_p0 }
   0xe   :  { %4508 = shalt.err (!%p4505_p2)
}
   0xf   :  { %s4509_s14 = scalar_lea.vmem %s44_s22, 768  ;;  %p4514_p4 = scmp.lt.s32.totalorder %s44_s22, %s44_s22 }
  0x10   :  { %p4510_p3 = scmp.ne.s32.totalorder %s44_s22, %s4509_s14  ;;  %p4515_p5 = scmp.lt.s32.totalorder %s4509_s14, %s4509_s14 }
  0x12   :  { %p4516_p6 = por %p4515_p5, %p4514_p4 }
  0x14   :  { %p4517_p7 = pnand %p4516_p6, %p4510_p3 }
  0x16   :  { %4520 = shalt.err (!%p4517_p7)
}
  0x17   :  { %s4803_s15 = smov 64   ;;  %s4804_s16 = smov 4  }
  0x18   :  { %49 = dma.hbm_to_vmem [thread:$0]  %s5541_s1, 768, %s44_s22, [#allocation6], %s4803_s15, %s4803_s15, %s4804_s16  }
  0x19   :  { %s4521_s21 = scalar_lea.hbm %s5543_s3, 3072 }
  0x1a   :  { %p4522_p8 = scmp.ne.s32.totalorder %s5543_s3, %s4521_s21  ;;  %p4525_p9 = scmp.lt.u32.totalorder %s4521_s21, %s5543_s3 }
  0x1c   :  { %p4527_p10 = pnand %p4525_p9, %p4522_p8 }
  0x1e   :  { %4530 = shalt.err (!%p4527_p10)
}
  0x1f   :  { %s4531_s28 = scalar_lea.vmem %s4888_s24, 3072  ;;  %p4536_p12 = scmp.lt.s32.totalorder %s4888_s24, %s4888_s24 }
  0x20   :  { %p4532_p11 = scmp.ne.s32.totalorder %s4888_s24, %s4531_s28  ;;  %p4537_p13 = scmp.lt.s32.totalorder %s4531_s28, %s4531_s28 }
  0x22   :  { %p4538_p0 = por %p4537_p13, %p4536_p12 }
  0x24   :  { %p4539_p1 = pnand %p4538_p0, %p4532_p11 }
  0x26   :  { %4542 = shalt.err (!%p4539_p1)
}
  0x27   :  { %s4805_s1 = smov 192   ;;  %s4806_s22 = smov 12  }
  0x28   :  { %73 = dma.hbm_to_vmem [thread:$0]  %s5543_s3, 3072, %s4888_s24, [#allocation9], %s4805_s1, %s4805_s1, %s4806_s22  }
  0x29   :  { %s4807_s13 = smov [#allocation11]   ;;  %s4808_s17 = smov [#allocation14]  }
  0x2a   :  { %s91_s14 = sshll.u32 %s4807_s13, 4  ;;  %s115_s18 = sshll.u32 %s4808_s17, 4  ;;  %s92_s14 = int_to_ptr.vmem [resolvable:$true] %s91_s14  ;;  %s4922_s18 = int_to_ptr.vmem [resolvable:$true] %s115_s18 }
  0x2b   :  { %s4543_s21 = scalar_lea.hbm %s5545_s5, 1024 }
  0x2c   :  { %p4544_p2 = scmp.ne.s32.totalorder %s5545_s5, %s4543_s21  ;;  %p4547_p3 = scmp.lt.u32.totalorder %s4543_s21, %s5545_s5 }
  0x2e   :  { %p4549_p4 = pnand %p4547_p3, %p4544_p2 }
  0x30   :  { %4552 = shalt.err (!%p4549_p4)
}
  0x31   :  { %s4553_s3 = scalar_lea.vmem %s92_s14, 1024  ;;  %p4558_p6 = scmp.lt.s32.totalorder %s92_s14, %s92_s14 }
  0x32   :  { %p4554_p5 = scmp.ne.s32.totalorder %s92_s14, %s4553_s3  ;;  %p4559_p7 = scmp.lt.s32.totalorder %s4553_s3, %s4553_s3 }
  0x34   :  { %p4560_p8 = por %p4559_p7, %p4558_p6 }
  0x36   :  { %p4561_p9 = pnand %p4560_p8, %p4554_p5 }
  0x38   :  { %4564 = shalt.err (!%p4561_p9)
}
  0x39   :  { %97 = dma.hbm_to_vmem [thread:$0]  %s5545_s5, 1024, %s92_s14, [#allocation12], %s4803_s15, %s4803_s15, %s4804_s16  }
  0x3a   :  { %s4565_s29 = scalar_lea.hbm %s5547_s7, 1024 }
  0x3b   :  { %p4566_p10 = scmp.ne.s32.totalorder %s5547_s7, %s4565_s29  ;;  %p4569_p11 = scmp.lt.u32.totalorder %s4565_s29, %s5547_s7 }
  0x3d   :  { %p4571_p12 = pnand %p4569_p11, %p4566_p10 }
  0x3f   :  { %4574 = shalt.err (!%p4571_p12)
}
  0x40   :  { %s4575_s20 = scalar_lea.vmem %s4922_s18, 1024  ;;  %p4580_p0 = scmp.lt.s32.totalorder %s4922_s18, %s4922_s18 }
  0x41   :  { %p4576_p13 = scmp.ne.s32.totalorder %s4922_s18, %s4575_s20  ;;  %p4581_p1 = scmp.lt.s32.totalorder %s4575_s20, %s4575_s20 }
  0x43   :  { %p4582_p2 = por %p4581_p1, %p4580_p0 }
  0x45   :  { %p4583_p3 = pnand %p4582_p2, %p4576_p13 }
  0x47   :  { %4586 = shalt.err (!%p4583_p3)
}
  0x48   :  { %121 = dma.hbm_to_vmem [thread:$0]  %s5547_s7, 1024, %s4922_s18, [#allocation15], %s4803_s15, %s4803_s15, %s4804_s16  }
  0x49   :  { %s4809_s21 = smov [#allocation17]   ;;  %s4810_s25 = smov [#allocation2]  }
  0x4a   :  { %s139_s23 = sshll.u32 %s4809_s21, 4  ;;  %s31_s26 = sshll.u32 %s4810_s25, 4  ;;  %s140_s23 = int_to_ptr.vmem [resolvable:$true] %s139_s23  ;;  %s4959_s26 = int_to_ptr.vmem [resolvable:$true] %s31_s26 }
  0x4b   :  { %s4587_s24 = scalar_lea.hbm %s5549_s9, 4096 }
  0x4c   :  { %p4588_p4 = scmp.ne.s32.totalorder %s5549_s9, %s4587_s24  ;;  %p4591_p5 = scmp.lt.u32.totalorder %s4587_s24, %s5549_s9 }
  0x4e   :  { %p4593_p6 = pnand %p4591_p5, %p4588_p4 }
  0x50   :  { %4596 = shalt.err (!%p4593_p6)
}
  0x51   :  { %s4597_s7 = scalar_lea.vmem %s140_s23, 4096  ;;  %p4602_p8 = scmp.lt.s32.totalorder %s140_s23, %s140_s23 }
  0x52   :  { %p4598_p7 = scmp.ne.s32.totalorder %s140_s23, %s4597_s7  ;;  %p4603_p9 = scmp.lt.s32.totalorder %s4597_s7, %s4597_s7 }
  0x54   :  { %p4604_p10 = por %p4603_p9, %p4602_p8 }
  0x56   :  { %p4605_p11 = pnand %p4604_p10, %p4598_p7 }
  0x58   :  { %4608 = shalt.err (!%p4605_p11)
}
  0x59   :  { %145 = dma.hbm_to_vmem [thread:$0]  %s5549_s9, 4096, %s140_s23, [#allocation18], %s4803_s15, %s4803_s15, %s4804_s16  }
  0x5a   :  { %s4609_s19 = scalar_lea.hbm %s5540_s0, 512 }
  0x5b   :  { %p4610_p12 = scmp.ne.s32.totalorder %s5540_s0, %s4609_s19  ;;  %p4613_p13 = scmp.lt.u32.totalorder %s4609_s19, %s5540_s0 }
  0x5d   :  { %p4615_p0 = pnand %p4613_p13, %p4610_p12 }
  0x5f   :  { %4618 = shalt.err (!%p4615_p0)
}
  0x60   :  { %s4619_s25 = scalar_lea.vmem %s4959_s26, 512  ;;  %p4624_p2 = scmp.lt.s32.totalorder %s4959_s26, %s4959_s26 }
  0x61   :  { %p4620_p1 = scmp.ne.s32.totalorder %s4959_s26, %s4619_s25  ;;  %p4625_p3 = scmp.lt.s32.totalorder %s4619_s25, %s4619_s25 }
  0x63   :  { %p4626_p4 = por %p4625_p3, %p4624_p2 }
  0x65   :  { %p4627_p5 = pnand %p4626_p4, %p4620_p1 }
  0x67   :  { %4630 = shalt.err (!%p4627_p5)
}
  0x68   :  { %37 = dma.hbm_to_vmem [thread:$0]  %s5540_s0, 512, %s4959_s26, [#allocation3], %s4803_s15, %s4803_s15, %s4804_s16  }
  0x69   :  { %s4811_s27 = smov [#allocation7]   ;;  %s4631_s1 = scalar_lea.hbm %s5542_s2, 1024 }
  0x6a   :  { %s55_s3 = sshll.u32 %s4811_s27, 4  ;;  %p4632_p6 = scmp.ne.s32.totalorder %s5542_s2, %s4631_s1  ;;  %s56_s3 = int_to_ptr.vmem [resolvable:$true] %s55_s3 }
  0x6b   :  { %p4635_p7 = scmp.lt.u32.totalorder %s4631_s1, %s5542_s2 }
  0x6d   :  { %p4637_p8 = pnand %p4635_p7, %p4632_p6 }
  0x6f   :  { %4640 = shalt.err (!%p4637_p8)
}
  0x70   :  { %s4641_s30 = scalar_lea.vmem %s56_s3, 1024  ;;  %p4646_p10 = scmp.lt.s32.totalorder %s56_s3, %s56_s3 }
  0x71   :  { %p4642_p9 = scmp.ne.s32.totalorder %s56_s3, %s4641_s30  ;;  %p4647_p11 = scmp.lt.s32.totalorder %s4641_s30, %s4641_s30 }
  0x73   :  { %p4648_p12 = por %p4647_p11, %p4646_p10 }
  0x75   :  { %p4649_p13 = pnand %p4648_p12, %p4642_p9 }
  0x77   :  { %4652 = shalt.err (!%p4649_p13)
}
  0x78   :  { %s4812_s0 = smov 128   ;;  %s4813_s26 = smov 8  }
  0x79   :  { %61 = dma.hbm_to_vmem [thread:$0]  %s5542_s2, 1024, %s56_s3, [#allocation6], %s4812_s0, %s4812_s0, %s4813_s26  }
  0x7a   :  { %s4814_s19 = smov [#allocation10]   ;;  %s4815_s5 = smov [#allocation13]  }
  0x7b   :  { %s79_s20 = sshll.u32 %s4814_s19, 4  ;;  %s103_s14 = sshll.u32 %s4815_s5, 4  ;;  %s80_s20 = int_to_ptr.vmem [resolvable:$true] %s79_s20  ;;  %s104_s14 = int_to_ptr.vmem [resolvable:$true] %s103_s14 }
  0x7c   :  { %s4653_s9 = scalar_lea.hbm %s5544_s4, 1024 }
  0x7d   :  { %p4654_p0 = scmp.ne.s32.totalorder %s5544_s4, %s4653_s9  ;;  %p4657_p1 = scmp.lt.u32.totalorder %s4653_s9, %s5544_s4 }
  0x7f   :  { %p4659_p2 = pnand %p4657_p1, %p4654_p0 }
  0x81   :  { %4662 = shalt.err (!%p4659_p2)
}
  0x82   :  { %s4663_s2 = scalar_lea.vmem %s80_s20, 1024  ;;  %p4668_p4 = scmp.lt.s32.totalorder %s80_s20, %s80_s20 }
  0x83   :  { %p4664_p3 = scmp.ne.s32.totalorder %s80_s20, %s4663_s2  ;;  %p4669_p5 = scmp.lt.s32.totalorder %s4663_s2, %s4663_s2 }
  0x85   :  { %p4670_p6 = por %p4669_p5, %p4668_p4 }
  0x87   :  { %p4671_p7 = pnand %p4670_p6, %p4664_p3 }
  0x89   :  { %4674 = shalt.err (!%p4671_p7)
}
  0x8a   :  { %85 = dma.hbm_to_vmem [thread:$0]  %s5544_s4, 1024, %s80_s20, [#allocation9], %s4803_s15, %s4803_s15, %s4804_s16  }
  0x8b   :  { %s4675_s7 = scalar_lea.hbm %s5546_s6, 2048 }
  0x8c   :  { %p4676_p8 = scmp.ne.s32.totalorder %s5546_s6, %s4675_s7  ;;  %p4679_p9 = scmp.lt.u32.totalorder %s4675_s7, %s5546_s6 }
  0x8e   :  { %p4681_p10 = pnand %p4679_p9, %p4676_p8 }
  0x90   :  { %4684 = shalt.err (!%p4681_p10)
}
  0x91   :  { %s4685_s19 = scalar_lea.vmem %s104_s14, 2048  ;;  %p4690_p12 = scmp.lt.s32.totalorder %s104_s14, %s104_s14 }
  0x92   :  { %p4686_p11 = scmp.ne.s32.totalorder %s104_s14, %s4685_s19  ;;  %p4691_p13 = scmp.lt.s32.totalorder %s4685_s19, %s4685_s19 }
  0x94   :  { %p4692_p0 = por %p4691_p13, %p4690_p12 }
  0x96   :  { %p4693_p1 = pnand %p4692_p0, %p4686_p11 }
  0x98   :  { %4696 = shalt.err (!%p4693_p1)
}
  0x99   :  { %109 = dma.hbm_to_vmem [thread:$0]  %s5546_s6, 2048, %s104_s14, [#allocation12], %s4812_s0, %s4812_s0, %s4813_s26  }
  0x9a   :  { %s4816_s5 = smov [#allocation16]   ;;  %s4697_s23 = scalar_lea.hbm %s5548_s8, 4096 }
  0x9b   :  { %s127_s21 = sshll.u32 %s4816_s5, 4  ;;  %p4698_p2 = scmp.ne.s32.totalorder %s5548_s8, %s4697_s23  ;;  %s128_s21 = int_to_ptr.vmem [resolvable:$true] %s127_s21 }
  0x9c   :  { %p4701_p3 = scmp.lt.u32.totalorder %s4697_s23, %s5548_s8 }
  0x9e   :  { %p4703_p4 = pnand %p4701_p3, %p4698_p2 }
  0xa0   :  { %4706 = shalt.err (!%p4703_p4)
}
  0xa1   :  { %s4707_s3 = scalar_lea.vmem %s128_s21, 4096  ;;  %p4712_p6 = scmp.lt.s32.totalorder %s128_s21, %s128_s21 }
  0xa2   :  { %p4708_p5 = scmp.ne.s32.totalorder %s128_s21, %s4707_s3  ;;  %p4713_p7 = scmp.lt.s32.totalorder %s4707_s3, %s4707_s3 }
  0xa4   :  { %p4714_p8 = por %p4713_p7, %p4712_p6 }
  0xa6   :  { %p4715_p9 = pnand %p4714_p8, %p4708_p5 }
  0xa8   :  { %4718 = shalt.err (!%p4715_p9)
}
  0xa9   :  { %s4817_s6 = smov 256   ;;  %s4818_s14 = smov 16  }
  0xaa   :  { %133 = dma.hbm_to_vmem [thread:$0]  %s5548_s8, 4096, %s128_s21, [#allocation15], %s4817_s6, %s4817_s6, %s4818_s14  }
  0xab   :  { %s4819_s29 = smov [#allocation19]   ;;  %s4719_s13 = scalar_lea.hbm %s5550_s10, 3072 }
  0xac   :  { %s151_s7 = sshll.u32 %s4819_s29, 4  ;;  %p4720_p10 = scmp.ne.s32.totalorder %s5550_s10, %s4719_s13  ;;  %s152_s7 = int_to_ptr.vmem [resolvable:$true] %s151_s7 }
  0xad   :  { %p4723_p11 = scmp.lt.u32.totalorder %s4719_s13, %s5550_s10 }
  0xaf   :  { %p4725_p12 = pnand %p4723_p11, %p4720_p10 }
  0xb1   :  { %4728 = shalt.err (!%p4725_p12)
}
  0xb2   :  { %s4729_s5 = scalar_lea.vmem %s152_s7, 3072  ;;  %p4734_p0 = scmp.lt.s32.totalorder %s152_s7, %s152_s7 }
  0xb3   :  { %p4730_p13 = scmp.ne.s32.totalorder %s152_s7, %s4729_s5  ;;  %p4735_p1 = scmp.lt.s32.totalorder %s4729_s5, %s4729_s5 }
  0xb5   :  { %p4736_p2 = por %p4735_p1, %p4734_p0 }
  0xb7   :  { %p4737_p3 = pnand %p4736_p2, %p4730_p13 }
  0xb9   :  { %4740 = shalt.err (!%p4737_p3)
}
  0xba   :  { %157 = dma.hbm_to_vmem [thread:$0]  %s5550_s10, 3072, %s152_s7, [#allocation18], %s4803_s15, %s4803_s15, %s4804_s16  }
  0xbb   :  { %4785 = dma.done.wait [#allocation3], 512  }
  0xbc   :  { %4786 = vsyncadd [#allocation3], 4294966784 }
  0xbd   :  { %4787 = dma.done.wait [#allocation6], 1792  }
  0xbe   :  { %4788 = vsyncadd [#allocation6], 4294965504 }
  0xbf   :  { %4789 = dma.done.wait [#allocation9], 4096  }
  0xc0   :  { %4790 = vsyncadd [#allocation9], 4294963200 }
  0xc1   :  { %4791 = dma.done.wait [#allocation12], 3072  }
  0xc2   :  { %4792 = vsyncadd [#allocation12], 4294964224 }
  0xc3   :  { %4793 = dma.done.wait [#allocation15], 5120  }
  0xc4   :  { %4794 = vsyncadd [#allocation15], 4294962176 }
  0xc5   :  { %4795 = dma.done.wait [#allocation18], 7168  }
  0xc6   :  { %4796 = vsyncadd [#allocation18], 4294960128  ;;  %v4820_v0 = vmov 0   ;;  %v4228_v1 = vld [vmem:[#allocation8 + $0x4] ss:$12 sps:$4 sm:$0xff]   ;;  %v5069_v25 = vld [vmem:[#allocation2 + $0x8] sm:$0xff]  }
  0xc7   :  { %436 = vmatprep.mubr.bf16.mxu0 %v4820_v0  ;;  %v4230_v2 = vld [vmem:[#allocation8] ss:$12 sps:$4 sm:$0xff]   ;;  %404 = vmatprep.subr.bf16.mxu0 %v4228_v1  ;;  %v4231_v3 = vld [vmem:[#allocation8 + $0x1c] ss:$12 sps:$4 sm:$0xff]   ;;  %v4233_v4 = vld [vmem:[#allocation8 + $0x18] ss:$12 sps:$4 sm:$0xff]  }
  0xc8   :  { %405 = vmatpush1.bf16.msra.mxu0 %v4230_v2  ;;  %v4234_v5 = vld [vmem:[#allocation8 + $0x34] ss:$12 sps:$4 sm:$0xff]   ;;  %v4236_v6 = vld [vmem:[#allocation8 + $0x30] ss:$12 sps:$4 sm:$0xff]   ;;  %v4237_v7 = vld [vmem:[#allocation8 + $0x4c] ss:$12 sps:$4 sm:$0xff]  }
  0xc9   :  { %406 = vmatprep.subr.bf16.mxu0 %v4231_v3  ;;  %v192_v8 = vld [vmem:[#allocation2] sm:$0xff]   ;;  %v4257_v12 = vld [vmem:[#allocation8 + $0x20] ss:$12 sps:$4 sm:$0xff]   ;;  %v4243_v14 = vld [vmem:[#allocation8 + $0x7c] ss:$12 sps:$4 sm:$0xff]   ;;  %vm607_vm0 = vcmask 261120  }
  0xca   :  { %v4239_v9 = vld [vmem:[#allocation8 + $0x48] ss:$12 sps:$4 sm:$0xff]   ;;  %v4240_v10 = vld [vmem:[#allocation8 + $0x64] ss:$12 sps:$4 sm:$0xff]   ;;  %3898 = vmatprep.mubr.bf16.mxu1 %v192_v8  ;;  %v4242_v13 = vld [vmem:[#allocation8 + $0x60] ss:$12 sps:$4 sm:$0xff]  }
  0xcb   :  { %v4256_v11 = vld [vmem:[#allocation8 + $0x8] ss:$12 sps:$4 sm:$0xff]   ;;  %v4258_v15 = vld [vmem:[#allocation8 + $0x38] ss:$12 sps:$4 sm:$0xff]   ;;  %v4259_v18 = vld [vmem:[#allocation8 + $0x50] ss:$12 sps:$4 sm:$0xff]  }
  0xcc   :  { %407 = vmatpush1.bf16.msra.mxu0 %v4233_v4  ;;  %3882 = vmatprep.subr.bf16.mxu1 %v4256_v11  ;;  %v4245_v16 = vld [vmem:[#allocation8 + $0x78] ss:$12 sps:$4 sm:$0xff]   ;;  %v4246_v17 = vld [vmem:[#allocation8 + $0x94] ss:$12 sps:$4 sm:$0xff]   ;;  %v4248_v19 = vld [vmem:[#allocation8 + $0x90] ss:$12 sps:$4 sm:$0xff]  }
  0xcd   :  { %408 = vmatprep.subr.bf16.mxu0 %v4234_v5  ;;  %3883 = vmatpush3.bf16.msra.mxu1 %v4256_v11  ;;  %v4249_v20 = vld [vmem:[#allocation8 + $0xac] ss:$12 sps:$4 sm:$0xff]   ;;  %v4260_v21 = vld [vmem:[#allocation8 + $0x68] ss:$12 sps:$4 sm:$0xff]   ;;  %v4263_v26 = vld [vmem:[#allocation8 + $0xb0] ss:$12 sps:$4 sm:$0xff]  }
  0xce   :  { %3884 = vmatprep.subr.bf16.mxu1 %v4257_v12  ;;  %v4251_v22 = vld [vmem:[#allocation8 + $0xa8] ss:$12 sps:$4 sm:$0xff]   ;;  %v4261_v23 = vld [vmem:[#allocation8 + $0x80] ss:$12 sps:$4 sm:$0xff]   ;;  %v4262_v24 = vld [vmem:[#allocation8 + $0x98] ss:$12 sps:$4 sm:$0xff]  }
  0xcf   :  { %v5072_v27 = vld [vmem:[#allocation2 + $0x10] sm:$0xff]   ;;  %v5077_v28 = vld [vmem:[#allocation2 + $0x18] sm:$0xff]   ;;  %vm1012_vm1 = vcmask 523264   ;;  %vm1577_vm2 = vcmask 392192   ;;  %s4821_s10 = smov [#allocation20]  }
  0xd0   :  { %409 = vmatpush1.bf16.msra.mxu0 %v4236_v6  ;;  %s3391_s15 = sshll.u32 %s4821_s10, 4  ;;  %s3392_s15 = int_to_ptr.vmem [resolvable:$true] %s3391_s15 }
  0xd1   :  { %410 = vmatprep.subr.bf16.mxu0 %v4237_v7  ;;  %3885 = vmatpush3.bf16.msra.mxu1 %v4257_v12  ;;  %s4741_s16 = scalar_lea.vmem %s3392_s15, 1024  ;;  %p4746_p5 = scmp.lt.s32.totalorder %s3392_s15, %s3392_s15 }
  0xd2   :  { %3886 = vmatprep.subr.bf16.mxu1 %v4258_v15  ;;  %p4742_p4 = scmp.ne.s32.totalorder %s3392_s15, %s4741_s16  ;;  %p4747_p6 = scmp.lt.s32.totalorder %s4741_s16, %s4741_s16 }
  0xd4   :  { %411 = vmatpush1.bf16.msra.mxu0 %v4239_v9  ;;  %p4748_p7 = por %p4747_p6, %p4746_p5 }
  0xd5   :  { %412 = vmatprep.subr.bf16.mxu0 %v4240_v10  ;;  %3887 = vmatpush3.bf16.msra.mxu1 %v4258_v15 }
  0xd6   :  { %3888 = vmatprep.subr.bf16.mxu1 %v4259_v18  ;;  %p4749_p8 = pnand %p4748_p7, %p4742_p4 }
  0xd8   :  { %413 = vmatpush1.bf16.msra.mxu0 %v4242_v13 }
  0xd9   :  { %414 = vmatprep.subr.bf16.mxu0 %v4243_v14  ;;  %3889 = vmatpush3.bf16.msra.mxu1 %v4259_v18 }
  0xda   :  { %3890 = vmatprep.subr.bf16.mxu1 %v4260_v21 }
  0xdc   :  { %415 = vmatpush1.bf16.msra.mxu0 %v4245_v16 }
  0xdd   :  { %416 = vmatprep.subr.bf16.mxu0 %v4246_v17  ;;  %3891 = vmatpush3.bf16.msra.mxu1 %v4260_v21 }
  0xde   :  { %3892 = vmatprep.subr.bf16.mxu1 %v4261_v23 }
  0xe0   :  { %417 = vmatpush1.bf16.msra.mxu0 %v4248_v19 }
  0xe1   :  { %418 = vmatprep.subr.bf16.mxu0 %v4249_v20  ;;  %3893 = vmatpush3.bf16.msra.mxu1 %v4261_v23 }
  0xe2   :  { %3894 = vmatprep.subr.bf16.mxu1 %v4262_v24 }
  0xe4   :  { %419 = vmatpush1.bf16.msra.mxu0 %v4251_v22 }
  0xe5   :  { %3895 = vmatpush3.bf16.msra.mxu1 %v4262_v24 }
  0xe6   :  { %3896 = vmatprep.subr.bf16.mxu1 %v4263_v26 }
  0xe7   :  { %437 = vmatmul.mubr.bf16.vlgmr.msra.gmra.mrb[0].mxu0 %v192_v8 }
  0xe8   :  { %446 = vmatprep.mubr.bf16.mxu0 %v4820_v0 }
  0xe9   :  { %3897 = vmatpush3.bf16.msra.mxu1 %v4263_v26 }
  0xec   :  { %3899 = vmatmul.mubr.bf16.vlgmr.msra.gmra.mrb[0].mxu1 %v5069_v25 }
  0xed   :  { %3902 = vmatprep.mubr.bf16.mxu1 %v5072_v27 }
  0xef   :  { %447 = vmatmul.mubr.bf16.gmra.mrb[4].mxu0 %v5069_v25 }
  0xf0   :  { %456 = vmatprep.mubr.bf16.mxu0 %v4820_v0 }
  0xf4   :  { %3903 = vmatmul.mubr.bf16.gmra.mrb[4].mxu1 %v5077_v28 }
  0xf7   :  { %457 = vmatmul.mubr.bf16.gmra.mrb[8].mxu0 %v5072_v27 }
  0xf8   :  { %466 = vmatprep.mubr.bf16.mxu0 %v4820_v0 }
  0xff   :  { %467 = vmatmul.mubr.bf16.gmra.mrb[12].mxu0 %v5077_v28 }
 0x1ba   :  { %v438_v29 = vpop.f32.mrb[0].mxu0 }
 0x1bb   :  { %v440_v30 = vpop.f32.mrb[1].mxu0 }
 0x1bc   :  { %v442_v31 = vpop.f32.mrb[2].mxu0 }
 0x1bd   :  { %v542_v32 = vpack.c.bf16 %v442_v31, %v438_v29  ;;  %v444_v33 = vpop.f32.mrb[3].mxu0 }
 0x1be   :  { %v543_v34 = vpack.c.bf16 %v444_v33, %v440_v30 }
 0x1bf   :  { %3910 = vmatprep.mubr.bf16.mxu1 %v542_v32  ;;  %v3900_v41 = vpop.f32.mrb[0].mxu1 }
 0x1c0   :  { %3906 = vmatprep.subr.bf16.mxu1 %v543_v34  ;;  %v511_v42 = vpop.f32.mrb[1].mxu1 }
 0x1c1   :  { %3907 = vmatpush3.bf16.xpose.msra.mxu1 %v543_v34  ;;  %v3901_v43 = vpop.f32.mrb[2].mxu1 }
 0x1c2   :  { %v448_v35 = vpop.f32.mrb[4].mxu0  ;;  %v547_v44 = vpack.c.bf16 %v3901_v43, %v3900_v41  ;;  %v514_v45 = vpop.f32.mrb[3].mxu1 }
 0x1c3   :  { %v450_v36 = vpop.f32.mrb[5].mxu0  ;;  %v544_v47 = vpack.c.bf16 %v514_v45, %v511_v42 }
 0x1c4   :  { %v452_v37 = vpop.f32.mrb[6].mxu0 }
 0x1c5   :  { %v545_v38 = vpack.c.bf16 %v452_v37, %v448_v35  ;;  %v454_v39 = vpop.f32.mrb[7].mxu0 }
 0x1c6   :  { %v546_v40 = vpack.c.bf16 %v454_v39, %v450_v36 }
 0x1c7   :  { %v3904_v53 = vpop.f32.mrb[4].mxu1 }
 0x1c8   :  { %3908 = vmatprep.subr.bf16.mxu1 %v546_v40  ;;  %v527_v54 = vpop.f32.mrb[5].mxu1 }
 0x1c9   :  { %3909 = vmatpush3.bf16.xpose.msra.mxu1 %v546_v40  ;;  %v3905_v55 = vpop.f32.mrb[6].mxu1 }
 0x1ca   :  { %v458_v46 = vpop.f32.mrb[8].mxu0  ;;  %3914 = vmatprep.subr.bf16.mxu1 %v544_v47  ;;  %v5084_v56 = vpack.c.bf16 %v3905_v55, %v3904_v53  ;;  %v530_v57 = vpop.f32.mrb[7].mxu1 }
 0x1cb   :  { %v460_v48 = vpop.f32.mrb[9].mxu0  ;;  %v5086_v59 = vpack.c.bf16 %v530_v57, %v527_v54 }
 0x1cc   :  { %v462_v49 = vpop.f32.mrb[10].mxu0 }
 0x1cd   :  { %v548_v50 = vpack.c.bf16 %v462_v49, %v458_v46  ;;  %v464_v51 = vpop.f32.mrb[11].mxu0 }
 0x1ce   :  { %v549_v52 = vpack.c.bf16 %v464_v51, %v460_v48 }
 0x1cf   :  { %3926 = vmatprep.mubr.bf16.mxu0 %v548_v50 }
 0x1d0   :  { %3911 = vmatmul.mubr.bf16.vlgmr.msra.gmra.mrb[8].mxu1 %v545_v38  ;;  %3922 = vmatprep.subr.bf16.mxu0 %v549_v52 }
 0x1d1   :  { %3923 = vmatpush3.bf16.xpose.msra.mxu0 %v549_v52  ;;  %3915 = vmatpush3.bf16.msra.mxu1 %v544_v47 }
 0x1d2   :  { %v468_v58 = vpop.f32.mrb[12].mxu0  ;;  %3916 = vmatprep.subr.bf16.mxu1 %v547_v44 }
 0x1d3   :  { %v470_v60 = vpop.f32.mrb[13].mxu0 }
 0x1d4   :  { %v472_v61 = vpop.f32.mrb[14].mxu0 }
 0x1d5   :  { %v551_v62 = vpack.c.bf16 %v472_v61, %v468_v58  ;;  %v474_v63 = vpop.f32.mrb[15].mxu0  ;;  %3917 = vmatpush3.bf16.msra.mxu1 %v547_v44 }
 0x1d6   :  { %v552_v1 = vpack.c.bf16 %v474_v63, %v470_v60  ;;  %3930 = vmatprep.subr.bf16.mxu1 %v5086_v59 }
 0x1d8   :  { %3924 = vmatprep.subr.bf16.mxu0 %v552_v1 }
 0x1d9   :  { %3925 = vmatpush3.bf16.xpose.msra.mxu0 %v552_v1 }
 0x1e0   :  { %3927 = vmatmul.mubr.bf16.vlgmr.msra.gmra.mrb[16].mxu0 %v551_v62 }
 0x2a3   :  { %v3912_v2 = vpop.f32.mrb[8].mxu1 }
 0x2a4   :  { %v605_v3 = vmul.f32 0.088388346, %v3912_v2  ;;  %v588_v4 = vpop.f32.mrb[9].mxu1 }
 0x2a5   :  { %v603_v5 = vmul.f32 0.088388346, %v588_v4  ;;  %v3913_v6 = vpop.f32.mrb[10].mxu1 }
 0x2a6   :  { %v606_v7 = vmul.f32 0.088388346, %v3913_v6  ;;  %v591_v8 = vpop.f32.mrb[11].mxu1  ;;  %v614_v9 = vsel %vm607_vm0, %v605_v3, -inf }
 0x2a7   :  { %v604_v10 = vmul.f32 0.088388346, %v591_v8  ;;  %615 = vmax.xlane.f32.xlu1 %v614_v9  ;;  %v608_v11 = vsel %vm607_vm0, %v603_v5, -inf  ;;  %v4264_v8 = vld [vmem:[#allocation10] sm:$0xff]   ;;  %v4265_v9 = vld [vmem:[#allocation10 + $0x8] sm:$0xff]  }
 0x2a8   :  { %609 = vmax.xlane.f32.xlu0 %v608_v11  ;;  %v617_v12 = vsel %vm607_vm0, %v606_v7, -inf  ;;  %3938 = vmatprep.subr.bf16.mxu0 %v4264_v8  ;;  %v4267_v11 = vld [vmem:[#allocation10 + $0x18] sm:$0xff]  }
 0x2a9   :  { %v611_v13 = vsel %vm607_vm0, %v604_v10, -inf  ;;  %3939 = vmatpush3.bf16.msra.mxu0 %v4264_v8  ;;  %v4287_v8 = vld [vmem:[#allocation13 + $0x50] ss:$8 sps:$4 sm:$0xff]  }
 0x2aa   :  { %3940 = vmatprep.subr.bf16.mxu0 %v4265_v9 }
 0x2ab   :  { %618 = vmax.xlane.f32.xlu1 %v617_v12  ;;  %v4268_v12 = vld [vmem:[#allocation10 + $0x20] sm:$0xff]  }
 0x2ac   :  { %612 = vmax.xlane.f32.xlu0 %v611_v13  ;;  %v4269_v13 = vld [vmem:[#allocation10 + $0x28] sm:$0xff]  }
 0x2ad   :  { %3941 = vmatpush3.bf16.msra.mxu0 %v4265_v9  ;;  %v4292_v9 = vld [vmem:[#allocation13 + $0x64] ss:$8 sps:$4 sm:$0xff]  }
 0x2b3   :  { %v3928_v14 = vpop.f32.mrb[16].mxu0 }
 0x2b4   :  { %v743_v15 = vpop.f32.mrb[17].mxu0  ;;  %v760_v19 = vmul.f32 0.088388346, %v3928_v14  ;;  %v4270_v14 = vld [vmem:[#allocation10 + $0x30] sm:$0xff]  }
 0x2b5   :  { %v758_v16 = vmul.f32 0.088388346, %v743_v15  ;;  %v3929_v17 = vpop.f32.mrb[18].mxu0 }
 0x2b6   :  { %v746_v18 = vpop.f32.mrb[19].mxu0  ;;  %v761_v22 = vmul.f32 0.088388346, %v3929_v17  ;;  %v768_v24 = vsel %vm607_vm0, %v760_v19, -inf }
 0x2b7   :  { %v759_v20 = vmul.f32 0.088388346, %v746_v18  ;;  %v762_v21 = vsel %vm607_vm0, %v758_v16, -inf }
 0x2b8   :  { %763 = vmax.xlane.f32.xlu0 %v762_v21  ;;  %v771_v26 = vsel %vm607_vm0, %v761_v22, -inf }
 0x2b9   :  { %v765_v23 = vsel %vm607_vm0, %v759_v20, -inf }
 0x2ba   :  { %766 = vmax.xlane.f32.xlu1 %v765_v23 }
 0x2bc   :  { %769 = vmax.xlane.f32.xlu0 %v768_v24 }
 0x2be   :  { %772 = vmax.xlane.f32.xlu1 %v771_v26 }
 0x334   :  { %v616_v29 = vpop.xlane.xlu1 %615 }
 0x335   :  { %v622_v30 = vsub.f32 %v605_v3, %v616_v29  ;;  %v610_v31 = vpop.xlane.xlu0 %609 }
 0x336   :  { %v620_v32 = vsub.f32 %v603_v5, %v610_v31 }
 0x337   :  { %v628_v33 = vmul.f32 1.442695, %v622_v30 }
 0x338   :  { %v624_v34 = vmul.f32 1.442695, %v620_v32  ;;  %v619_v35 = vpop.xlane.xlu1 %618 }
 0x339   :  { %v623_v36 = vsub.f32 %v606_v7, %v619_v35  ;;  %v613_v37 = vpop.xlane.xlu0 %612 }
 0x33a   :  { %4426 = vpow2.f32 %v624_v34  ;;  %v621_v38 = vsub.f32 %v604_v10, %v613_v37  ;;  %v4266_v10 = vld [vmem:[#allocation10 + $0x10] sm:$0xff]  }
 0x33b   :  { %4428 = vpow2.f32 %v628_v33  ;;  %v630_v39 = vmul.f32 1.442695, %v623_v36  ;;  %3942 = vmatprep.subr.bf16.mxu0 %v4266_v10 }
 0x33c   :  { %v626_v40 = vmul.f32 1.442695, %v621_v38  ;;  %3943 = vmatpush3.bf16.msra.mxu0 %v4266_v10  ;;  %v4290_v10 = vld [vmem:[#allocation13 + $0x60] ss:$8 sps:$4 sm:$0xff]  }
 0x33d   :  { %3944 = vmatprep.subr.bf16.mxu0 %v4267_v11 }
 0x33e   :  { %4430 = vpow2.f32 %v626_v40 }
 0x33f   :  { %4432 = vpow2.f32 %v630_v39 }
 0x340   :  { %3945 = vmatpush3.bf16.msra.mxu0 %v4267_v11  ;;  %v4295_v11 = vld [vmem:[#allocation13 + $0x74] ss:$8 sps:$4 sm:$0xff]  }
 0x341   :  { %3946 = vmatprep.subr.bf16.mxu0 %v4268_v12 }
 0x344   :  { %v5097_v41 = vpop.eup %4426  ;;  %3947 = vmatpush3.bf16.msra.mxu0 %v4268_v12  ;;  %v4293_v12 = vld [vmem:[#allocation13 + $0x70] ss:$8 sps:$4 sm:$0xff]  }
 0x345   :  { %v764_v42 = vpop.xlane.xlu0 %763  ;;  %v632_v43 = vsel %vm607_vm0, %v5097_v41, 0.0  ;;  %v5101_v44 = vpop.eup %4428  ;;  %3948 = vmatprep.subr.bf16.mxu0 %v4269_v13 }
 0x346   :  { %v774_v45 = vsub.f32 %v758_v16, %v764_v42  ;;  %633 = vadd.xlane.f32.xlu0 %v632_v43  ;;  %v638_v51 = vsel %vm607_vm0, %v5101_v44, 0.0 }
 0x347   :  { %v767_v46 = vpop.xlane.xlu1 %766 }
 0x348   :  { %v5103_v47 = vpop.eup %4430  ;;  %v778_v48 = vmul.f32 1.442695, %v774_v45  ;;  %v775_v49 = vsub.f32 %v759_v20, %v767_v46  ;;  %3949 = vmatpush3.bf16.msra.mxu0 %v4269_v13  ;;  %v4271_v45 = vld [vmem:[#allocation10 + $0x38] sm:$0xff]   ;;  %v4297_v13 = vld [vmem:[#allocation5] sm:$0xff]  }
 0x349   :  { %v770_v50 = vpop.xlane.xlu0 %769  ;;  %v635_v52 = vsel %vm607_vm0, %v5103_v47, 0.0  ;;  %v5109_v53 = vpop.eup %4432  ;;  %3950 = vmatprep.subr.bf16.mxu0 %v4270_v14 }
 0x34a   :  { %4434 = vpow2.f32 %v778_v48  ;;  %v780_v54 = vmul.f32 1.442695, %v775_v49  ;;  %v776_v55 = vsub.f32 %v760_v19, %v770_v50  ;;  %639 = vadd.xlane.f32.xlu0 %v638_v51  ;;  %636 = vadd.xlane.f32.xlu1 %v635_v52  ;;  %v641_v61 = vsel %vm607_vm0, %v5109_v53, 0.0 }
 0x34b   :  { %v773_v57 = vpop.xlane.xlu1 %772 }
 0x34c   :  { %4436 = vpow2.f32 %v780_v54  ;;  %v782_v58 = vmul.f32 1.442695, %v776_v55  ;;  %v777_v60 = vsub.f32 %v761_v22, %v773_v57  ;;  %3951 = vmatpush3.bf16.msra.mxu0 %v4270_v14  ;;  %v4300_v14 = vld [vmem:[#allocation5 + $0x8] sm:$0xff]  }
 0x34d   :  { %3952 = vmatprep.subr.bf16.mxu0 %v4271_v45 }
 0x34e   :  { %4438 = vpow2.f32 %v782_v58  ;;  %v784_v62 = vmul.f32 1.442695, %v777_v60  ;;  %642 = vadd.xlane.f32.xlu1 %v641_v61  ;;  %v5145_v58 = vld [vmem:[#allocation7] sm:$0xff] }
 0x34f   :  { %v4272_v60 = vld [vmem:[#allocation13] ss:$8 sps:$4 sm:$0xff]   ;;  %v4274_v61 = vld [vmem:[#allocation13 + $0x4] ss:$8 sps:$4 sm:$0xff]  }
 0x350   :  { %4440 = vpow2.f32 %v784_v62  ;;  %3953 = vmatpush3.bf16.msra.mxu0 %v4271_v45  ;;  %v4277_v62 = vld [vmem:[#allocation13 + $0x14] ss:$8 sps:$4 sm:$0xff]  }
 0x351   :  { %1419 = vmatprep.subr.bf16.mxu0 %v4274_v61 }
 0x354   :  { %v5113_v63 = vpop.eup %4434 }
 0x355   :  { %v786_v1 = vsel %vm607_vm0, %v5113_v63, 0.0 }
 0x356   :  { %v5117_v2 = vpop.eup %4436  ;;  %787 = vadd.xlane.f32.xlu0 %v786_v1  ;;  %v4280_v1 = vld [vmem:[#allocation13 + $0x24] ss:$8 sps:$4 sm:$0xff]  }
 0x357   :  { %v789_v3 = vsel %vm607_vm0, %v5117_v2, 0.0 }
 0x358   :  { %v5121_v4 = vpop.eup %4438  ;;  %790 = vadd.xlane.f32.xlu1 %v789_v3  ;;  %v4283_v3 = vld [vmem:[#allocation13 + $0x34] ss:$8 sps:$4 sm:$0xff]  }
 0x359   :  { %v792_v5 = vsel %vm607_vm0, %v5121_v4, 0.0 }
 0x35a   :  { %v5125_v6 = vpop.eup %4440  ;;  %793 = vadd.xlane.f32.xlu0 %v792_v5  ;;  %v4286_v5 = vld [vmem:[#allocation13 + $0x44] ss:$8 sps:$4 sm:$0xff]  }
 0x35b   :  { %v795_v7 = vsel %vm607_vm0, %v5125_v6, 0.0 }
 0x35c   :  { %796 = vadd.xlane.f32.xlu1 %v795_v7  ;;  %v4289_v7 = vld [vmem:[#allocation13 + $0x54] ss:$8 sps:$4 sm:$0xff]  }
 0x3d3   :  { %v634_v15 = vpop.xlane.xlu0 %633 }
 0x3d4   :  { %4442 = vrcp.f32 %v634_v15  ;;  %v4303_v15 = vld [vmem:[#allocation5 + $0x10] sm:$0xff]  }
 0x3d7   :  { %v640_v16 = vpop.xlane.xlu0 %639  ;;  %v637_v17 = vpop.xlane.xlu1 %636 }
 0x3d8   :  { %4444 = vrcp.f32 %v637_v17  ;;  %v4490_v17 = vld [vmem:[#allocation2] sm:$0xff]  }
 0x3d9   :  { %4446 = vrcp.f32 %v640_v16 }
 0x3db   :  { %v643_v18 = vpop.xlane.xlu1 %642 }
 0x3dc   :  { %4448 = vrcp.f32 %v643_v18  ;;  %v212_v18 = vunpack.c.l.bf16 %v4490_v17 }
 0x3de   :  { %v4443_v19 = vpop.eup %4442 }
 0x3df   :  { %v648_v23 = vmul.f32 %v4443_v19, %v5097_v41  ;;  %v215_v19 = vunpack.c.h.bf16 %v5069_v25 }
 0x3e2   :  { %v4445_v20 = vpop.eup %4444 }
 0x3e3   :  { %v788_v21 = vpop.xlane.xlu0 %787  ;;  %v4447_v22 = vpop.eup %4446  ;;  %v649_v24 = vmul.f32 %v4445_v20, %v5103_v47  ;;  %v213_v20 = vunpack.c.h.bf16 %v4490_v17 }
 0x3e4   :  { %4450 = vrcp.f32 %v788_v21  ;;  %v650_v31 = vmul.f32 %v4447_v22, %v5101_v44  ;;  %v214_v22 = vunpack.c.l.bf16 %v5069_v25 }
 0x3e5   :  { %v791_v26 = vpop.xlane.xlu1 %790  ;;  %v652_v30 = vpack.c.bf16 %v649_v24, %v648_v23 }
 0x3e6   :  { %v4449_v29 = vpop.eup %4448  ;;  %4452 = vrcp.f32 %v791_v26 }
 0x3e7   :  { %v651_v32 = vmul.f32 %v4449_v29, %v5109_v53  ;;  %v794_v33 = vpop.xlane.xlu0 %793  ;;  %3918 = vmatprep.mubr.msk.bf16.mxu1 %vm607_vm0, %v652_v30 }
 0x3e8   :  { %4454 = vrcp.f32 %v794_v33 }
 0x3e9   :  { %v797_v34 = vpop.xlane.xlu1 %796  ;;  %v653_v35 = vpack.c.bf16 %v651_v32, %v650_v31 }
 0x3ea   :  { %4456 = vrcp.f32 %v797_v34  ;;  %v216_v34 = vunpack.c.l.bf16 %v5072_v27 }
 0x3eb   :  { %3919 = vmatmul.mubr.msk.bf16.vlgmr.msra.gmra.mrb[12].mxu1 %vm607_vm0, %v653_v35  ;;  %v219_v35 = vunpack.c.h.bf16 %v5077_v28 }
 0x3ec   :  { %3931 = vmatpush3.bf16.msra.mxu1 %v5086_v59 }
 0x3ed   :  { %3932 = vmatprep.subr.bf16.mxu1 %v5084_v56 }
 0x3ee   :  { %v4451_v36 = vpop.eup %4450 }
 0x3ef   :  { %v802_v38 = vmul.f32 %v4451_v36, %v5113_v63  ;;  %v4275_v63 = vld [vmem:[#allocation13 + $0x10] ss:$8 sps:$4 sm:$0xff]   ;;  %v217_v36 = vunpack.c.h.bf16 %v5072_v27  ;;  %v4296_v27 = vld [vmem:[#allocation11] sm:$0xff]  }
 0x3f0   :  { %v4453_v37 = vpop.eup %4452  ;;  %3933 = vmatpush3.bf16.msra.mxu1 %v5084_v56 }
 0x3f1   :  { %v803_v39 = vmul.f32 %v4453_v37, %v5117_v2  ;;  %v4278_v2 = vld [vmem:[#allocation13 + $0x20] ss:$8 sps:$4 sm:$0xff]  }
 0x3f2   :  { %v4455_v40 = vpop.eup %4454 }
 0x3f3   :  { %v806_v41 = vpack.c.bf16 %v803_v39, %v802_v38  ;;  %v804_v43 = vmul.f32 %v4455_v40, %v5121_v4  ;;  %v4281_v4 = vld [vmem:[#allocation13 + $0x30] ss:$8 sps:$4 sm:$0xff]   ;;  %v218_v38 = vunpack.c.l.bf16 %v5077_v28  ;;  %v5182_v28 = vld [vmem:[#allocation7 + $0x8] sm:$0xff] }
 0x3f4   :  { %v4457_v42 = vpop.eup %4456 }
 0x3f5   :  { %v805_v44 = vmul.f32 %v4457_v42, %v5125_v6  ;;  %3934 = vmatprep.mubr.msk.bf16.mxu1 %vm607_vm0, %v806_v41  ;;  %v4284_v6 = vld [vmem:[#allocation13 + $0x40] ss:$8 sps:$4 sm:$0xff]  }
 0x3f7   :  { %v807_v59 = vpack.c.bf16 %v805_v44, %v804_v43 }
 0x3f9   :  { %3935 = vmatmul.mubr.msk.bf16.vlgmr.msra.gmra.mrb[16].mxu1 %vm607_vm0, %v807_v59 }
 0x3fa   :  { %3978 = vmatprep.mubr.msk.f32.mxu1 %vm1012_vm1, %v5145_v58 }
 0x4be   :  { %v3920_v56 = vpop.f32.mrb[12].mxu1 }
 0x4bf   :  { %v694_v46 = vpop.f32.mrb[13].mxu1 }
 0x4c0   :  { %v3921_v47 = vpop.f32.mrb[14].mxu1 }
 0x4c1   :  { %v864_v48 = vpack.c.bf16 %v3921_v47, %v3920_v56  ;;  %v697_v49 = vpop.f32.mrb[15].mxu1  ;;  %v5184_v56 = vld [vmem:[#allocation7 + $0x10] sm:$0xff]  ;;  %v5190_v47 = vld [vmem:[#allocation7 + $0x18] sm:$0xff] }
 0x4c2   :  { %v863_v50 = vpack.c.bf16 %v697_v49, %v694_v46  ;;  %v4298_v46 = vld [vmem:[#allocation11 + $0x8] sm:$0xff]   ;;  %v4299_v49 = vld [vmem:[#allocation11 + $0x10] sm:$0xff]  }
 0x4c4   :  { %3954 = vmatprep.mubr.bf16.mxu0 %v863_v50  ;;  %v5198_v50 = vld [vmem:[#allocation7 + $0x28] sm:$0xff] }
 0x4c5   :  { %3955 = vmatmul.mubr.bf16.vlgmr.msra.gmra.mrb[20].mxu0 %v864_v48  ;;  %v5192_v48 = vld [vmem:[#allocation7 + $0x20] sm:$0xff] }
 0x4c6   :  { %1420 = vmatpush1.bf16.msra.mxu0 %v4272_v60  ;;  %v4306_v60 = vld [vmem:[#allocation11 + $0x38] sm:$0xff]  }
 0x4c7   :  { %1421 = vmatprep.subr.bf16.mxu0 %v4277_v62 }
 0x4ca   :  { %1422 = vmatpush1.bf16.msra.mxu0 %v4275_v63 }
 0x4cb   :  { %1423 = vmatprep.subr.bf16.mxu0 %v4280_v1 }
 0x4cc   :  { %v3936_v51 = vpop.f32.mrb[16].mxu1 }
 0x4cd   :  { %v848_v52 = vpop.f32.mrb[17].mxu1 }
 0x4ce   :  { %v3937_v53 = vpop.f32.mrb[18].mxu1  ;;  %1424 = vmatpush1.bf16.msra.mxu0 %v4278_v2 }
 0x4cf   :  { %v866_v54 = vpack.c.bf16 %v3937_v53, %v3936_v51  ;;  %v851_v55 = vpop.f32.mrb[19].mxu1  ;;  %1425 = vmatprep.subr.bf16.mxu0 %v4283_v3  ;;  %v5200_v51 = vld [vmem:[#allocation7 + $0x30] sm:$0xff]  ;;  %v5206_v53 = vld [vmem:[#allocation7 + $0x38] sm:$0xff] }
 0x4d0   :  { %v865_v57 = vpack.c.bf16 %v851_v55, %v848_v52  ;;  %v4301_v52 = vld [vmem:[#allocation11 + $0x18] sm:$0xff]   ;;  %v4304_v55 = vld [vmem:[#allocation11 + $0x28] sm:$0xff]  }
 0x4d2   :  { %3958 = vmatprep.mubr.bf16.mxu0 %v865_v57  ;;  %1426 = vmatpush1.bf16.msra.mxu0 %v4281_v4  ;;  %v4305_v57 = vld [vmem:[#allocation11 + $0x30] sm:$0xff]  }
 0x4d3   :  { %3959 = vmatmul.mubr.bf16.gmra.mrb[24].mxu0 %v866_v54  ;;  %1427 = vmatprep.subr.bf16.mxu0 %v4286_v5  ;;  %v4302_v54 = vld [vmem:[#allocation11 + $0x20] sm:$0xff]  }
 0x4d4   :  { %1451 = vmatprep.mubr.bf16.mxu0 %v4820_v0 }
 0x4d6   :  { %1428 = vmatpush1.bf16.msra.mxu0 %v4284_v6 }
 0x4d7   :  { %1429 = vmatprep.subr.bf16.mxu0 %v4289_v7 }
 0x4da   :  { %1430 = vmatpush1.bf16.msra.mxu0 %v4287_v8 }
 0x4db   :  { %1431 = vmatprep.subr.bf16.mxu0 %v4292_v9 }
 0x4de   :  { %1432 = vmatpush1.bf16.msra.mxu0 %v4290_v10 }
 0x4df   :  { %1433 = vmatprep.subr.bf16.mxu0 %v4295_v11 }
 0x4e2   :  { %1434 = vmatpush1.bf16.msra.mxu0 %v4293_v12 }
 0x4e5   :  { %1452 = vmatmul.mubr.bf16.vlgmr.msra.gmra.mrb[28].mxu0 %v4297_v13 }
 0x4e6   :  { %1461 = vmatprep.mubr.bf16.mxu0 %v4820_v0 }
 0x4ed   :  { %1462 = vmatmul.mubr.bf16.gmra.mrb[32].mxu0 %v4300_v14 }
 0x4ee   :  { %1471 = vmatprep.mubr.bf16.mxu0 %v4820_v0 }
 0x4f5   :  { %1472 = vmatmul.mubr.bf16.gmra.mrb[36].mxu0 %v4303_v15 }
 0x4f6   :  { %1481 = vmatprep.mubr.bf16.mxu0 %v4820_v0 }
 0x598   :  { %v3956_v16 = vpop.f32.mrb[20].mxu0 }
 0x599   :  { %v965_v21 = vpop.f32.mrb[21].mxu0  ;;  %v5160_v31 = vadd.f32 %v3956_v16, %v214_v22 }
 0x59a   :  { %v3957_v23 = vpop.f32.mrb[22].mxu0  ;;  %v5154_v26 = vadd.f32 %v965_v21, %v212_v18 }
 0x59b   :  { %v968_v24 = vpop.f32.mrb[23].mxu0  ;;  %v5156_v29 = vadd.f32 %v3957_v23, %v215_v19 }
 0x59c   :  { %v5158_v30 = vadd.f32 %v968_v24, %v213_v20 }
 0x59d   :  { %v4162_v33 = vpack.c.bf16 %v5156_v29, %v5160_v31 }
 0x59e   :  { %v4158_v32 = vpack.c.bf16 %v5158_v30, %v5154_v26 }
 0x5a0   :  { %4159 = vmatprep.subr.bf16.mxu1 %v4158_v32 }
 0x5a1   :  { %4161 = vmatpush3.bf16.msra.mxu1 %v4158_v32 }
 0x5a2   :  { %4163 = vmatprep.subr.bf16.mxu1 %v4162_v33 }
 0x5a5   :  { %4165 = vmatpush3.bf16.msra.mxu1 %v4162_v33 }
 0x5a6   :  { %v3960_v25 = vpop.f32.mrb[24].mxu0 }
 0x5a7   :  { %v981_v37 = vpop.f32.mrb[25].mxu0  ;;  %v5176_v44 = vadd.f32 %v3960_v25, %v218_v38 }
 0x5a8   :  { %v3961_v39 = vpop.f32.mrb[26].mxu0  ;;  %v5170_v41 = vadd.f32 %v981_v37, %v216_v34 }
 0x5a9   :  { %v984_v40 = vpop.f32.mrb[27].mxu0  ;;  %v5172_v42 = vadd.f32 %v3961_v39, %v219_v35 }
 0x5aa   :  { %v5174_v43 = vadd.f32 %v984_v40, %v217_v36 }
 0x5ab   :  { %v4170_v45 = vpack.c.bf16 %v5172_v42, %v5176_v44 }
 0x5ac   :  { %v4166_v59 = vpack.c.bf16 %v5174_v43, %v5170_v41 }
 0x5ae   :  { %4167 = vmatprep.subr.bf16.mxu1 %v4166_v59 }
 0x5af   :  { %4169 = vmatpush3.bf16.msra.mxu1 %v4166_v59 }
 0x5b0   :  { %4171 = vmatprep.subr.bf16.mxu1 %v4170_v45 }
 0x5b3   :  { %4173 = vmatpush3.bf16.msra.mxu1 %v4170_v45 }
 0x5b4   :  { %3990 = vmatprep.subr.bf16.mxu1 %v4296_v27 }
 0x5b6   :  { %3979 = vmatmul.mubr.msk.f32.vlgmr.msra.gmra.mrb[20].mxu1 %vm1012_vm1, %v5182_v28 }
 0x5b7   :  { %3981 = vmatprep.mubr.msk.f32.mxu1 %vm1012_vm1, %v5184_v56  ;;  %3991 = vmatpush3.bf16.msra.mxu1 %v4296_v27 }
 0x5b8   :  { %3992 = vmatprep.subr.bf16.mxu1 %v4298_v46  ;;  %v1453_v61 = vpop.f32.mrb[28].mxu0 }
 0x5b9   :  { %v1455_v62 = vpop.f32.mrb[29].mxu0 }
 0x5ba   :  { %3982 = vmatmul.mubr.msk.f32.gmra.mrb[22].mxu1 %vm1012_vm1, %v5190_v47  ;;  %v1457_v63 = vpop.f32.mrb[30].mxu0 }
 0x5bb   :  { %3984 = vmatprep.mubr.msk.f32.mxu1 %vm1012_vm1, %v5192_v48  ;;  %3993 = vmatpush3.bf16.msra.mxu1 %v4298_v46  ;;  %v1512_v1 = vpack.c.bf16 %v1457_v63, %v1453_v61  ;;  %v1459_v2 = vpop.f32.mrb[31].mxu0 }
 0x5bc   :  { %3994 = vmatprep.subr.bf16.mxu1 %v4299_v49  ;;  %v1513_v3 = vpack.c.bf16 %v1459_v2, %v1455_v62 }
 0x5be   :  { %3985 = vmatmul.mubr.msk.f32.gmra.mrb[24].mxu1 %vm1012_vm1, %v5198_v50 }
 0x5bf   :  { %3987 = vmatprep.mubr.msk.f32.mxu1 %vm1012_vm1, %v5200_v51  ;;  %3995 = vmatpush3.bf16.msra.mxu1 %v4299_v49 }
 0x5c0   :  { %3996 = vmatprep.subr.bf16.mxu1 %v4301_v52  ;;  %v1463_v4 = vpop.f32.mrb[32].mxu0 }
 0x5c1   :  { %v1465_v5 = vpop.f32.mrb[33].mxu0 }
 0x5c2   :  { %3988 = vmatmul.mubr.msk.f32.gmra.mrb[26].mxu1 %vm1012_vm1, %v5206_v53  ;;  %v1467_v6 = vpop.f32.mrb[34].mxu0 }
 0x5c3   :  { %3997 = vmatpush3.bf16.msra.mxu1 %v4301_v52  ;;  %v1514_v7 = vpack.c.bf16 %v1467_v6, %v1463_v4  ;;  %v1469_v8 = vpop.f32.mrb[35].mxu0  ;;  %v4307_v52 = vld [vmem:[#allocation5 + $0x18] sm:$0xff]  }
 0x5c4   :  { %3998 = vmatprep.subr.bf16.mxu1 %v4302_v54  ;;  %v1515_v9 = vpack.c.bf16 %v1469_v8, %v1465_v5  ;;  %1482 = vmatmul.mubr.bf16.gmra.mrb[40].mxu0 %v4307_v52 }
 0x5c5   :  { %1491 = vmatprep.mubr.bf16.mxu0 %v4820_v0 }
 0x5c7   :  { %3999 = vmatpush3.bf16.msra.mxu1 %v4302_v54  ;;  %v4308_v54 = vld [vmem:[#allocation5 + $0x20] sm:$0xff]  }
 0x5c8   :  { %4000 = vmatprep.subr.bf16.mxu1 %v4304_v55  ;;  %v1473_v10 = vpop.f32.mrb[36].mxu0 }
 0x5c9   :  { %v1475_v11 = vpop.f32.mrb[37].mxu0 }
 0x5ca   :  { %v1477_v12 = vpop.f32.mrb[38].mxu0 }
 0x5cb   :  { %4001 = vmatpush3.bf16.msra.mxu1 %v4304_v55  ;;  %v1516_v13 = vpack.c.bf16 %v1477_v12, %v1473_v10  ;;  %v1479_v36 = vpop.f32.mrb[39].mxu0  ;;  %v4309_v55 = vld [vmem:[#allocation5 + $0x28] sm:$0xff]  }
 0x5cc   :  { %4002 = vmatprep.subr.bf16.mxu1 %v4305_v57  ;;  %v1517_v37 = vpack.c.bf16 %v1479_v36, %v1475_v11  ;;  %1492 = vmatmul.mubr.bf16.gmra.mrb[44].mxu0 %v4308_v54 }
 0x5cd   :  { %1501 = vmatprep.mubr.bf16.mxu0 %v4820_v0 }
 0x5cf   :  { %4003 = vmatpush3.bf16.msra.mxu1 %v4305_v57 }
 0x5d0   :  { %4004 = vmatprep.subr.bf16.mxu1 %v4306_v60 }
 0x5d3   :  { %4005 = vmatpush3.bf16.msra.mxu1 %v4306_v60 }
 0x5d4   :  { %4014 = vmatprep.subr.bf16.mxu1 %v1512_v1  ;;  %1502 = vmatmul.mubr.bf16.gmra.mrb[48].mxu0 %v4309_v55 }
 0x689   :  { %v5210_v14 = vpop.f32.mrb[20].mxu1 }
 0x68a   :  { %v5214_v15 = vsub.f32 %v5158_v30, %v5210_v14  ;;  %v5216_v16 = vpop.f32.mrb[21].mxu1 }
 0x68b   :  { %v5220_v17 = vsub.f32 %v5154_v26, %v5216_v16 }
 0x68d   :  { %v1150_v18 = vpack.c.bf16 %v5214_v15, %v5220_v17  ;;  %v5224_v19 = vpop.f32.mrb[22].mxu1 }
 0x68e   :  { %v5228_v20 = vsub.f32 %v5156_v29, %v5224_v19  ;;  %v5230_v21 = vpop.f32.mrb[23].mxu1 }
 0x68f   :  { %v5234_v22 = vsub.f32 %v5160_v31, %v5230_v21  ;;  %4006 = vmatprep.mubr.bf16.mxu1 %v1150_v18 }
 0x691   :  { %v1151_v23 = vpack.c.bf16 %v5228_v20, %v5234_v22  ;;  %v5238_v24 = vpop.f32.mrb[24].mxu1 }
 0x692   :  { %v5242_v26 = vsub.f32 %v5174_v43, %v5238_v24  ;;  %v5244_v30 = vpop.f32.mrb[25].mxu1 }
 0x693   :  { %v5248_v29 = vsub.f32 %v5170_v41, %v5244_v30  ;;  %4007 = vmatmul.mubr.bf16.vlgmr.msra.gmra.mrb[28].mxu1 %v1151_v23 }
 0x694   :  { %4015 = vmatpush3.bf16.xpose.msra.mxu1 %v1512_v1 }
 0x695   :  { %v1152_v31 = vpack.c.bf16 %v5242_v26, %v5248_v29  ;;  %v5252_v32 = vpop.f32.mrb[26].mxu1  ;;  %4016 = vmatprep.subr.bf16.mxu1 %v1514_v7 }
 0x696   :  { %v5256_v33 = vsub.f32 %v5172_v42, %v5252_v32  ;;  %v5258_v25 = vpop.f32.mrb[27].mxu1 }
 0x697   :  { %v5262_v34 = vsub.f32 %v5176_v44, %v5258_v25  ;;  %4010 = vmatprep.mubr.bf16.mxu1 %v1152_v31  ;;  %v1483_v55 = vpop.f32.mrb[40].mxu0 }
 0x699   :  { %v1153_v35 = vpack.c.bf16 %v5256_v33, %v5262_v34 }
 0x69b   :  { %4011 = vmatmul.mubr.bf16.gmra.mrb[32].mxu1 %v1153_v35 }
 0x69c   :  { %4017 = vmatpush3.bf16.xpose.msra.mxu1 %v1514_v7 }
 0x69d   :  { %4018 = vmatprep.subr.bf16.mxu1 %v1516_v13 }
 0x6a4   :  { %4019 = vmatpush3.bf16.xpose.msra.mxu1 %v1516_v13 }
 0x6a5   :  { %4024 = vmatprep.subr.bf16.mxu1 %v1513_v3 }
 0x766   :  { %v4008_v38 = vpop.f32.mrb[28].mxu1 }
 0x767   :  { %v1252_v39 = vpop.f32.mrb[29].mxu1 }
 0x768   :  { %v4009_v40 = vpop.f32.mrb[30].mxu1 }
 0x769   :  { %v1284_v41 = vpack.c.bf16 %v4009_v40, %v4008_v38  ;;  %v1255_v42 = vpop.f32.mrb[31].mxu1 }
 0x76a   :  { %v1283_v43 = vpack.c.bf16 %v1255_v42, %v1252_v39 }
 0x76c   :  { %4020 = vmatprep.mubr.bf16.mxu1 %v1283_v43 }
 0x76d   :  { %4021 = vmatmul.mubr.bf16.vlgmr.msra.gmra.mrb[36].mxu1 %v1284_v41 }
 0x76e   :  { %4025 = vmatpush3.bf16.msra.mxu1 %v1513_v3  ;;  %v5266_v44 = vpop.f32.mrb[32].mxu1 }
 0x76f   :  { %4026 = vmatprep.subr.bf16.mxu1 %v1515_v9  ;;  %v5268_v59 = vpop.f32.mrb[33].mxu1 }
 0x770   :  { %v5270_v45 = vpop.f32.mrb[34].mxu1 }
 0x771   :  { %v1286_v27 = vpack.c.bf16 %v5270_v45, %v5266_v44  ;;  %v5274_v46 = vpop.f32.mrb[35].mxu1  ;;  %v4317_v44 = vld [vmem:[#allocation14 + $0x38] sm:$0xff]  }
 0x772   :  { %v1285_v49 = vpack.c.bf16 %v5274_v46, %v5268_v59  ;;  %4027 = vmatpush3.bf16.msra.mxu1 %v1515_v9  ;;  %v4314_v59 = vld [vmem:[#allocation14 + $0x20] sm:$0xff]   ;;  %v4315_v46 = vld [vmem:[#allocation14 + $0x28] sm:$0xff]  }
 0x773   :  { %4028 = vmatprep.subr.bf16.mxu1 %v1517_v37 }
 0x776   :  { %4029 = vmatpush3.bf16.msra.mxu1 %v1517_v37 }
 0x840   :  { %v4022_v57 = vpop.f32.mrb[36].mxu1 }
 0x841   :  { %v1558_v60 = vpop.f32.mrb[37].mxu1  ;;  %v1575_v1 = vmul.f32 0.088388346, %v4022_v57  ;;  %v1485_v57 = vpop.f32.mrb[41].mxu0 }
 0x842   :  { %v1573_v61 = vmul.f32 0.088388346, %v1558_v60  ;;  %v4023_v62 = vpop.f32.mrb[38].mxu1  ;;  %v1487_v60 = vpop.f32.mrb[42].mxu0 }
 0x843   :  { %v1561_v63 = vpop.f32.mrb[39].mxu1  ;;  %v1576_v4 = vmul.f32 0.088388346, %v4023_v62  ;;  %v1584_v6 = vsel %vm1577_vm2, %v1575_v1, -inf }
 0x844   :  { %v1574_v2 = vmul.f32 0.088388346, %v1561_v63  ;;  %v1578_v3 = vsel %vm1577_vm2, %v1573_v61, -inf  ;;  %v1518_v63 = vpack.c.bf16 %v1487_v60, %v1483_v55 }
 0x845   :  { %1579 = vmax.xlane.f32.xlu0 %v1578_v3  ;;  %v1587_v7 = vsel %vm1577_vm2, %v1576_v4, -inf }
 0x846   :  { %v1581_v5 = vsel %vm1577_vm2, %v1574_v2, -inf  ;;  %4034 = vmatprep.subr.bf16.mxu1 %v1518_v63 }
 0x847   :  { %1582 = vmax.xlane.f32.xlu1 %v1581_v5 }
 0x849   :  { %1585 = vmax.xlane.f32.xlu0 %v1584_v6 }
 0x84b   :  { %1588 = vmax.xlane.f32.xlu1 %v1587_v7 }
 0x8d2   :  { %v1580_v8 = vpop.xlane.xlu0 %1579 }
 0x8d3   :  { %v1590_v9 = vsub.f32 %v1573_v61, %v1580_v8  ;;  %v1489_v61 = vpop.f32.mrb[43].mxu0 }
 0x8d4   :  { %v1583_v10 = vpop.xlane.xlu1 %1582  ;;  %v1519_v62 = vpack.c.bf16 %v1489_v61, %v1485_v57 }
 0x8d5   :  { %v1594_v11 = vmul.f32 1.442695, %v1590_v9  ;;  %v1591_v12 = vsub.f32 %v1574_v2, %v1583_v10 }
 0x8d6   :  { %v1586_v13 = vpop.xlane.xlu0 %1585  ;;  %4044 = vmatprep.subr.bf16.mxu0 %v1519_v62 }
 0x8d7   :  { %4458 = vpow2.f32 %v1594_v11  ;;  %v1596_v18 = vmul.f32 1.442695, %v1591_v12  ;;  %v1592_v23 = vsub.f32 %v1575_v1, %v1586_v13  ;;  %4045 = vmatpush3.bf16.msra.mxu0 %v1519_v62  ;;  %v1493_v1 = vpop.f32.mrb[44].mxu0 }
 0x8d8   :  { %v1589_v31 = vpop.xlane.xlu1 %1588  ;;  %v1495_v2 = vpop.f32.mrb[45].mxu0 }
 0x8d9   :  { %4460 = vpow2.f32 %v1596_v18  ;;  %v1598_v35 = vmul.f32 1.442695, %v1592_v23  ;;  %v1593_v36 = vsub.f32 %v1576_v4, %v1589_v31  ;;  %v1497_v3 = vpop.f32.mrb[46].mxu0 }
 0x8da   :  { %v1520_v4 = vpack.c.bf16 %v1497_v3, %v1493_v1  ;;  %v1499_v5 = vpop.f32.mrb[47].mxu0 }
 0x8db   :  { %4462 = vpow2.f32 %v1598_v35  ;;  %v1600_v37 = vmul.f32 1.442695, %v1593_v36  ;;  %v1521_v6 = vpack.c.bf16 %v1499_v5, %v1495_v2  ;;  %v1503_v7 = vpop.f32.mrb[48].mxu0 }
 0x8dc   :  { %v1505_v8 = vpop.f32.mrb[49].mxu0 }
 0x8dd   :  { %4464 = vpow2.f32 %v1600_v37  ;;  %4046 = vmatprep.subr.bf16.mxu0 %v1521_v6  ;;  %v1507_v9 = vpop.f32.mrb[50].mxu0 }
 0x8de   :  { %4047 = vmatpush3.bf16.msra.mxu0 %v1521_v6  ;;  %v1522_v10 = vpack.c.bf16 %v1507_v9, %v1503_v7  ;;  %v1509_v11 = vpop.f32.mrb[51].mxu0 }
 0x8df   :  { %v1523_v12 = vpack.c.bf16 %v1509_v11, %v1505_v8 }
 0x8e1   :  { %v4459_v38 = vpop.eup %4458  ;;  %4048 = vmatprep.subr.bf16.mxu0 %v1523_v12 }
 0x8e2   :  { %v1602_v39 = vsel %vm1577_vm2, %v4459_v38, 0.0  ;;  %4049 = vmatpush3.bf16.msra.mxu0 %v1523_v12 }
 0x8e3   :  { %v4461_v40 = vpop.eup %4460  ;;  %1603 = vadd.xlane.f32.xlu0 %v1602_v39 }
 0x8e4   :  { %v1605_v41 = vsel %vm1577_vm2, %v4461_v40, 0.0 }
 0x8e5   :  { %v4463_v42 = vpop.eup %4462  ;;  %1606 = vadd.xlane.f32.xlu1 %v1605_v41 }
 0x8e6   :  { %v1608_v43 = vsel %vm1577_vm2, %v4463_v42, 0.0 }
 0x8e7   :  { %v4465_v52 = vpop.eup %4464  ;;  %1609 = vadd.xlane.f32.xlu0 %v1608_v43 }
 0x8e8   :  { %v1611_v54 = vsel %vm1577_vm2, %v4465_v52, 0.0 }
 0x8e9   :  { %1612 = vadd.xlane.f32.xlu1 %v1611_v54 }
 0x970   :  { %v1604_v13 = vpop.xlane.xlu0 %1603 }
 0x971   :  { %4466 = vrcp.f32 %v1604_v13 }
 0x972   :  { %v1607_v18 = vpop.xlane.xlu1 %1606 }
 0x973   :  { %4468 = vrcp.f32 %v1607_v18 }
 0x974   :  { %v1610_v23 = vpop.xlane.xlu0 %1609 }
 0x975   :  { %4470 = vrcp.f32 %v1610_v23 }
 0x976   :  { %v1613_v31 = vpop.xlane.xlu1 %1612 }
 0x977   :  { %4472 = vrcp.f32 %v1613_v31 }
 0x97b   :  { %v4467_v35 = vpop.eup %4466 }
 0x97c   :  { %v1618_v37 = vmul.f32 %v4467_v35, %v4459_v38  ;;  %v4310_v38 = vld [vmem:[#allocation14] sm:$0xff]  }
 0x97d   :  { %v4469_v36 = vpop.eup %4468 }
 0x97e   :  { %v1619_v39 = vmul.f32 %v4469_v36, %v4461_v40  ;;  %v4311_v40 = vld [vmem:[#allocation14 + $0x8] sm:$0xff]  }
 0x97f   :  { %v4471_v41 = vpop.eup %4470 }
 0x980   :  { %v1622_v43 = vpack.c.bf16 %v1619_v39, %v1618_v37  ;;  %v1620_v55 = vmul.f32 %v4471_v41, %v4463_v42  ;;  %v4312_v42 = vld [vmem:[#allocation14 + $0x10] sm:$0xff]  }
 0x981   :  { %v4473_v54 = vpop.eup %4472 }
 0x982   :  { %v1621_v57 = vmul.f32 %v4473_v54, %v4465_v52  ;;  %4030 = vmatprep.mubr.msk.bf16.mxu1 %vm1577_vm2, %v1622_v43  ;;  %v4313_v52 = vld [vmem:[#allocation14 + $0x18] sm:$0xff]  }
 0x984   :  { %v1623_v60 = vpack.c.bf16 %v1621_v57, %v1620_v55 }
 0x986   :  { %4031 = vmatmul.mubr.msk.bf16.vlgmr.msra.gmra.mrb[40].mxu1 %vm1577_vm2, %v1623_v60 }
 0x987   :  { %4035 = vmatpush3.bf16.xpose.msra.mxu1 %v1518_v63  ;;  %4040 = vmatprep.mubr.bf16.mxu1 %v1285_v49  ;;  %v4316_v49 = vld [vmem:[#allocation14 + $0x30] sm:$0xff]  }
 0x988   :  { %4036 = vmatprep.subr.bf16.mxu1 %v1520_v4 }
 0x98f   :  { %4037 = vmatpush3.bf16.xpose.msra.mxu1 %v1520_v4 }
 0x990   :  { %4038 = vmatprep.subr.bf16.mxu1 %v1522_v10 }
 0x997   :  { %4039 = vmatpush3.bf16.xpose.msra.mxu1 %v1522_v10 }
 0x998   :  { %4054 = vmatprep.subr.bf16.mxu1 %v4310_v38 }
 0x99e   :  { %4041 = vmatmul.mubr.bf16.vlgmr.msra.gmra.mrb[44].mxu1 %v1286_v27 }
 0x99f   :  { %4055 = vmatpush3.bf16.msra.mxu1 %v4310_v38 }
 0x9a0   :  { %4056 = vmatprep.subr.bf16.mxu1 %v4311_v40 }
 0x9a3   :  { %4057 = vmatpush3.bf16.msra.mxu1 %v4311_v40 }
 0x9a4   :  { %4058 = vmatprep.subr.bf16.mxu1 %v4312_v42 }
 0x9a7   :  { %4059 = vmatpush3.bf16.msra.mxu1 %v4312_v42 }
 0x9a8   :  { %4060 = vmatprep.subr.bf16.mxu1 %v4313_v52 }
 0x9ab   :  { %4061 = vmatpush3.bf16.msra.mxu1 %v4313_v52 }
 0x9ac   :  { %4062 = vmatprep.subr.bf16.mxu1 %v4314_v59 }
 0x9af   :  { %4063 = vmatpush3.bf16.msra.mxu1 %v4314_v59 }
 0x9b0   :  { %4064 = vmatprep.subr.bf16.mxu1 %v4315_v46 }
 0x9b3   :  { %4065 = vmatpush3.bf16.msra.mxu1 %v4315_v46 }
 0x9b4   :  { %4066 = vmatprep.subr.bf16.mxu1 %v4316_v49 }
 0x9b7   :  { %4067 = vmatpush3.bf16.msra.mxu1 %v4316_v49 }
 0x9b8   :  { %4068 = vmatprep.subr.bf16.mxu1 %v4317_v44 }
 0x9bb   :  { %4069 = vmatpush3.bf16.msra.mxu1 %v4317_v44 }
 0xa59   :  { %v4032_v45 = vpop.f32.mrb[40].mxu1 }
 0xa5a   :  { %v1664_v27 = vpop.f32.mrb[41].mxu1 }
 0xa5b   :  { %v4033_v61 = vpop.f32.mrb[42].mxu1 }
 0xa5c   :  { %v1834_v62 = vpack.c.bf16 %v4033_v61, %v4032_v45  ;;  %v1667_v63 = vpop.f32.mrb[43].mxu1 }
 0xa5d   :  { %v1833_v1 = vpack.c.bf16 %v1667_v63, %v1664_v27 }
 0xa5f   :  { %4070 = vmatprep.mubr.bf16.mxu1 %v1833_v1 }
 0xa60   :  { %4071 = vmatmul.mubr.bf16.vlgmr.msra.gmra.mrb[48].mxu1 %v1834_v62 }
 0xa71   :  { %v4042_v2 = vpop.f32.mrb[44].mxu1 }
 0xa72   :  { %v1713_v3 = vpop.f32.mrb[45].mxu1  ;;  %v1730_v7 = vmul.f32 0.088388346, %v4042_v2 }
 0xa73   :  { %v1728_v4 = vmul.f32 0.088388346, %v1713_v3  ;;  %v4043_v5 = vpop.f32.mrb[46].mxu1 }
 0xa74   :  { %v1716_v6 = vpop.f32.mrb[47].mxu1  ;;  %v1731_v10 = vmul.f32 0.088388346, %v4043_v5  ;;  %v1738_v12 = vsel %vm1577_vm2, %v1730_v7, -inf }
 0xa75   :  { %v1729_v8 = vmul.f32 0.088388346, %v1716_v6  ;;  %v1732_v9 = vsel %vm1577_vm2, %v1728_v4, -inf }
 0xa76   :  { %1733 = vmax.xlane.f32.xlu0 %v1732_v9  ;;  %v1741_v13 = vsel %vm1577_vm2, %v1731_v10, -inf }
 0xa77   :  { %v1735_v11 = vsel %vm1577_vm2, %v1729_v8, -inf }
 0xa78   :  { %1736 = vmax.xlane.f32.xlu1 %v1735_v11 }
 0xa7a   :  { %1739 = vmax.xlane.f32.xlu0 %v1738_v12 }
 0xa7c   :  { %1742 = vmax.xlane.f32.xlu1 %v1741_v13 }
 0xb03   :  { %v1734_v18 = vpop.xlane.xlu0 %1733 }
 0xb04   :  { %v1744_v23 = vsub.f32 %v1728_v4, %v1734_v18 }
 0xb05   :  { %v1737_v31 = vpop.xlane.xlu1 %1736 }
 0xb06   :  { %v1748_v35 = vmul.f32 1.442695, %v1744_v23  ;;  %v1745_v36 = vsub.f32 %v1729_v8, %v1737_v31 }
 0xb07   :  { %v1740_v37 = vpop.xlane.xlu0 %1739 }
 0xb08   :  { %4474 = vpow2.f32 %v1748_v35  ;;  %v1750_v39 = vmul.f32 1.442695, %v1745_v36  ;;  %v1746_v41 = vsub.f32 %v1730_v7, %v1740_v37 }
 0xb09   :  { %v1743_v43 = vpop.xlane.xlu1 %1742 }
 0xb0a   :  { %4476 = vpow2.f32 %v1750_v39  ;;  %v1752_v54 = vmul.f32 1.442695, %v1746_v41  ;;  %v1747_v55 = vsub.f32 %v1731_v10, %v1743_v43  ;;  %v4323_v43 = vld [vmem:[#allocation16 + $0xc] ss:$16 sps:$4 sm:$0xff]  }
 0xb0b   :  { %2364 = vmatprep.subr.bf16.mxu1 %v4323_v43  ;;  %v4368_v43 = vld [vmem:[#allocation17] sm:$0xff]  }
 0xb0c   :  { %4478 = vpow2.f32 %v1752_v54  ;;  %v1754_v57 = vmul.f32 1.442695, %v1747_v55  ;;  %v4329_v54 = vld [vmem:[#allocation16 + $0x2c] ss:$16 sps:$4 sm:$0xff]   ;;  %v4327_v55 = vld [vmem:[#allocation16 + $0x28] ss:$16 sps:$4 sm:$0xff]  }
 0xb0e   :  { %4480 = vpow2.f32 %v1754_v57  ;;  %v4333_v57 = vld [vmem:[#allocation16 + $0x48] ss:$16 sps:$4 sm:$0xff]  }
 0xb12   :  { %v4475_v60 = vpop.eup %4474 }
 0xb13   :  { %v1756_v38 = vsel %vm1577_vm2, %v4475_v60, 0.0 }
 0xb14   :  { %v4477_v40 = vpop.eup %4476  ;;  %1757 = vadd.xlane.f32.xlu0 %v1756_v38  ;;  %v4339_v38 = vld [vmem:[#allocation16 + $0x68] ss:$16 sps:$4 sm:$0xff]  }
 0xb15   :  { %v1759_v42 = vsel %vm1577_vm2, %v4477_v40, 0.0 }
 0xb16   :  { %v4479_v52 = vpop.eup %4478  ;;  %1760 = vadd.xlane.f32.xlu1 %v1759_v42  ;;  %v4345_v42 = vld [vmem:[#allocation16 + $0x88] ss:$16 sps:$4 sm:$0xff]  }
 0xb17   :  { %v1762_v59 = vsel %vm1577_vm2, %v4479_v52, 0.0 }
 0xb18   :  { %v4481_v46 = vpop.eup %4480  ;;  %1763 = vadd.xlane.f32.xlu0 %v1762_v59  ;;  %v4351_v59 = vld [vmem:[#allocation16 + $0xa8] ss:$16 sps:$4 sm:$0xff]  }
 0xb19   :  { %v1765_v49 = vsel %vm1577_vm2, %v4481_v46, 0.0 }
 0xb1a   :  { %1766 = vadd.xlane.f32.xlu1 %v1765_v49  ;;  %v4357_v49 = vld [vmem:[#allocation16 + $0xc8] ss:$16 sps:$4 sm:$0xff]  }
 0xb33   :  { %v4072_v44 = vpop.f32.mrb[48].mxu1 }
 0xb34   :  { %v1935_v45 = vpop.f32.mrb[49].mxu1  ;;  %v5317_v18 = vadd.f32 %v4072_v44, %v5234_v22  ;;  %v4321_v22 = vld [vmem:[#allocation16 + $0x8] ss:$16 sps:$4 sm:$0xff]  }
 0xb35   :  { %v4073_v27 = vpop.f32.mrb[50].mxu1  ;;  %v5305_v62 = vadd.f32 %v1935_v45, %v5220_v17  ;;  %2365 = vmatpush1.bf16.msra.mxu1 %v4321_v22 }
 0xb36   :  { %v1938_v61 = vpop.f32.mrb[51].mxu1  ;;  %v5313_v11 = vadd.f32 %v4073_v27, %v5228_v20  ;;  %2366 = vmatprep.subr.bf16.mxu1 %v4329_v54  ;;  %v4369_v54 = vld [vmem:[#allocation17 + $0x80] sm:$0xff]  }
 0xb37   :  { %v5308_v63 = vadd.f32 %v1938_v61, %v5214_v15 }
 0xb38   :  { %v4178_v31 = vpack.c.bf16 %v5313_v11, %v5317_v18 }
 0xb39   :  { %v4174_v1 = vpack.c.bf16 %v5308_v63, %v5305_v62  ;;  %2367 = vmatpush1.bf16.msra.mxu1 %v4327_v55 }
 0xb3b   :  { %4175 = vmatprep.subr.bf16.mxu0 %v4174_v1 }
 0xba1   :  { %v1758_v2 = vpop.xlane.xlu0 %1757 }
 0xba2   :  { %4482 = vrcp.f32 %v1758_v2 }
 0xba3   :  { %v1761_v3 = vpop.xlane.xlu1 %1760 }
 0xba4   :  { %4484 = vrcp.f32 %v1761_v3 }
 0xba5   :  { %v1764_v4 = vpop.xlane.xlu0 %1763 }
 0xba6   :  { %4486 = vrcp.f32 %v1764_v4 }
 0xba7   :  { %v1767_v5 = vpop.xlane.xlu1 %1766 }
 0xba8   :  { %4488 = vrcp.f32 %v1767_v5 }
 0xbac   :  { %v4483_v6 = vpop.eup %4482 }
 0xbad   :  { %v1772_v8 = vmul.f32 %v4483_v6, %v4475_v60  ;;  %v4341_v60 = vld [vmem:[#allocation16 + $0x6c] ss:$16 sps:$4 sm:$0xff]  }
 0xbae   :  { %v4485_v7 = vpop.eup %4484 }
 0xbaf   :  { %v1773_v17 = vmul.f32 %v4485_v7, %v4477_v40  ;;  %v4347_v40 = vld [vmem:[#allocation16 + $0x8c] ss:$16 sps:$4 sm:$0xff]   ;;  %v4318_v7 = vld [vmem:[#allocation16] ss:$16 sps:$4 sm:$0xff]  }
 0xbb0   :  { %v4487_v9 = vpop.eup %4486 }
 0xbb1   :  { %v1776_v10 = vpack.c.bf16 %v1773_v17, %v1772_v8  ;;  %v1774_v12 = vmul.f32 %v4487_v9, %v4479_v52  ;;  %v4353_v52 = vld [vmem:[#allocation16 + $0xac] ss:$16 sps:$4 sm:$0xff]   ;;  %v4330_v8 = vld [vmem:[#allocation16 + $0x40] ss:$16 sps:$4 sm:$0xff]   ;;  %v4338_v17 = vld [vmem:[#allocation16 + $0x64] ss:$16 sps:$4 sm:$0xff]  }
 0xbb2   :  { %v4489_v15 = vpop.eup %4488  ;;  %v4348_v9 = vld [vmem:[#allocation16 + $0xa0] ss:$16 sps:$4 sm:$0xff]  }
 0xbb3   :  { %v1775_v13 = vmul.f32 %v4489_v15, %v4481_v46  ;;  %4050 = vmatprep.mubr.msk.bf16.mxu0 %vm1577_vm2, %v1776_v10  ;;  %v4359_v46 = vld [vmem:[#allocation16 + $0xcc] ss:$16 sps:$4 sm:$0xff]   ;;  %v4354_v10 = vld [vmem:[#allocation16 + $0xc0] ss:$16 sps:$4 sm:$0xff]  }
 0xbb4   :  { %v4365_v15 = vld [vmem:[#allocation16 + $0xec] ss:$16 sps:$4 sm:$0xff]  }
 0xbb5   :  { %v1777_v23 = vpack.c.bf16 %v1775_v13, %v1774_v12  ;;  %v4360_v12 = vld [vmem:[#allocation16 + $0xe0] ss:$16 sps:$4 sm:$0xff]   ;;  %v4363_v13 = vld [vmem:[#allocation16 + $0xe8] ss:$16 sps:$4 sm:$0xff]  }
 0xbb7   :  { %4051 = vmatmul.mubr.msk.bf16.vlgmr.msra.gmra.mrb[52].mxu0 %vm1577_vm2, %v1777_v23  ;;  %v4367_v23 = vld [vmem:[#allocation17 + $0xc0] sm:$0xff]  }
 0xbb8   :  { %4177 = vmatpush3.bf16.msra.mxu0 %v4174_v1  ;;  %4094 = vmatprep.mubr.msk.f32.mxu0 %vm1012_vm1, %v5145_v58  ;;  %v4335_v58 = vld [vmem:[#allocation16 + $0x4c] ss:$16 sps:$4 sm:$0xff]  }
 0xbb9   :  { %4179 = vmatprep.subr.bf16.mxu0 %v4178_v31  ;;  %2368 = vmatprep.subr.bf16.mxu1 %v4335_v58  ;;  %v4370_v58 = vld [vmem:[#allocation17 + $0x48] sm:$0xff]  }
 0xbba   :  { %2369 = vmatpush1.bf16.msra.mxu1 %v4333_v57 }
 0xbbb   :  { %2370 = vmatprep.subr.bf16.mxu1 %v4341_v60  ;;  %v4372_v60 = vld [vmem:[#allocation17 + $0x8] sm:$0xff]  }
 0xbbc   :  { %4181 = vmatpush3.bf16.msra.mxu0 %v4178_v31 }
 0xbbe   :  { %2371 = vmatpush1.bf16.msra.mxu1 %v4339_v38  ;;  %v4373_v38 = vld [vmem:[#allocation17 + $0x88] sm:$0xff]  }
 0xbbf   :  { %2372 = vmatprep.subr.bf16.mxu1 %v4347_v40 }
 0xbc2   :  { %2373 = vmatpush1.bf16.msra.mxu1 %v4345_v42  ;;  %v4374_v42 = vld [vmem:[#allocation17 + $0x50] sm:$0xff]  }
 0xbc3   :  { %2374 = vmatprep.subr.bf16.mxu1 %v4353_v52  ;;  %v4375_v52 = vld [vmem:[#allocation17 + $0xd0] sm:$0xff]  }
 0xbc6   :  { %2375 = vmatpush1.bf16.msra.mxu1 %v4351_v59 }
 0xbc7   :  { %2376 = vmatprep.subr.bf16.mxu1 %v4359_v46  ;;  %v4376_v46 = vld [vmem:[#allocation17 + $0x10] sm:$0xff]  }
 0xbca   :  { %2377 = vmatpush1.bf16.msra.mxu1 %v4357_v49  ;;  %v4377_v49 = vld [vmem:[#allocation17 + $0x90] sm:$0xff]  }
 0xbcb   :  { %2378 = vmatprep.subr.bf16.mxu1 %v4365_v15 }
 0xbce   :  { %2379 = vmatpush1.bf16.msra.mxu1 %v4363_v13 }
 0xbcf   :  { %3774 = vmatprep.subr.bf16.mxu1 %v4367_v23 }
 0xc8a   :  { %v4052_v20 = vpop.f32.mrb[52].mxu0 }
 0xc8b   :  { %v1818_v35 = vpop.f32.mrb[53].mxu0 }
 0xc8c   :  { %v4053_v36 = vpop.f32.mrb[54].mxu0 }
 0xc8d   :  { %v1836_v37 = vpack.c.bf16 %v4053_v36, %v4052_v20  ;;  %v1821_v39 = vpop.f32.mrb[55].mxu0 }
 0xc8e   :  { %v1835_v41 = vpack.c.bf16 %v1821_v39, %v1818_v35 }
 0xc90   :  { %4074 = vmatprep.mubr.bf16.mxu1 %v1835_v41 }
 0xc91   :  { %4075 = vmatmul.mubr.bf16.gmra.mrb[52].mxu1 %v1836_v37 }
 0xc92   :  { %2396 = vmatprep.mubr.bf16.mxu1 %v4820_v0 }
 0xd64   :  { %v4076_v44 = vpop.f32.mrb[52].mxu1 }
 0xd65   :  { %v1951_v45 = vpop.f32.mrb[53].mxu1  ;;  %v5335_v4 = vadd.f32 %v4076_v44, %v5262_v34  ;;  %v4332_v34 = vld [vmem:[#allocation16 + $0x44] ss:$16 sps:$4 sm:$0xff]  }
 0xd66   :  { %v4077_v27 = vpop.f32.mrb[54].mxu1  ;;  %v5326_v1 = vadd.f32 %v1951_v45, %v5248_v29  ;;  %v4320_v29 = vld [vmem:[#allocation16 + $0x4] ss:$16 sps:$4 sm:$0xff]   ;;  %v4378_v45 = vld [vmem:[#allocation17 + $0x58] sm:$0xff]  }
 0xd67   :  { %v1954_v61 = vpop.f32.mrb[55].mxu1  ;;  %v5329_v2 = vadd.f32 %v4077_v27, %v5256_v33  ;;  %v4326_v33 = vld [vmem:[#allocation16 + $0x24] ss:$16 sps:$4 sm:$0xff]   ;;  %v4379_v27 = vld [vmem:[#allocation17 + $0xd8] sm:$0xff]  }
 0xd68   :  { %v5332_v3 = vadd.f32 %v1954_v61, %v5242_v26  ;;  %v4324_v26 = vld [vmem:[#allocation16 + $0x20] ss:$16 sps:$4 sm:$0xff]  }
 0xd69   :  { %v4186_v6 = vpack.c.bf16 %v5329_v2, %v5335_v4 }
 0xd6a   :  { %v4182_v5 = vpack.c.bf16 %v5332_v3, %v5326_v1 }
 0xd6c   :  { %4183 = vmatprep.subr.bf16.mxu0 %v4182_v5 }
 0xd6d   :  { %4185 = vmatpush3.bf16.msra.mxu0 %v4182_v5  ;;  %v4380_v5 = vld [vmem:[#allocation17 + $0x18] sm:$0xff]  }
 0xd6e   :  { %4187 = vmatprep.subr.bf16.mxu0 %v4186_v6 }
 0xd71   :  { %4189 = vmatpush3.bf16.msra.mxu0 %v4186_v6  ;;  %v4381_v6 = vld [vmem:[#allocation17 + $0x98] sm:$0xff]  }
 0xd72   :  { %2291 = vmatprep.subr.bf16.mxu0 %v4320_v29  ;;  %v4383_v29 = vld [vmem:[#allocation17 + $0xe0] sm:$0xff]  }
 0xd74   :  { %4095 = vmatmul.mubr.msk.f32.vlgmr.msra.gmra.mrb[56].mxu0 %vm1012_vm1, %v5182_v28  ;;  %v4336_v28 = vld [vmem:[#allocation16 + $0x60] ss:$16 sps:$4 sm:$0xff]  }
 0xd75   :  { %4097 = vmatprep.mubr.msk.f32.mxu0 %vm1012_vm1, %v5184_v56  ;;  %2292 = vmatpush1.bf16.msra.mxu0 %v4318_v7  ;;  %v4344_v56 = vld [vmem:[#allocation16 + $0x84] ss:$16 sps:$4 sm:$0xff]  }
 0xd76   :  { %2293 = vmatprep.subr.bf16.mxu0 %v4326_v33  ;;  %v4384_v33 = vld [vmem:[#allocation17 + $0x20] sm:$0xff]  }
 0xd78   :  { %4098 = vmatmul.mubr.msk.f32.gmra.mrb[58].mxu0 %vm1012_vm1, %v5190_v47  ;;  %v4342_v47 = vld [vmem:[#allocation16 + $0x80] ss:$16 sps:$4 sm:$0xff]  }
 0xd79   :  { %4100 = vmatprep.mubr.msk.f32.mxu0 %vm1012_vm1, %v5192_v48  ;;  %2294 = vmatpush1.bf16.msra.mxu0 %v4324_v26  ;;  %v4350_v48 = vld [vmem:[#allocation16 + $0xa4] ss:$16 sps:$4 sm:$0xff]  }
 0xd7a   :  { %2295 = vmatprep.subr.bf16.mxu0 %v4332_v34  ;;  %v4385_v26 = vld [vmem:[#allocation17 + $0xa0] sm:$0xff]  }
 0xd7c   :  { %4101 = vmatmul.mubr.msk.f32.gmra.mrb[60].mxu0 %vm1012_vm1, %v5198_v50  ;;  %v4356_v50 = vld [vmem:[#allocation16 + $0xc4] ss:$16 sps:$4 sm:$0xff]  }
 0xd7d   :  { %4103 = vmatprep.mubr.msk.f32.mxu0 %vm1012_vm1, %v5200_v51  ;;  %2296 = vmatpush1.bf16.msra.mxu0 %v4330_v8  ;;  %v4362_v51 = vld [vmem:[#allocation16 + $0xe4] ss:$16 sps:$4 sm:$0xff]  }
 0xd7e   :  { %2297 = vmatprep.subr.bf16.mxu0 %v4338_v17  ;;  %v4388_v17 = vld [vmem:[#allocation17 + $0x28] sm:$0xff]  }
 0xd80   :  { %4104 = vmatmul.mubr.msk.f32.gmra.mrb[62].mxu0 %vm1012_vm1, %v5206_v53  ;;  %v4366_v53 = vld [vmem:[#allocation17 + $0x40] sm:$0xff]  }
 0xd81   :  { %2298 = vmatpush1.bf16.msra.mxu0 %v4336_v28  ;;  %2323 = vmatprep.mubr.bf16.mxu0 %v4820_v0  ;;  %v4389_v28 = vld [vmem:[#allocation17 + $0xa8] sm:$0xff]  }
 0xd82   :  { %2299 = vmatprep.subr.bf16.mxu0 %v4344_v56 }
 0xd85   :  { %2300 = vmatpush1.bf16.msra.mxu0 %v4342_v47  ;;  %v4391_v47 = vld [vmem:[#allocation17 + $0xf0] sm:$0xff]  }
 0xd86   :  { %2301 = vmatprep.subr.bf16.mxu0 %v4350_v48  ;;  %v4393_v48 = vld [vmem:[#allocation17 + $0xb0] sm:$0xff]  }
 0xd89   :  { %2302 = vmatpush1.bf16.msra.mxu0 %v4348_v9  ;;  %v4395_v9 = vld [vmem:[#allocation17 + $0xf8] sm:$0xff]  }
 0xd8a   :  { %2303 = vmatprep.subr.bf16.mxu0 %v4356_v50  ;;  %v4396_v50 = vld [vmem:[#allocation17 + $0x38] sm:$0xff]  }
 0xd8d   :  { %2304 = vmatpush1.bf16.msra.mxu0 %v4354_v10  ;;  %v4397_v10 = vld [vmem:[#allocation17 + $0xb8] sm:$0xff]  }
 0xd8e   :  { %2305 = vmatprep.subr.bf16.mxu0 %v4362_v51 }
 0xd91   :  { %2306 = vmatpush1.bf16.msra.mxu0 %v4360_v12 }
 0xd92   :  { %3734 = vmatprep.subr.bf16.mxu0 %v4366_v53 }
 0xe47   :  { %v4096_v31 = vpop.f32.mrb[56].mxu0 }
 0xe48   :  { %v5357_v20 = vsub.f32 %v5308_v63, %v4096_v31  ;;  %v5360_v35 = vadd.f32 %v4096_v31, %v5210_v14  ;;  %v2040_v36 = vpop.f32.mrb[57].mxu0  ;;  %v4371_v14 = vld [vmem:[#allocation17 + $0xc8] sm:$0xff]  }
 0xe49   :  { %v5363_v37 = vsub.f32 %v5305_v62, %v2040_v36  ;;  %v5366_v39 = vadd.f32 %v2040_v36, %v5216_v16 }
 0xe4b   :  { %v2095_v41 = vpack.c.bf16 %v5357_v20, %v5363_v37  ;;  %v4099_v22 = vpop.f32.mrb[58].mxu0 }
 0xe4c   :  { %v5371_v55 = vadd.f32 %v4099_v22, %v5224_v19  ;;  %v2050_v63 = vpop.f32.mrb[59].mxu0  ;;  %v5379_v16 = vsub.f32 %v5313_v11, %v4099_v22 }
 0xe4d   :  { %v5374_v57 = vadd.f32 %v2050_v63, %v5230_v21  ;;  %2324 = vmatmul.mubr.bf16.vlgmr.msra.gmra.mrb[64].mxu0 %v2095_v41  ;;  %2397 = vmatmul.mubr.bf16.vlgmr.msra.gmra.mrb[56].mxu1 %v2095_v41  ;;  %v5382_v62 = vsub.f32 %v5317_v18, %v2050_v63 }
 0xe4e   :  { %2333 = vmatprep.mubr.bf16.mxu0 %v4820_v0  ;;  %2406 = vmatprep.mubr.bf16.mxu1 %v4820_v0 }
 0xe4f   :  { %v4102_v19 = vpop.f32.mrb[60].mxu0  ;;  %3735 = vmatpush3.bf16.msra.mxu0 %v4368_v43  ;;  %3775 = vmatpush3.bf16.msra.mxu1 %v4369_v54  ;;  %v2096_v11 = vpack.c.bf16 %v5379_v16, %v5382_v62 }
 0xe50   :  { %v5385_v21 = vadd.f32 %v4102_v19, %v5238_v24  ;;  %v2060_v40 = vpop.f32.mrb[61].mxu0  ;;  %3736 = vmatprep.subr.bf16.mxu0 %v4370_v58  ;;  %3776 = vmatprep.subr.bf16.mxu1 %v4371_v14 }
 0xe51   :  { %v5388_v59 = vadd.f32 %v2060_v40, %v5244_v30  ;;  %v5401_v30 = vsub.f32 %v5332_v3, %v4102_v19  ;;  %v4386_v3 = vld [vmem:[#allocation17 + $0x68] sm:$0xff]  }
 0xe53   :  { %v4105_v18 = vpop.f32.mrb[62].mxu0  ;;  %3737 = vmatpush3.bf16.msra.mxu0 %v4372_v60  ;;  %3777 = vmatpush3.bf16.msra.mxu1 %v4373_v38 }
 0xe54   :  { %v5393_v44 = vadd.f32 %v4105_v18, %v5252_v32  ;;  %v2070_v24 = vpop.f32.mrb[63].mxu0  ;;  %3738 = vmatprep.subr.bf16.mxu0 %v4374_v42  ;;  %3778 = vmatprep.subr.bf16.mxu1 %v4375_v52  ;;  %v5404_v32 = vsub.f32 %v5326_v1, %v2060_v40  ;;  %v4387_v1 = vld [vmem:[#allocation17 + $0xe8] sm:$0xff]   ;;  %v5411_v34 = vsub.f32 %v5329_v2, %v4105_v18  ;;  %v4392_v2 = vld [vmem:[#allocation17 + $0x30] sm:$0xff]  }
 0xe55   :  { %v5396_v61 = vadd.f32 %v2070_v24, %v5258_v25  ;;  %2334 = vmatmul.mubr.bf16.gmra.mrb[68].mxu0 %v2096_v11  ;;  %2407 = vmatmul.mubr.bf16.gmra.mrb[60].mxu1 %v2096_v11  ;;  %v4382_v25 = vld [vmem:[#allocation17 + $0x60] sm:$0xff]   ;;  %v5414_v8 = vsub.f32 %v5335_v4, %v2070_v24  ;;  %v4394_v4 = vld [vmem:[#allocation17 + $0x78] sm:$0xff]  }
 0xe56   :  { %2343 = vmatprep.mubr.bf16.mxu0 %v4820_v0  ;;  %2416 = vmatprep.mubr.bf16.mxu1 %v4820_v0  ;;  %v2097_v7 = vpack.c.bf16 %v5401_v30, %v5404_v32 }
 0xe57   :  { %3739 = vmatpush3.bf16.msra.mxu0 %v4376_v46  ;;  %3779 = vmatpush3.bf16.msra.mxu1 %v4377_v49  ;;  %v2098_v56 = vpack.c.bf16 %v5411_v34, %v5414_v8 }
 0xe58   :  { %3740 = vmatprep.subr.bf16.mxu0 %v4378_v45  ;;  %3780 = vmatprep.subr.bf16.mxu1 %v4379_v27 }
 0xe5b   :  { %3741 = vmatpush3.bf16.msra.mxu0 %v4380_v5  ;;  %3781 = vmatpush3.bf16.msra.mxu1 %v4381_v6 }
 0xe5c   :  { %3742 = vmatprep.subr.bf16.mxu0 %v4382_v25  ;;  %3782 = vmatprep.subr.bf16.mxu1 %v4383_v29 }
 0xe5d   :  { %2344 = vmatmul.mubr.bf16.gmra.mrb[72].mxu0 %v2097_v7  ;;  %2417 = vmatmul.mubr.bf16.gmra.mrb[64].mxu1 %v2097_v7 }
 0xe5e   :  { %2353 = vmatprep.mubr.bf16.mxu0 %v4820_v0  ;;  %2426 = vmatprep.mubr.bf16.mxu1 %v4820_v0  ;;  %v4390_v0 = vld [vmem:[#allocation17 + $0x70] sm:$0xff]  }
 0xe5f   :  { %3743 = vmatpush3.bf16.msra.mxu0 %v4384_v33  ;;  %3783 = vmatpush3.bf16.msra.mxu1 %v4385_v26 }
 0xe60   :  { %3744 = vmatprep.subr.bf16.mxu0 %v4386_v3  ;;  %3784 = vmatprep.subr.bf16.mxu1 %v4387_v1 }
 0xe63   :  { %3745 = vmatpush3.bf16.msra.mxu0 %v4388_v17  ;;  %3785 = vmatpush3.bf16.msra.mxu1 %v4389_v28 }
 0xe64   :  { %3746 = vmatprep.subr.bf16.mxu0 %v4390_v0  ;;  %3786 = vmatprep.subr.bf16.mxu1 %v4391_v47 }
 0xe65   :  { %2354 = vmatmul.mubr.bf16.gmra.mrb[76].mxu0 %v2098_v56  ;;  %2427 = vmatmul.mubr.bf16.gmra.mrb[68].mxu1 %v2098_v56 }
 0xe67   :  { %3747 = vmatpush3.bf16.msra.mxu0 %v4392_v2  ;;  %3787 = vmatpush3.bf16.msra.mxu1 %v4393_v48 }
 0xe68   :  { %3748 = vmatprep.subr.bf16.mxu0 %v4394_v4  ;;  %3788 = vmatprep.subr.bf16.mxu1 %v4395_v9 }
 0xe6b   :  { %3749 = vmatpush3.bf16.msra.mxu0 %v4396_v50  ;;  %3789 = vmatpush3.bf16.msra.mxu1 %v4397_v10 }
 0xf20   :  { %v2325_v51 = vpop.f32.mrb[64].mxu0  ;;  %v2398_v15 = vpop.f32.mrb[56].mxu1 }
 0xf21   :  { %v2327_v12 = vpop.f32.mrb[65].mxu0  ;;  %v2400_v13 = vpop.f32.mrb[57].mxu1  ;;  %v2437_v31 = vmax.f32 %v2325_v51, 0.0  ;;  %v2439_v36 = vmax.f32 %v2398_v15, 0.0 }
 0xf22   :  { %v2329_v53 = vpop.f32.mrb[66].mxu0  ;;  %v2402_v23 = vpop.f32.mrb[58].mxu1  ;;  %v2438_v63 = vmax.f32 %v2327_v12, 0.0  ;;  %v2440_v58 = vmax.f32 %v2400_v13, 0.0 }
 0xf23   :  { %v2441_v41 = vmax.f32 %v2329_v53, 0.0  ;;  %v2443_v22 = vmax.f32 %v2402_v23, 0.0  ;;  %v2331_v43 = vpop.f32.mrb[67].mxu0  ;;  %v2404_v54 = vpop.f32.mrb[59].mxu1 }
 0xf24   :  { %v2442_v14 = vmax.f32 %v2331_v43, 0.0  ;;  %v2444_v19 = vmax.f32 %v2404_v54, 0.0 }
 0xf25   :  { %v2469_v60 = vpack.c.bf16 %v2441_v41, %v2437_v31  ;;  %v2471_v38 = vpack.c.bf16 %v2443_v22, %v2439_v36 }
 0xf26   :  { %v2470_v40 = vpack.c.bf16 %v2442_v14, %v2438_v63  ;;  %v2472_v42 = vpack.c.bf16 %v2444_v19, %v2440_v58 }
 0xf28   :  { %v2335_v52 = vpop.f32.mrb[68].mxu0  ;;  %v2408_v11 = vpop.f32.mrb[60].mxu1  ;;  %2773 = vmatprep.mubr.bf16.mxu0 %v2470_v40  ;;  %2838 = vmatprep.mubr.bf16.mxu1 %v2472_v42 }
 0xf29   :  { %v2337_v18 = vpop.f32.mrb[69].mxu0  ;;  %v2410_v46 = vpop.f32.mrb[61].mxu1  ;;  %2774 = vmatmul.mubr.bf16.vlgmr.msra.gmra.mrb[80].mxu0 %v2469_v60  ;;  %2839 = vmatmul.mubr.bf16.vlgmr.msra.gmra.mrb[72].mxu1 %v2471_v38  ;;  %v2445_v45 = vmax.f32 %v2335_v52, 0.0  ;;  %v2447_v27 = vmax.f32 %v2408_v11, 0.0 }
 0xf2a   :  { %v2339_v49 = vpop.f32.mrb[70].mxu0  ;;  %v2412_v24 = vpop.f32.mrb[62].mxu1  ;;  %v2446_v7 = vmax.f32 %v2337_v18, 0.0  ;;  %v2448_v33 = vmax.f32 %v2410_v46, 0.0 }
 0xf2b   :  { %v2449_v5 = vmax.f32 %v2339_v49, 0.0  ;;  %v2451_v6 = vmax.f32 %v2412_v24, 0.0  ;;  %v2341_v25 = vpop.f32.mrb[71].mxu0  ;;  %v2414_v29 = vpop.f32.mrb[63].mxu1 }
 0xf2c   :  { %v2450_v26 = vmax.f32 %v2341_v25, 0.0  ;;  %v2452_v3 = vmax.f32 %v2414_v29, 0.0 }
 0xf2d   :  { %v2473_v1 = vpack.c.bf16 %v2449_v5, %v2445_v45  ;;  %v2475_v17 = vpack.c.bf16 %v2451_v6, %v2447_v27 }
 0xf2e   :  { %v2474_v28 = vpack.c.bf16 %v2450_v26, %v2446_v7  ;;  %v2476_v56 = vpack.c.bf16 %v2452_v3, %v2448_v33  ;;  %v4491_v7 = vld [vmem:[#allocation7] sm:$0xff]  ;;  %v4401_v3 = vld [vmem:[#allocation19 + $0x48] sm:$0xff]  }
 0xf2f   :  { %v4398_v33 = vld [vmem:[#allocation19 + $0x40] sm:$0xff]  }
 0xf30   :  { %v2345_v0 = vpop.f32.mrb[72].mxu0  ;;  %v2418_v47 = vpop.f32.mrb[64].mxu1  ;;  %2781 = vmatprep.mubr.bf16.mxu0 %v2474_v28  ;;  %2846 = vmatprep.mubr.bf16.mxu1 %v2476_v56  ;;  %v4399_v26 = vld [vmem:[#allocation19] sm:$0xff]   ;;  %v4405_v28 = vld [vmem:[#allocation19 + $0x10] sm:$0xff]   ;;  %v4407_v56 = vld [vmem:[#allocation19 + $0x58] sm:$0xff]  }
 0xf31   :  { %v2347_v2 = vpop.f32.mrb[73].mxu0  ;;  %v2420_v48 = vpop.f32.mrb[65].mxu1  ;;  %2782 = vmatmul.mubr.bf16.gmra.mrb[84].mxu0 %v2473_v1  ;;  %2847 = vmatmul.mubr.bf16.gmra.mrb[76].mxu1 %v2475_v17  ;;  %v2453_v50 = vmax.f32 %v2345_v0, 0.0  ;;  %v2455_v10 = vmax.f32 %v2418_v47, 0.0  ;;  %v4402_v1 = vld [vmem:[#allocation19 + $0x8] sm:$0xff]   ;;  %v4404_v17 = vld [vmem:[#allocation19 + $0x50] sm:$0xff]  }
 0xf32   :  { %v2349_v4 = vpop.f32.mrb[74].mxu0  ;;  %v2422_v9 = vpop.f32.mrb[66].mxu1  ;;  %v2454_v53 = vmax.f32 %v2347_v2, 0.0  ;;  %v2456_v23 = vmax.f32 %v2420_v48, 0.0  ;;  %3830 = vmatprep.subr.bf16.mxu1 %v4398_v33  ;;  %v4408_v0 = vld [vmem:[#allocation19 + $0x18] sm:$0xff]   ;;  %v4410_v47 = vld [vmem:[#allocation19 + $0x60] sm:$0xff]  }
 0xf33   :  { %v2457_v51 = vmax.f32 %v2349_v4, 0.0  ;;  %v2459_v15 = vmax.f32 %v2422_v9, 0.0  ;;  %v2351_v12 = vpop.f32.mrb[75].mxu0  ;;  %v2424_v13 = vpop.f32.mrb[67].mxu1  ;;  %3831 = vmatpush3.bf16.msra.mxu1 %v4399_v26  ;;  %v4411_v2 = vld [vmem:[#allocation19 + $0x20] sm:$0xff]  }
 0xf34   :  { %v2458_v31 = vmax.f32 %v2351_v12, 0.0  ;;  %v2460_v36 = vmax.f32 %v2424_v13, 0.0  ;;  %3832 = vmatprep.subr.bf16.mxu1 %v4401_v3 }
 0xf35   :  { %v2477_v41 = vpack.c.bf16 %v2457_v51, %v2453_v50  ;;  %v2479_v22 = vpack.c.bf16 %v2459_v15, %v2455_v10 }
 0xf36   :  { %v2478_v43 = vpack.c.bf16 %v2458_v31, %v2454_v53  ;;  %v2480_v54 = vpack.c.bf16 %v2460_v36, %v2456_v23 }
 0xf37   :  { %3833 = vmatpush3.bf16.msra.mxu1 %v4402_v1 }
 0xf38   :  { %v2355_v63 = vpop.f32.mrb[76].mxu0  ;;  %v2428_v58 = vpop.f32.mrb[68].mxu1  ;;  %2789 = vmatprep.mubr.bf16.mxu0 %v2478_v43  ;;  %2854 = vmatprep.mubr.bf16.mxu1 %v2480_v54 }
 0xf39   :  { %v2357_v14 = vpop.f32.mrb[77].mxu0  ;;  %v2430_v19 = vpop.f32.mrb[69].mxu1  ;;  %2790 = vmatmul.mubr.bf16.gmra.mrb[88].mxu0 %v2477_v41  ;;  %2855 = vmatmul.mubr.bf16.gmra.mrb[80].mxu1 %v2479_v22  ;;  %v2461_v40 = vmax.f32 %v2355_v63, 0.0  ;;  %v2463_v42 = vmax.f32 %v2428_v58, 0.0 }
 0xf3a   :  { %v2359_v60 = vpop.f32.mrb[78].mxu0  ;;  %v2432_v38 = vpop.f32.mrb[70].mxu1  ;;  %v2462_v49 = vmax.f32 %v2357_v14, 0.0  ;;  %v2464_v24 = vmax.f32 %v2430_v19, 0.0  ;;  %3834 = vmatprep.subr.bf16.mxu1 %v4404_v17 }
 0xf3b   :  { %v2465_v52 = vmax.f32 %v2359_v60, 0.0  ;;  %v2467_v11 = vmax.f32 %v2432_v38, 0.0  ;;  %v2361_v18 = vpop.f32.mrb[79].mxu0  ;;  %v2434_v46 = vpop.f32.mrb[71].mxu1  ;;  %3835 = vmatpush3.bf16.msra.mxu1 %v4405_v28 }
 0xf3c   :  { %v2466_v45 = vmax.f32 %v2361_v18, 0.0  ;;  %v2468_v27 = vmax.f32 %v2434_v46, 0.0  ;;  %3836 = vmatprep.subr.bf16.mxu1 %v4407_v56 }
 0xf3d   :  { %v2481_v5 = vpack.c.bf16 %v2465_v52, %v2461_v40  ;;  %v2483_v6 = vpack.c.bf16 %v2467_v11, %v2463_v42 }
 0xf3e   :  { %v2482_v25 = vpack.c.bf16 %v2466_v45, %v2462_v49  ;;  %v2484_v29 = vpack.c.bf16 %v2468_v27, %v2464_v24 }
 0xf3f   :  { %3837 = vmatpush3.bf16.msra.mxu1 %v4408_v0 }
 0xf40   :  { %2797 = vmatprep.mubr.bf16.mxu0 %v2482_v25  ;;  %2862 = vmatprep.mubr.bf16.mxu1 %v2484_v29 }
 0xf41   :  { %2798 = vmatmul.mubr.bf16.gmra.mrb[92].mxu0 %v2481_v5  ;;  %2863 = vmatmul.mubr.bf16.gmra.mrb[84].mxu1 %v2483_v6 }
 0xf42   :  { %4122 = vmatprep.mubr.msk.f32.mxu0 %vm1012_vm1, %v4491_v7  ;;  %3838 = vmatprep.subr.bf16.mxu1 %v4410_v47 }
 0xf43   :  { %3839 = vmatpush3.bf16.msra.mxu1 %v4411_v2 }
 0xffc   :  { %v3750_v48 = vpop.f32.mrb[80].mxu0  ;;  %v3790_v4 = vpop.f32.mrb[72].mxu1 }
 0xffd   :  { %v3751_v9 = vpop.f32.mrb[81].mxu0  ;;  %v3791_v50 = vpop.f32.mrb[73].mxu1 }
 0xffe   :  { %v3752_v10 = vadd.f32 %v3751_v9, %v3750_v48  ;;  %v3792_v51 = vadd.f32 %v3791_v50, %v3790_v4  ;;  %v3753_v15 = vpop.f32.mrb[82].mxu0  ;;  %v3793_v12 = vpop.f32.mrb[74].mxu1 }
 0xfff   :  { %v3754_v13 = vpop.f32.mrb[83].mxu0  ;;  %v3794_v53 = vpop.f32.mrb[75].mxu1 }
0x1000   :  { %v2841_v23 = vadd.f32 %v3792_v51, %v3752_v10  ;;  %v3755_v31 = vadd.f32 %v3754_v13, %v3753_v15  ;;  %v3795_v36 = vadd.f32 %v3794_v53, %v3793_v12 }
0x1002   :  { %v2844_v41 = vadd.f32 %v3795_v36, %v3755_v31  ;;  %v5420_v22 = vadd.f32 %v2841_v23, %v5363_v37 }
0x1004   :  { %v5423_v43 = vadd.f32 %v2844_v41, %v5357_v20  ;;  %v3756_v54 = vpop.f32.mrb[84].mxu0  ;;  %v3796_v63 = vpop.f32.mrb[76].mxu1 }
0x1005   :  { %v3757_v58 = vpop.f32.mrb[85].mxu0  ;;  %v3797_v14 = vpop.f32.mrb[77].mxu1 }
0x1006   :  { %v3758_v19 = vadd.f32 %v3757_v58, %v3756_v54  ;;  %v3798_v60 = vadd.f32 %v3797_v14, %v3796_v63  ;;  %v3759_v38 = vpop.f32.mrb[86].mxu0  ;;  %v3799_v40 = vpop.f32.mrb[78].mxu1  ;;  %v4190_v42 = vpack.c.bf16 %v5423_v43, %v5420_v22  ;;  %v4400_v54 = vld [vmem:[#allocation19 + $0x80] sm:$0xff]   ;;  %v4403_v63 = vld [vmem:[#allocation19 + $0x88] sm:$0xff]   ;;  %v4493_v14 = vld [vmem:[#allocation7 + $0x10] sm:$0xff] }
0x1007   :  { %v3760_v52 = vpop.f32.mrb[87].mxu0  ;;  %v3800_v11 = vpop.f32.mrb[79].mxu1  ;;  %v4492_v58 = vld [vmem:[#allocation7 + $0x8] sm:$0xff] }
0x1008   :  { %v2849_v18 = vadd.f32 %v3798_v60, %v3758_v19  ;;  %v3761_v46 = vadd.f32 %v3760_v52, %v3759_v38  ;;  %v3801_v37 = vadd.f32 %v3800_v11, %v3799_v40  ;;  %4191 = vmatprep.subr.bf16.mxu0 %v4190_v42  ;;  %v4494_v19 = vld [vmem:[#allocation7 + $0x18] sm:$0xff]  ;;  %v4496_v38 = vld [vmem:[#allocation7 + $0x28] sm:$0xff]  ;;  %v4497_v40 = vld [vmem:[#allocation7 + $0x30] sm:$0xff] }
0x1009   :  { %4193 = vmatpush3.bf16.msra.mxu0 %v4190_v42  ;;  %v4409_v60 = vld [vmem:[#allocation19 + $0x98] sm:$0xff]   ;;  %v4412_v42 = vld [vmem:[#allocation19 + $0xa0] sm:$0xff]   ;;  %v4413_v11 = vld [vmem:[#allocation19 + $0x68] sm:$0xff]  }
0x100a   :  { %v2852_v20 = vadd.f32 %v3801_v37, %v3761_v46  ;;  %v5428_v49 = vadd.f32 %v2849_v18, %v5382_v62  ;;  %v4498_v52 = vld [vmem:[#allocation7 + $0x38] sm:$0xff]  ;;  %v4414_v18 = vld [vmem:[#allocation19 + $0x28] sm:$0xff]   ;;  %3840 = vmatprep.subr.bf16.mxu1 %v4413_v11  ;;  %v4416_v37 = vld [vmem:[#allocation19 + $0x70] sm:$0xff]  }
0x100b   :  { %v4415_v46 = vld [vmem:[#allocation19 + $0xa8] sm:$0xff]   ;;  %3841 = vmatpush3.bf16.msra.mxu1 %v4414_v18 }
0x100c   :  { %v5431_v24 = vadd.f32 %v2852_v20, %v5379_v16  ;;  %v3762_v45 = vpop.f32.mrb[88].mxu0  ;;  %v3802_v27 = vpop.f32.mrb[80].mxu1  ;;  %v4417_v20 = vld [vmem:[#allocation19 + $0x30] sm:$0xff]   ;;  %3842 = vmatprep.subr.bf16.mxu1 %v4416_v37 }
0x100d   :  { %v3763_v5 = vpop.f32.mrb[89].mxu0  ;;  %v3803_v6 = vpop.f32.mrb[81].mxu1 }
0x100e   :  { %v3764_v25 = vadd.f32 %v3763_v5, %v3762_v45  ;;  %v3804_v29 = vadd.f32 %v3803_v6, %v3802_v27  ;;  %v3765_v7 = vpop.f32.mrb[90].mxu0  ;;  %v3805_v33 = vpop.f32.mrb[82].mxu1  ;;  %v4194_v26 = vpack.c.bf16 %v5431_v24, %v5428_v49  ;;  %v4418_v45 = vld [vmem:[#allocation19 + $0xb0] sm:$0xff]   ;;  %v4419_v27 = vld [vmem:[#allocation19 + $0x78] sm:$0xff]  }
0x100f   :  { %v3766_v3 = vpop.f32.mrb[91].mxu0  ;;  %v3806_v1 = vpop.f32.mrb[83].mxu1  ;;  %3843 = vmatpush3.bf16.msra.mxu1 %v4417_v20  ;;  %v4420_v5 = vld [vmem:[#allocation19 + $0x38] sm:$0xff]  }
0x1010   :  { %v2857_v17 = vadd.f32 %v3804_v29, %v3764_v25  ;;  %v3767_v28 = vadd.f32 %v3766_v3, %v3765_v7  ;;  %v3807_v62 = vadd.f32 %v3806_v1, %v3805_v33  ;;  %4195 = vmatprep.subr.bf16.mxu0 %v4194_v26  ;;  %3844 = vmatprep.subr.bf16.mxu1 %v4419_v27  ;;  %v4421_v6 = vld [vmem:[#allocation19 + $0xb8] sm:$0xff]   ;;  %v3004_v25 = vlaneseq }
0x1011   :  { %4197 = vmatpush3.bf16.msra.mxu0 %v4194_v26 }
0x1012   :  { %v2860_v16 = vadd.f32 %v3807_v62, %v3767_v28  ;;  %v5436_v56 = vadd.f32 %v2857_v17, %v5404_v32  ;;  %v5458_v29 = vshrl.u32 %v3004_v25, 7 }
0x1013   :  { %3845 = vmatpush3.bf16.msra.mxu1 %v4420_v5 }
0x1014   :  { %v5439_v0 = vadd.f32 %v2860_v16, %v5401_v30  ;;  %v3768_v47 = vpop.f32.mrb[92].mxu0  ;;  %v3808_v2 = vpop.f32.mrb[84].mxu1  ;;  %vm3006_vm3 = vcmp.lt.s32.totalorder %v5458_v29, 1  ;;  %vm3015_vm4 = vcmp.lt.s32.totalorder %v5458_v29, 7 }
0x1015   :  { %v3769_v48 = vpop.f32.mrb[93].mxu0  ;;  %v3809_v4 = vpop.f32.mrb[85].mxu1 }
0x1016   :  { %v3770_v9 = vadd.f32 %v3769_v48, %v3768_v47  ;;  %v3810_v50 = vadd.f32 %v3809_v4, %v3808_v2  ;;  %v3771_v10 = vpop.f32.mrb[94].mxu0  ;;  %v3811_v51 = vpop.f32.mrb[86].mxu1  ;;  %v4198_v15 = vpack.c.bf16 %v5439_v0, %v5436_v56 }
0x1017   :  { %v3772_v12 = vpop.f32.mrb[95].mxu0  ;;  %v3812_v13 = vpop.f32.mrb[87].mxu1 }
0x1018   :  { %v2865_v53 = vadd.f32 %v3810_v50, %v3770_v9  ;;  %v3773_v23 = vadd.f32 %v3772_v12, %v3771_v10  ;;  %v3813_v32 = vadd.f32 %v3812_v13, %v3811_v51  ;;  %4199 = vmatprep.subr.bf16.mxu0 %v4198_v15 }
0x1019   :  { %4201 = vmatpush3.bf16.msra.mxu0 %v4198_v15 }
0x101a   :  { %v2868_v30 = vadd.f32 %v3813_v32, %v3773_v23  ;;  %v5444_v31 = vadd.f32 %v2865_v53, %v5414_v8  ;;  %v4406_v8 = vld [vmem:[#allocation19 + $0x90] sm:$0xff]  }
0x101c   :  { %v5447_v36 = vadd.f32 %v2868_v30, %v5411_v34  ;;  %v4495_v34 = vld [vmem:[#allocation7 + $0x20] sm:$0xff] }
0x101e   :  { %v4202_v41 = vpack.c.bf16 %v5447_v36, %v5444_v31 }
0x1020   :  { %4203 = vmatprep.subr.bf16.mxu0 %v4202_v41 }
0x1021   :  { %4205 = vmatpush3.bf16.msra.mxu0 %v4202_v41 }
0x1022   :  { %4134 = vmatprep.subr.bf16.mxu0 %v4400_v54 }
0x1024   :  { %4123 = vmatmul.mubr.msk.f32.vlgmr.msra.gmra.mrb[96].mxu0 %vm1012_vm1, %v4492_v58 }
0x1025   :  { %4125 = vmatprep.mubr.msk.f32.mxu0 %vm1012_vm1, %v4493_v14  ;;  %4135 = vmatpush3.bf16.msra.mxu0 %v4400_v54 }
0x1026   :  { %4136 = vmatprep.subr.bf16.mxu0 %v4403_v63 }
0x1028   :  { %4126 = vmatmul.mubr.msk.f32.gmra.mrb[98].mxu0 %vm1012_vm1, %v4494_v19 }
0x1029   :  { %4128 = vmatprep.mubr.msk.f32.mxu0 %vm1012_vm1, %v4495_v34  ;;  %4137 = vmatpush3.bf16.msra.mxu0 %v4403_v63 }
0x102a   :  { %4138 = vmatprep.subr.bf16.mxu0 %v4406_v8 }
0x102c   :  { %4129 = vmatmul.mubr.msk.f32.gmra.mrb[100].mxu0 %vm1012_vm1, %v4496_v38 }
0x102d   :  { %4131 = vmatprep.mubr.msk.f32.mxu0 %vm1012_vm1, %v4497_v40  ;;  %4139 = vmatpush3.bf16.msra.mxu0 %v4406_v8 }
0x102e   :  { %4140 = vmatprep.subr.bf16.mxu0 %v4409_v60 }
0x1030   :  { %4132 = vmatmul.mubr.msk.f32.gmra.mrb[102].mxu0 %vm1012_vm1, %v4498_v52 }
0x1031   :  { %4141 = vmatpush3.bf16.msra.mxu0 %v4409_v60 }
0x1032   :  { %4142 = vmatprep.subr.bf16.mxu0 %v4412_v42 }
0x1035   :  { %4143 = vmatpush3.bf16.msra.mxu0 %v4412_v42 }
0x1036   :  { %4144 = vmatprep.subr.bf16.mxu0 %v4415_v46 }
0x1039   :  { %4145 = vmatpush3.bf16.msra.mxu0 %v4415_v46 }
0x103a   :  { %4146 = vmatprep.subr.bf16.mxu0 %v4418_v45 }
0x103d   :  { %4147 = vmatpush3.bf16.msra.mxu0 %v4418_v45 }
0x103e   :  { %4148 = vmatprep.subr.bf16.mxu0 %v4421_v6 }
0x1041   :  { %4149 = vmatpush3.bf16.msra.mxu0 %v4421_v6 }
0x10f7   :  { %v4124_v7 = vpop.f32.mrb[96].mxu0 }
0x10f8   :  { %v2985_v33 = vsub.f32 %v5423_v43, %v4124_v7  ;;  %v2993_v26 = vadd.f32 %v4124_v7, %v5360_v35  ;;  %v2945_v3 = vpop.f32.mrb[97].mxu0 }
0x10f9   :  { %v2984_v1 = vsub.f32 %v5420_v22, %v2945_v3  ;;  %v2992_v17 = vadd.f32 %v2945_v3, %v5366_v39 }
0x10fa   :  { %v3001_v28 = vrot.slane %v2993_v26, 7  ;;  %v3012_v62 = vrot.slane %v2993_v26, 1  ;;  %3371 = vst [vmem:[#allocation20 + $0x8] sm:$0xff] %v2985_v33 }
0x10fb   :  { %v3000_v16 = vrot.slane %v2992_v17, 7  ;;  %v3011_v47 = vrot.slane %v2992_v17, 1  ;;  %3370 = vst [vmem:[#allocation20] sm:$0xff] %v2984_v1  ;;  %v4127_v2 = vpop.f32.mrb[98].mxu0  ;;  %v3037_v48 = vpack.c.bf16 %v2993_v26, %v2992_v17 }
0x10fc   :  { %v2987_v43 = vsub.f32 %v5431_v24, %v4127_v2  ;;  %v2995_v35 = vadd.f32 %v4127_v2, %v5371_v55  ;;  %v2955_v4 = vpop.f32.mrb[99].mxu0 }
0x10fd   :  { %v3009_v39 = vsel %vm3006_vm3, %v3000_v16, %v3001_v28  ;;  %v2986_v22 = vsub.f32 %v5428_v49, %v2955_v4  ;;  %v2994_v9 = vadd.f32 %v2955_v4, %v5374_v57  ;;  %3272 = vmatprep.mubr.bf16.mxu1 %v3037_v48  ;;  %v3018_v50 = vsel %vm3015_vm4, %v3011_v47, %v3012_v62 }
0x10fe   :  { %v3003_v10 = vrot.slane %v2995_v35, 7  ;;  %v3014_v51 = vrot.slane %v2995_v35, 1  ;;  %3373 = vst [vmem:[#allocation20 + $0x18] sm:$0xff] %v2987_v43 }
0x10ff   :  { %v3002_v15 = vrot.slane %v2994_v9, 7  ;;  %v3013_v12 = vrot.slane %v2994_v9, 1  ;;  %3372 = vst [vmem:[#allocation20 + $0x10] sm:$0xff] %v2986_v22  ;;  %v4130_v24 = vpop.f32.mrb[100].mxu0  ;;  %v3040_v55 = vpack.c.bf16 %v2995_v35, %v2994_v9 }
0x1100   :  { %v3010_v13 = vsel %vm3006_vm3, %v3003_v10, %v3000_v16  ;;  %v3019_v49 = vsel %vm3015_vm4, %v3014_v51, %v3011_v47  ;;  %v2989_v57 = vsub.f32 %v5439_v0, %v4130_v24  ;;  %v2997_v53 = vadd.f32 %v4130_v24, %v5385_v21  ;;  %v2965_v23 = vpop.f32.mrb[101].mxu0 }
0x1101   :  { %v3036_v32 = vpack.c.bf16 %v3009_v39, %v3010_v13  ;;  %v3016_v30 = vsel %vm3015_vm4, %v3013_v12, %v3014_v51  ;;  %v2988_v41 = vsub.f32 %v5436_v56, %v2965_v23  ;;  %v2996_v54 = vadd.f32 %v2965_v23, %v5388_v59 }
0x1102   :  { %v3041_v63 = vpack.c.bf16 %v3019_v49, %v3016_v30  ;;  %v3021_v58 = vrot.slane %v2997_v53, 7  ;;  %v3029_v14 = vrot.slane %v2997_v53, 1  ;;  %3375 = vst [vmem:[#allocation20 + $0x28] sm:$0xff] %v2989_v57  ;;  %v3017_v8 = vsel %vm3015_vm4, %v3012_v62, %v3013_v12 }
0x1103   :  { %v3020_v19 = vrot.slane %v2996_v54, 7  ;;  %v3028_v0 = vrot.slane %v2996_v54, 1  ;;  %3374 = vst [vmem:[#allocation20 + $0x20] sm:$0xff] %v2988_v41  ;;  %v4133_v21 = vpop.f32.mrb[102].mxu0  ;;  %3273 = vmatmul.mubr.bf16.vlgmr.msra.gmra.mrb[88].mxu1 %v3036_v32  ;;  %v3038_v34 = vpack.c.bf16 %v3017_v8, %v3018_v50  ;;  %v3007_v60 = vsel %vm3006_vm3, %v3002_v15, %v3003_v10 }
0x1104   :  { %v2991_v56 = vsub.f32 %v5447_v36, %v4133_v21  ;;  %v2999_v59 = vadd.f32 %v4133_v21, %v5393_v44  ;;  %v2975_v38 = vpop.f32.mrb[103].mxu0  ;;  %3280 = vmatprep.mubr.bf16.mxu1 %v3040_v55  ;;  %v3008_v40 = vsel %vm3006_vm3, %v3001_v28, %v3002_v15  ;;  %v3043_v42 = vpack.c.bf16 %v2997_v53, %v2996_v54 }
0x1105   :  { %v2990_v52 = vsub.f32 %v5444_v31, %v2975_v38  ;;  %v2998_v11 = vadd.f32 %v2975_v38, %v5396_v61  ;;  %4150 = vmatprep.mubr.bf16.mxu0 %v3038_v34  ;;  %v3039_v18 = vpack.c.bf16 %v3007_v60, %v3008_v40  ;;  %v3034_v46 = vsel %vm3015_vm4, %v3028_v0, %v3029_v14 }
0x1106   :  { %v3023_v37 = vrot.slane %v2999_v59, 7  ;;  %v3031_v20 = vrot.slane %v2999_v59, 1  ;;  %3377 = vst [vmem:[#allocation20 + $0x38] sm:$0xff] %v2991_v56  ;;  %4151 = vmatmul.mubr.bf16.vlgmr.msra.gmra.mrb[104].mxu0 %v3041_v63  ;;  %v3026_v44 = vsel %vm3006_vm3, %v3020_v19, %v3021_v58 }
0x1107   :  { %v3022_v36 = vrot.slane %v2998_v11, 7  ;;  %v3030_v45 = vrot.slane %v2998_v11, 1  ;;  %3376 = vst [vmem:[#allocation20 + $0x30] sm:$0xff] %v2990_v52  ;;  %v3046_v27 = vpack.c.bf16 %v2999_v59, %v2998_v11 }
0x1108   :  { %v3035_v31 = vsel %vm3015_vm4, %v3031_v20, %v3028_v0  ;;  %v3027_v61 = vsel %vm3006_vm3, %v3023_v37, %v3020_v19 }
0x1109   :  { %v3033_v5 = vsel %vm3015_vm4, %v3029_v14, %v3030_v45  ;;  %v3032_v6 = vsel %vm3015_vm4, %v3030_v45, %v3031_v20  ;;  %v3042_v25 = vpack.c.bf16 %v3026_v44, %v3027_v61  ;;  %v3024_v7 = vsel %vm3006_vm3, %v3022_v36, %v3023_v37 }
0x110a   :  { %v3044_v33 = vpack.c.bf16 %v3033_v5, %v3034_v46  ;;  %v3047_v26 = vpack.c.bf16 %v3035_v31, %v3032_v6  ;;  %v3025_v3 = vsel %vm3006_vm3, %v3021_v58, %v3022_v36 }
0x110b   :  { %3281 = vmatmul.mubr.bf16.gmra.mrb[92].mxu1 %v3039_v18  ;;  %v3045_v1 = vpack.c.bf16 %v3024_v7, %v3025_v3 }
0x110c   :  { %3288 = vmatprep.mubr.bf16.mxu1 %v3043_v42  ;;  %4154 = vmatprep.mubr.bf16.mxu0 %v3044_v33 }
0x110e   :  { %4155 = vmatmul.mubr.bf16.gmra.mrb[108].mxu0 %v3047_v26 }
0x1113   :  { %3289 = vmatmul.mubr.bf16.gmra.mrb[96].mxu1 %v3042_v25 }
0x1114   :  { %3296 = vmatprep.mubr.bf16.mxu1 %v3046_v27 }
0x111b   :  { %3297 = vmatmul.mubr.bf16.gmra.mrb[100].mxu1 %v3045_v1 }
0x111c   :  { %4752 = shalt.err (!%p4749_p8)
}
0x111d   :  { %s4753_s23 = scalar_lea.hbm %s5551_s11, 1024 }
0x111e   :  { %p4754_p9 = scmp.ne.s32.totalorder %s5551_s11, %s4753_s23  ;;  %p4757_p10 = scmp.lt.u32.totalorder %s4753_s23, %s5551_s11 }
0x1120   :  { %p4759_p11 = pnand %p4757_p10, %p4754_p9 }
0x1122   :  { %4762 = shalt.err (!%p4759_p11)
}
0x1123   :  { %3397 = dma.vmem_to_hbm [thread:$0]  %s3392_s15, 1024, %s5551_s11, [#allocation4], %s4812_s0, %s4812_s0, %s4813_s26  }
0x1124   :  { %s4822_s11 = smov [#allocation21]  }
0x1125   :  { %s3403_s14 = sshll.u32 %s4822_s11, 4  ;;  %s3404_s14 = int_to_ptr.vmem [resolvable:$true] %s3403_s14 }
0x1126   :  { %s4763_s1 = scalar_lea.vmem %s3404_s14, 1024  ;;  %p4768_p13 = scmp.lt.s32.totalorder %s3404_s14, %s3404_s14 }
0x1127   :  { %p4764_p12 = scmp.ne.s32.totalorder %s3404_s14, %s4763_s1  ;;  %p4769_p0 = scmp.lt.s32.totalorder %s4763_s1, %s4763_s1 }
0x1129   :  { %p4770_p1 = por %p4769_p0, %p4768_p13 }
0x112b   :  { %p4771_p2 = pnand %p4770_p1, %p4764_p12 }
0x11d6   :  { %v3846_v29 = vpop.f32.mrb[88].mxu1 }
0x11d7   :  { %v3847_v17 = vpop.f32.mrb[89].mxu1 }
0x11d8   :  { %v3848_v28 = vadd.f32 %v3847_v17, %v3846_v29  ;;  %v3849_v62 = vpop.f32.mrb[90].mxu1 }
0x11d9   :  { %v4152_v16 = vpop.f32.mrb[104].mxu0  ;;  %v3850_v47 = vpop.f32.mrb[91].mxu1 }
0x11da   :  { %v3851_v2 = vadd.f32 %v3850_v47, %v3849_v62  ;;  %v3339_v48 = vpop.f32.mrb[105].mxu0 }
0x11db   :  { %v3340_v43 = vadd.f32 %v3848_v28, %v3339_v48  ;;  %v4153_v35 = vpop.f32.mrb[106].mxu0 }
0x11dc   :  { %v3342_v4 = vpop.f32.mrb[107].mxu0 }
0x11dd   :  { %3378 = vst [vmem:[#allocation21] sm:$0xff] %v3340_v43  ;;  %v3343_v39 = vadd.f32 %v3851_v2, %v3342_v4 }
0x11de   :  { %v3852_v22 = vpop.f32.mrb[92].mxu1 }
0x11df   :  { %3379 = vst [vmem:[#allocation21 + $0x8] sm:$0xff] %v3343_v39  ;;  %v3853_v9 = vpop.f32.mrb[93].mxu1 }
0x11e0   :  { %v3854_v50 = vadd.f32 %v3853_v9, %v3852_v22  ;;  %v3855_v10 = vpop.f32.mrb[94].mxu1 }
0x11e1   :  { %v4156_v51 = vpop.f32.mrb[108].mxu0  ;;  %v3856_v15 = vpop.f32.mrb[95].mxu1 }
0x11e2   :  { %v3348_v12 = vadd.f32 %v4152_v16, %v3854_v50  ;;  %v3857_v24 = vadd.f32 %v3856_v15, %v3855_v10  ;;  %v3355_v55 = vpop.f32.mrb[109].mxu0 }
0x11e3   :  { %v4157_v13 = vpop.f32.mrb[110].mxu0 }
0x11e4   :  { %3380 = vst [vmem:[#allocation21 + $0x10] sm:$0xff] %v3348_v12  ;;  %v3351_v49 = vadd.f32 %v4153_v35, %v3857_v24  ;;  %v3358_v57 = vpop.f32.mrb[111].mxu0 }
0x11e6   :  { %3381 = vst [vmem:[#allocation21 + $0x18] sm:$0xff] %v3351_v49  ;;  %v3858_v53 = vpop.f32.mrb[96].mxu1 }
0x11e7   :  { %v3859_v23 = vpop.f32.mrb[97].mxu1 }
0x11e8   :  { %v3860_v32 = vadd.f32 %v3859_v23, %v3858_v53  ;;  %v3861_v30 = vpop.f32.mrb[98].mxu1 }
0x11e9   :  { %v3862_v41 = vpop.f32.mrb[99].mxu1 }
0x11ea   :  { %v3356_v54 = vadd.f32 %v3860_v32, %v3355_v55  ;;  %v3863_v63 = vadd.f32 %v3862_v41, %v3861_v30 }
0x11ec   :  { %3382 = vst [vmem:[#allocation21 + $0x20] sm:$0xff] %v3356_v54  ;;  %v3359_v58 = vadd.f32 %v3863_v63, %v3358_v57 }
0x11ee   :  { %3383 = vst [vmem:[#allocation21 + $0x28] sm:$0xff] %v3359_v58  ;;  %v3864_v14 = vpop.f32.mrb[100].mxu1 }
0x11ef   :  { %v3865_v8 = vpop.f32.mrb[101].mxu1 }
0x11f0   :  { %v3866_v19 = vadd.f32 %v3865_v8, %v3864_v14  ;;  %v3867_v0 = vpop.f32.mrb[102].mxu1 }
0x11f1   :  { %v3868_v21 = vpop.f32.mrb[103].mxu1 }
0x11f2   :  { %v3364_v34 = vadd.f32 %v4156_v51, %v3866_v19  ;;  %v3869_v60 = vadd.f32 %v3868_v21, %v3867_v0 }
0x11f4   :  { %3384 = vst [vmem:[#allocation21 + $0x30] sm:$0xff] %v3364_v34  ;;  %v3367_v56 = vadd.f32 %v4157_v13, %v3869_v60 }
0x11f6   :  { %3385 = vst [vmem:[#allocation21 + $0x38] sm:$0xff] %v3367_v56 }
0x11f7   :  { %4774 = shalt.err (!%p4771_p2)
}
0x11f8   :  { %s4775_s7 = scalar_lea.hbm %s5552_s12, 1024 }
0x11f9   :  { %p4776_p3 = scmp.ne.s32.totalorder %s5552_s12, %s4775_s7  ;;  %p4779_p4 = scmp.lt.u32.totalorder %s4775_s7, %s5552_s12 }
0x11fb   :  { %p4781_p5 = pnand %p4779_p4, %p4776_p3 }
0x11fd   :  { %4784 = shalt.err (!%p4781_p5)
}
0x11fe   :  { %3409 = dma.vmem_to_hbm [thread:$0]  %s3404_s14, 1024, %s5552_s12, [#allocation22], %s4812_s0, %s4812_s0, %s4813_s26  }
0x11ff   :  { %4797 = dma.done.wait [#allocation4], 1024  }
0x1200   :  { %4798 = vsyncadd [#allocation4], 4294966272 }
0x1201   :  { %4799 = dma.done.wait [#allocation22], 1024  }
0x1202   :  { %4800 = vsyncadd [#allocation22], 4294966272 }
0x1203   :  { %3416 = vsyncpa [#allocation3], 1 }
0x1204   :  { %3417 = vsyncpa [#allocation6], 1 }
0x1205   :  { %3418 = vsyncpa [#allocation9], 1 }
0x1206   :  { %3419 = vsyncpa [#allocation12], 1 }
0x1207   :  { %3420 = vsyncpa [#allocation15], 1 }
0x1208   :  { %3421 = vsyncpa [#allocation18], 1 }
0x1209   :  { %3422 = vsyncpa [#allocation4], 1 }
0x120a   :  { %3423 = vsyncpa [#allocation22], 1 }

// kernel: tpu_custom_call.1
= control target key start
LH: loop header
LB: loop body
LE: loop exit
PB: predicated region body
PF: predicated region fallthrough
CT: control target
= control target key end

     0   :  { %18 = vsyncpa [#allocation3], 0  ;;  %s5540_s0 = inlined_call_operand.hbm [shape: bf16[64,128], index: 0, kind: input, shape index: {}]   ;;  %s5541_s1 = inlined_call_operand.hbm [shape: bf16[96,128], index: 1, kind: input, shape index: {}]   ;;  %s5542_s2 = inlined_call_operand.hbm [shape: f32[64,64], index: 2, kind: input, shape index: {}]   ;;  %s5543_s3 = inlined_call_operand.hbm [shape: bf16[128,384], index: 3, kind: input, shape index: {}]   ;;  %s5544_s4 = inlined_call_operand.hbm [shape: bf16[128,128], index: 4, kind: input, shape index: {}]   ;;  %s5545_s5 = inlined_call_operand.hbm [shape: bf16[128,128], index: 5, kind: input, shape index: {}]   ;;  %s5546_s6 = inlined_call_operand.hbm [shape: bf16[128,256], index: 6, kind: input, shape index: {}]   ;;  %s5547_s7 = inlined_call_operand.hbm [shape: bf16[128,128], index: 7, kind: input, shape index: {}]   ;;  %s5548_s8 = inlined_call_operand.hbm [shape: bf16[128,512], index: 8, kind: input, shape index: {}]   ;;  %s5549_s9 = inlined_call_operand.hbm [shape: bf16[512,128], index: 9, kind: input, shape index: {}]   ;;  %s5550_s10 = inlined_call_operand.hbm [shape: bf16[384,128], index: 10, kind: input, shape index: {}]   ;;  %s5551_s11 = inlined_call_operand.hbm [shape: f32[64,128], index: 11, kind: output, shape index: {0}]   ;;  %s5552_s12 = inlined_call_operand.hbm [shape: f32[64,128], index: 12, kind: output, shape index: {1}]  }
   0x1   :  { %19 = vsyncpa [#allocation6], 0 }
   0x2   :  { %20 = vsyncpa [#allocation9], 0 }
   0x3   :  { %21 = vsyncpa [#allocation12], 0 }
   0x4   :  { %22 = vsyncpa [#allocation15], 0 }
   0x5   :  { %23 = vsyncpa [#allocation18], 0 }
   0x6   :  { %24 = vsyncpa [#allocation4], 0 }
   0x7   :  { %25 = vsyncpa [#allocation22], 0  ;;  %s4801_s21 = smov [#allocation5]   ;;  %s4802_s23 = smov [#allocation8]  }
   0x8   :  { %s43_s22 = sshll.u32 %s4801_s21, 4  ;;  %s67_s24 = sshll.u32 %s4802_s23, 4  ;;  %s44_s22 = int_to_ptr.vmem [resolvable:$true] %s43_s22  ;;  %s4888_s24 = int_to_ptr.vmem [resolvable:$true] %s67_s24 }
   0x9   :  { %s4499_s27 = scalar_lea.hbm %s5541_s1, 768 }
   0xa   :  { %p4500_p0 = scmp.ne.s32.totalorder %s5541_s1, %s4499_s27  ;;  %p4503_p1 = scmp.lt.u32.totalorder %s4499_s27, %s5541_s1 }
   0xc   :  { %p4505_p2 = pnand %p4503_p1, %p4500_p0 }
   0xe   :  { %4508 = shalt.err (!%p4505_p2)
}
   0xf   :  { %s4509_s14 = scalar_lea.vmem %s44_s22, 768  ;;  %p4514_p4 = scmp.lt.s32.totalorder %s44_s22, %s44_s22 }
  0x10   :  { %p4510_p3 = scmp.ne.s32.totalorder %s44_s22, %s4509_s14  ;;  %p4515_p5 = scmp.lt.s32.totalorder %s4509_s14, %s4509_s14 }
  0x12   :  { %p4516_p6 = por %p4515_p5, %p4514_p4 }
  0x14   :  { %p4517_p7 = pnand %p4516_p6, %p4510_p3 }
  0x16   :  { %4520 = shalt.err (!%p4517_p7)
}
  0x17   :  { %s4803_s15 = smov 64   ;;  %s4804_s16 = smov 4  }
  0x18   :  { %49 = dma.hbm_to_vmem [thread:$0]  %s5541_s1, 768, %s44_s22, [#allocation6], %s4803_s15, %s4803_s15, %s4804_s16  }
  0x19   :  { %s4521_s21 = scalar_lea.hbm %s5543_s3, 3072 }
  0x1a   :  { %p4522_p8 = scmp.ne.s32.totalorder %s5543_s3, %s4521_s21  ;;  %p4525_p9 = scmp.lt.u32.totalorder %s4521_s21, %s5543_s3 }
  0x1c   :  { %p4527_p10 = pnand %p4525_p9, %p4522_p8 }
  0x1e   :  { %4530 = shalt.err (!%p4527_p10)
}
  0x1f   :  { %s4531_s28 = scalar_lea.vmem %s4888_s24, 3072  ;;  %p4536_p12 = scmp.lt.s32.totalorder %s4888_s24, %s4888_s24 }
  0x20   :  { %p4532_p11 = scmp.ne.s32.totalorder %s4888_s24, %s4531_s28  ;;  %p4537_p13 = scmp.lt.s32.totalorder %s4531_s28, %s4531_s28 }
  0x22   :  { %p4538_p0 = por %p4537_p13, %p4536_p12 }
  0x24   :  { %p4539_p1 = pnand %p4538_p0, %p4532_p11 }
  0x26   :  { %4542 = shalt.err (!%p4539_p1)
}
  0x27   :  { %s4805_s1 = smov 192   ;;  %s4806_s22 = smov 12  }
  0x28   :  { %73 = dma.hbm_to_vmem [thread:$0]  %s5543_s3, 3072, %s4888_s24, [#allocation9], %s4805_s1, %s4805_s1, %s4806_s22  }
  0x29   :  { %s4807_s13 = smov [#allocation11]   ;;  %s4808_s17 = smov [#allocation14]  }
  0x2a   :  { %s91_s14 = sshll.u32 %s4807_s13, 4  ;;  %s115_s18 = sshll.u32 %s4808_s17, 4  ;;  %s92_s14 = int_to_ptr.vmem [resolvable:$true] %s91_s14  ;;  %s4922_s18 = int_to_ptr.vmem [resolvable:$true] %s115_s18 }
  0x2b   :  { %s4543_s21 = scalar_lea.hbm %s5545_s5, 1024 }
  0x2c   :  { %p4544_p2 = scmp.ne.s32.totalorder %s5545_s5, %s4543_s21  ;;  %p4547_p3 = scmp.lt.u32.totalorder %s4543_s21, %s5545_s5 }
  0x2e   :  { %p4549_p4 = pnand %p4547_p3, %p4544_p2 }
  0x30   :  { %4552 = shalt.err (!%p4549_p4)
}
  0x31   :  { %s4553_s3 = scalar_lea.vmem %s92_s14, 1024  ;;  %p4558_p6 = scmp.lt.s32.totalorder %s92_s14, %s92_s14 }
  0x32   :  { %p4554_p5 = scmp.ne.s32.totalorder %s92_s14, %s4553_s3  ;;  %p4559_p7 = scmp.lt.s32.totalorder %s4553_s3, %s4553_s3 }
  0x34   :  { %p4560_p8 = por %p4559_p7, %p4558_p6 }
  0x36   :  { %p4561_p9 = pnand %p4560_p8, %p4554_p5 }
  0x38   :  { %4564 = shalt.err (!%p4561_p9)
}
  0x39   :  { %97 = dma.hbm_to_vmem [thread:$0]  %s5545_s5, 1024, %s92_s14, [#allocation12], %s4803_s15, %s4803_s15, %s4804_s16  }
  0x3a   :  { %s4565_s29 = scalar_lea.hbm %s5547_s7, 1024 }
  0x3b   :  { %p4566_p10 = scmp.ne.s32.totalorder %s5547_s7, %s4565_s29  ;;  %p4569_p11 = scmp.lt.u32.totalorder %s4565_s29, %s5547_s7 }
  0x3d   :  { %p4571_p12 = pnand %p4569_p11, %p4566_p10 }
  0x3f   :  { %4574 = shalt.err (!%p4571_p12)
}
  0x40   :  { %s4575_s20 = scalar_lea.vmem %s4922_s18, 1024  ;;  %p4580_p0 = scmp.lt.s32.totalorder %s4922_s18, %s4922_s18 }
  0x41   :  { %p4576_p13 = scmp.ne.s32.totalorder %s4922_s18, %s4575_s20  ;;  %p4581_p1 = scmp.lt.s32.totalorder %s4575_s20, %s4575_s20 }
  0x43   :  { %p4582_p2 = por %p4581_p1, %p4580_p0 }
  0x45   :  { %p4583_p3 = pnand %p4582_p2, %p4576_p13 }
  0x47   :  { %4586 = shalt.err (!%p4583_p3)
}
  0x48   :  { %121 = dma.hbm_to_vmem [thread:$0]  %s5547_s7, 1024, %s4922_s18, [#allocation15], %s4803_s15, %s4803_s15, %s4804_s16  }
  0x49   :  { %s4809_s21 = smov [#allocation17]   ;;  %s4810_s25 = smov [#allocation2]  }
  0x4a   :  { %s139_s23 = sshll.u32 %s4809_s21, 4  ;;  %s31_s26 = sshll.u32 %s4810_s25, 4  ;;  %s140_s23 = int_to_ptr.vmem [resolvable:$true] %s139_s23  ;;  %s4959_s26 = int_to_ptr.vmem [resolvable:$true] %s31_s26 }
  0x4b   :  { %s4587_s24 = scalar_lea.hbm %s5549_s9, 4096 }
  0x4c   :  { %p4588_p4 = scmp.ne.s32.totalorder %s5549_s9, %s4587_s24  ;;  %p4591_p5 = scmp.lt.u32.totalorder %s4587_s24, %s5549_s9 }
  0x4e   :  { %p4593_p6 = pnand %p4591_p5, %p4588_p4 }
  0x50   :  { %4596 = shalt.err (!%p4593_p6)
}
  0x51   :  { %s4597_s7 = scalar_lea.vmem %s140_s23, 4096  ;;  %p4602_p8 = scmp.lt.s32.totalorder %s140_s23, %s140_s23 }
  0x52   :  { %p4598_p7 = scmp.ne.s32.totalorder %s140_s23, %s4597_s7  ;;  %p4603_p9 = scmp.lt.s32.totalorder %s4597_s7, %s4597_s7 }
  0x54   :  { %p4604_p10 = por %p4603_p9, %p4602_p8 }
  0x56   :  { %p4605_p11 = pnand %p4604_p10, %p4598_p7 }
  0x58   :  { %4608 = shalt.err (!%p4605_p11)
}
  0x59   :  { %145 = dma.hbm_to_vmem [thread:$0]  %s5549_s9, 4096, %s140_s23, [#allocation18], %s4803_s15, %s4803_s15, %s4804_s16  }
  0x5a   :  { %s4609_s19 = scalar_lea.hbm %s5540_s0, 512 }
  0x5b   :  { %p4610_p12 = scmp.ne.s32.totalorder %s5540_s0, %s4609_s19  ;;  %p4613_p13 = scmp.lt.u32.totalorder %s4609_s19, %s5540_s0 }
  0x5d   :  { %p4615_p0 = pnand %p4613_p13, %p4610_p12 }
  0x5f   :  { %4618 = shalt.err (!%p4615_p0)
}
  0x60   :  { %s4619_s25 = scalar_lea.vmem %s4959_s26, 512  ;;  %p4624_p2 = scmp.lt.s32.totalorder %s4959_s26, %s4959_s26 }
  0x61   :  { %p4620_p1 = scmp.ne.s32.totalorder %s4959_s26, %s4619_s25  ;;  %p4625_p3 = scmp.lt.s32.totalorder %s4619_s25, %s4619_s25 }
  0x63   :  { %p4626_p4 = por %p4625_p3, %p4624_p2 }
  0x65   :  { %p4627_p5 = pnand %p4626_p4, %p4620_p1 }
  0x67   :  { %4630 = shalt.err (!%p4627_p5)
}
  0x68   :  { %37 = dma.hbm_to_vmem [thread:$0]  %s5540_s0, 512, %s4959_s26, [#allocation3], %s4803_s15, %s4803_s15, %s4804_s16  }
  0x69   :  { %s4811_s27 = smov [#allocation7]   ;;  %s4631_s1 = scalar_lea.hbm %s5542_s2, 1024 }
  0x6a   :  { %s55_s3 = sshll.u32 %s4811_s27, 4  ;;  %p4632_p6 = scmp.ne.s32.totalorder %s5542_s2, %s4631_s1  ;;  %s56_s3 = int_to_ptr.vmem [resolvable:$true] %s55_s3 }
  0x6b   :  { %p4635_p7 = scmp.lt.u32.totalorder %s4631_s1, %s5542_s2 }
  0x6d   :  { %p4637_p8 = pnand %p4635_p7, %p4632_p6 }
  0x6f   :  { %4640 = shalt.err (!%p4637_p8)
}
  0x70   :  { %s4641_s30 = scalar_lea.vmem %s56_s3, 1024  ;;  %p4646_p10 = scmp.lt.s32.totalorder %s56_s3, %s56_s3 }
  0x71   :  { %p4642_p9 = scmp.ne.s32.totalorder %s56_s3, %s4641_s30  ;;  %p4647_p11 = scmp.lt.s32.totalorder %s4641_s30, %s4641_s30 }
  0x73   :  { %p4648_p12 = por %p4647_p11, %p4646_p10 }
  0x75   :  { %p4649_p13 = pnand %p4648_p12, %p4642_p9 }
  0x77   :  { %4652 = shalt.err (!%p4649_p13)
}
  0x78   :  { %s4812_s0 = smov 128   ;;  %s4813_s26 = smov 8  }
  0x79   :  { %61 = dma.hbm_to_vmem [thread:$0]  %s5542_s2, 1024, %s56_s3, [#allocation6], %s4812_s0, %s4812_s0, %s4813_s26  }
  0x7a   :  { %s4814_s19 = smov [#allocation10]   ;;  %s4815_s5 = smov [#allocation13]  }
  0x7b   :  { %s79_s20 = sshll.u32 %s4814_s19, 4  ;;  %s103_s14 = sshll.u32 %s4815_s5, 4  ;;  %s80_s20 = int_to_ptr.vmem [resolvable:$true] %s79_s20  ;;  %s104_s14 = int_to_ptr.vmem [resolvable:$true] %s103_s14 }
  0x7c   :  { %s4653_s9 = scalar_lea.hbm %s5544_s4, 1024 }
  0x7d   :  { %p4654_p0 = scmp.ne.s32.totalorder %s5544_s4, %s4653_s9  ;;  %p4657_p1 = scmp.lt.u32.totalorder %s4653_s9, %s5544_s4 }
  0x7f   :  { %p4659_p2 = pnand %p4657_p1, %p4654_p0 }
  0x81   :  { %4662 = shalt.err (!%p4659_p2)
}
  0x82   :  { %s4663_s2 = scalar_lea.vmem %s80_s20, 1024  ;;  %p4668_p4 = scmp.lt.s32.totalorder %s80_s20, %s80_s20 }
  0x83   :  { %p4664_p3 = scmp.ne.s32.totalorder %s80_s20, %s4663_s2  ;;  %p4669_p5 = scmp.lt.s32.totalorder %s4663_s2, %s4663_s2 }
  0x85   :  { %p4670_p6 = por %p4669_p5, %p4668_p4 }
  0x87   :  { %p4671_p7 = pnand %p4670_p6, %p4664_p3 }
  0x89   :  { %4674 = shalt.err (!%p4671_p7)
}
  0x8a   :  { %85 = dma.hbm_to_vmem [thread:$0]  %s5544_s4, 1024, %s80_s20, [#allocation9], %s4803_s15, %s4803_s15, %s4804_s16  }
  0x8b   :  { %s4675_s7 = scalar_lea.hbm %s5546_s6, 2048 }
  0x8c   :  { %p4676_p8 = scmp.ne.s32.totalorder %s5546_s6, %s4675_s7  ;;  %p4679_p9 = scmp.lt.u32.totalorder %s4675_s7, %s5546_s6 }
  0x8e   :  { %p4681_p10 = pnand %p4679_p9, %p4676_p8 }
  0x90   :  { %4684 = shalt.err (!%p4681_p10)
}
  0x91   :  { %s4685_s19 = scalar_lea.vmem %s104_s14, 2048  ;;  %p4690_p12 = scmp.lt.s32.totalorder %s104_s14, %s104_s14 }
  0x92   :  { %p4686_p11 = scmp.ne.s32.totalorder %s104_s14, %s4685_s19  ;;  %p4691_p13 = scmp.lt.s32.totalorder %s4685_s19, %s4685_s19 }
  0x94   :  { %p4692_p0 = por %p4691_p13, %p4690_p12 }
  0x96   :  { %p4693_p1 = pnand %p4692_p0, %p4686_p11 }
  0x98   :  { %4696 = shalt.err (!%p4693_p1)
}
  0x99   :  { %109 = dma.hbm_to_vmem [thread:$0]  %s5546_s6, 2048, %s104_s14, [#allocation12], %s4812_s0, %s4812_s0, %s4813_s26  }
  0x9a   :  { %s4816_s5 = smov [#allocation16]   ;;  %s4697_s23 = scalar_lea.hbm %s5548_s8, 4096 }
  0x9b   :  { %s127_s21 = sshll.u32 %s4816_s5, 4  ;;  %p4698_p2 = scmp.ne.s32.totalorder %s5548_s8, %s4697_s23  ;;  %s128_s21 = int_to_ptr.vmem [resolvable:$true] %s127_s21 }
  0x9c   :  { %p4701_p3 = scmp.lt.u32.totalorder %s4697_s23, %s5548_s8 }
  0x9e   :  { %p4703_p4 = pnand %p4701_p3, %p4698_p2 }
  0xa0   :  { %4706 = shalt.err (!%p4703_p4)
}
  0xa1   :  { %s4707_s3 = scalar_lea.vmem %s128_s21, 4096  ;;  %p4712_p6 = scmp.lt.s32.totalorder %s128_s21, %s128_s21 }
  0xa2   :  { %p4708_p5 = scmp.ne.s32.totalorder %s128_s21, %s4707_s3  ;;  %p4713_p7 = scmp.lt.s32.totalorder %s4707_s3, %s4707_s3 }
  0xa4   :  { %p4714_p8 = por %p4713_p7, %p4712_p6 }
  0xa6   :  { %p4715_p9 = pnand %p4714_p8, %p4708_p5 }
  0xa8   :  { %4718 = shalt.err (!%p4715_p9)
}
  0xa9   :  { %s4817_s6 = smov 256   ;;  %s4818_s14 = smov 16  }
  0xaa   :  { %133 = dma.hbm_to_vmem [thread:$0]  %s5548_s8, 4096, %s128_s21, [#allocation15], %s4817_s6, %s4817_s6, %s4818_s14  }
  0xab   :  { %s4819_s29 = smov [#allocation19]   ;;  %s4719_s13 = scalar_lea.hbm %s5550_s10, 3072 }
  0xac   :  { %s151_s7 = sshll.u32 %s4819_s29, 4  ;;  %p4720_p10 = scmp.ne.s32.totalorder %s5550_s10, %s4719_s13  ;;  %s152_s7 = int_to_ptr.vmem [resolvable:$true] %s151_s7 }
  0xad   :  { %p4723_p11 = scmp.lt.u32.totalorder %s4719_s13, %s5550_s10 }
  0xaf   :  { %p4725_p12 = pnand %p4723_p11, %p4720_p10 }
  0xb1   :  { %4728 = shalt.err (!%p4725_p12)
}
  0xb2   :  { %s4729_s5 = scalar_lea.vmem %s152_s7, 3072  ;;  %p4734_p0 = scmp.lt.s32.totalorder %s152_s7, %s152_s7 }
  0xb3   :  { %p4730_p13 = scmp.ne.s32.totalorder %s152_s7, %s4729_s5  ;;  %p4735_p1 = scmp.lt.s32.totalorder %s4729_s5, %s4729_s5 }
  0xb5   :  { %p4736_p2 = por %p4735_p1, %p4734_p0 }
  0xb7   :  { %p4737_p3 = pnand %p4736_p2, %p4730_p13 }
  0xb9   :  { %4740 = shalt.err (!%p4737_p3)
}
  0xba   :  { %157 = dma.hbm_to_vmem [thread:$0]  %s5550_s10, 3072, %s152_s7, [#allocation18], %s4803_s15, %s4803_s15, %s4804_s16  }
  0xbb   :  { %4785 = dma.done.wait [#allocation3], 512  }
  0xbc   :  { %4786 = vsyncadd [#allocation3], 4294966784 }
  0xbd   :  { %4787 = dma.done.wait [#allocation6], 1792  }
  0xbe   :  { %4788 = vsyncadd [#allocation6], 4294965504 }
  0xbf   :  { %4789 = dma.done.wait [#allocation9], 4096  }
  0xc0   :  { %4790 = vsyncadd [#allocation9], 4294963200 }
  0xc1   :  { %4791 = dma.done.wait [#allocation12], 3072  }
  0xc2   :  { %4792 = vsyncadd [#allocation12], 4294964224 }
  0xc3   :  { %4793 = dma.done.wait [#allocation15], 5120  }
  0xc4   :  { %4794 = vsyncadd [#allocation15], 4294962176 }
  0xc5   :  { %4795 = dma.done.wait [#allocation18], 7168  }
  0xc6   :  { %4796 = vsyncadd [#allocation18], 4294960128  ;;  %v4820_v0 = vmov 0   ;;  %v4228_v1 = vld [vmem:[#allocation8 + $0x4] ss:$12 sps:$4 sm:$0xff]   ;;  %v5069_v25 = vld [vmem:[#allocation2 + $0x8] sm:$0xff]  }
  0xc7   :  { %436 = vmatprep.mubr.bf16.mxu0 %v4820_v0  ;;  %v4230_v2 = vld [vmem:[#allocation8] ss:$12 sps:$4 sm:$0xff]   ;;  %404 = vmatprep.subr.bf16.mxu0 %v4228_v1  ;;  %v4231_v3 = vld [vmem:[#allocation8 + $0x1c] ss:$12 sps:$4 sm:$0xff]   ;;  %v4233_v4 = vld [vmem:[#allocation8 + $0x18] ss:$12 sps:$4 sm:$0xff]  }
  0xc8   :  { %405 = vmatpush1.bf16.msra.mxu0 %v4230_v2  ;;  %v4234_v5 = vld [vmem:[#allocation8 + $0x34] ss:$12 sps:$4 sm:$0xff]   ;;  %v4236_v6 = vld [vmem:[#allocation8 + $0x30] ss:$12 sps:$4 sm:$0xff]   ;;  %v4237_v7 = vld [vmem:[#allocation8 + $0x4c] ss:$12 sps:$4 sm:$0xff]  }
  0xc9   :  { %406 = vmatprep.subr.bf16.mxu0 %v4231_v3  ;;  %v192_v8 = vld [vmem:[#allocation2] sm:$0xff]   ;;  %v4257_v12 = vld [vmem:[#allocation8 + $0x20] ss:$12 sps:$4 sm:$0xff]   ;;  %v4243_v14 = vld [vmem:[#allocation8 + $0x7c] ss:$12 sps:$4 sm:$0xff]   ;;  %vm607_vm0 = vcmask 261120  }
  0xca   :  { %v4239_v9 = vld [vmem:[#allocation8 + $0x48] ss:$12 sps:$4 sm:$0xff]   ;;  %v4240_v10 = vld [vmem:[#allocation8 + $0x64] ss:$12 sps:$4 sm:$0xff]   ;;  %3898 = vmatprep.mubr.bf16.mxu1 %v192_v8  ;;  %v4242_v13 = vld [vmem:[#allocation8 + $0x60] ss:$12 sps:$4 sm:$0xff]  }
  0xcb   :  { %v4256_v11 = vld [vmem:[#allocation8 + $0x8] ss:$12 sps:$4 sm:$0xff]   ;;  %v4258_v15 = vld [vmem:[#allocation8 + $0x38] ss:$12 sps:$4 sm:$0xff]   ;;  %v4259_v18 = vld [vmem:[#allocation8 + $0x50] ss:$12 sps:$4 sm:$0xff]  }
  0xcc   :  { %407 = vmatpush1.bf16.msra.mxu0 %v4233_v4  ;;  %3882 = vmatprep.subr.bf16.mxu1 %v4256_v11  ;;  %v4245_v16 = vld [vmem:[#allocation8 + $0x78] ss:$12 sps:$4 sm:$0xff]   ;;  %v4246_v17 = vld [vmem:[#allocation8 + $0x94] ss:$12 sps:$4 sm:$0xff]   ;;  %v4248_v19 = vld [vmem:[#allocation8 + $0x90] ss:$12 sps:$4 sm:$0xff]  }
  0xcd   :  { %408 = vmatprep.subr.bf16.mxu0 %v4234_v5  ;;  %3883 = vmatpush3.bf16.msra.mxu1 %v4256_v11  ;;  %v4249_v20 = vld [vmem:[#allocation8 + $0xac] ss:$12 sps:$4 sm:$0xff]   ;;  %v4260_v21 = vld [vmem:[#allocation8 + $0x68] ss:$12 sps:$4 sm:$0xff]   ;;  %v4263_v26 = vld [vmem:[#allocation8 + $0xb0] ss:$12 sps:$4 sm:$0xff]  }
  0xce   :  { %3884 = vmatprep.subr.bf16.mxu1 %v4257_v12  ;;  %v4251_v22 = vld [vmem:[#allocation8 + $0xa8] ss:$12 sps:$4 sm:$0xff]   ;;  %v4261_v23 = vld [vmem:[#allocation8 + $0x80] ss:$12 sps:$4 sm:$0xff]   ;;  %v4262_v24 = vld [vmem:[#allocation8 + $0x98] ss:$12 sps:$4 sm:$0xff]  }
  0xcf   :  { %v5072_v27 = vld [vmem:[#allocation2 + $0x10] sm:$0xff]   ;;  %v5077_v28 = vld [vmem:[#allocation2 + $0x18] sm:$0xff]   ;;  %vm1012_vm1 = vcmask 523264   ;;  %vm1577_vm2 = vcmask 392192   ;;  %s4821_s10 = smov [#allocation20]  }
  0xd0   :  { %409 = vmatpush1.bf16.msra.mxu0 %v4236_v6  ;;  %s3391_s15 = sshll.u32 %s4821_s10, 4  ;;  %s3392_s15 = int_to_ptr.vmem [resolvable:$true] %s3391_s15 }
  0xd1   :  { %410 = vmatprep.subr.bf16.mxu0 %v4237_v7  ;;  %3885 = vmatpush3.bf16.msra.mxu1 %v4257_v12  ;;  %s4741_s16 = scalar_lea.vmem %s3392_s15, 1024  ;;  %p4746_p5 = scmp.lt.s32.totalorder %s3392_s15, %s3392_s15 }
  0xd2   :  { %3886 = vmatprep.subr.bf16.mxu1 %v4258_v15  ;;  %p4742_p4 = scmp.ne.s32.totalorder %s3392_s15, %s4741_s16  ;;  %p4747_p6 = scmp.lt.s32.totalorder %s4741_s16, %s4741_s16 }
  0xd4   :  { %411 = vmatpush1.bf16.msra.mxu0 %v4239_v9  ;;  %p4748_p7 = por %p4747_p6, %p4746_p5 }
  0xd5   :  { %412 = vmatprep.subr.bf16.mxu0 %v4240_v10  ;;  %3887 = vmatpush3.bf16.msra.mxu1 %v4258_v15 }
  0xd6   :  { %3888 = vmatprep.subr.bf16.mxu1 %v4259_v18  ;;  %p4749_p8 = pnand %p4748_p7, %p4742_p4 }
  0xd8   :  { %413 = vmatpush1.bf16.msra.mxu0 %v4242_v13 }
  0xd9   :  { %414 = vmatprep.subr.bf16.mxu0 %v4243_v14  ;;  %3889 = vmatpush3.bf16.msra.mxu1 %v4259_v18 }
  0xda   :  { %3890 = vmatprep.subr.bf16.mxu1 %v4260_v21 }
  0xdc   :  { %415 = vmatpush1.bf16.msra.mxu0 %v4245_v16 }
  0xdd   :  { %416 = vmatprep.subr.bf16.mxu0 %v4246_v17  ;;  %3891 = vmatpush3.bf16.msra.mxu1 %v4260_v21 }
  0xde   :  { %3892 = vmatprep.subr.bf16.mxu1 %v4261_v23 }
  0xe0   :  { %417 = vmatpush1.bf16.msra.mxu0 %v4248_v19 }
  0xe1   :  { %418 = vmatprep.subr.bf16.mxu0 %v4249_v20  ;;  %3893 = vmatpush3.bf16.msra.mxu1 %v4261_v23 }
  0xe2   :  { %3894 = vmatprep.subr.bf16.mxu1 %v4262_v24 }
  0xe4   :  { %419 = vmatpush1.bf16.msra.mxu0 %v4251_v22 }
  0xe5   :  { %3895 = vmatpush3.bf16.msra.mxu1 %v4262_v24 }
  0xe6   :  { %3896 = vmatprep.subr.bf16.mxu1 %v4263_v26 }
  0xe7   :  { %437 = vmatmul.mubr.bf16.vlgmr.msra.gmra.mrb[0].mxu0 %v192_v8 }
  0xe8   :  { %446 = vmatprep.mubr.bf16.mxu0 %v4820_v0 }
  0xe9   :  { %3897 = vmatpush3.bf16.msra.mxu1 %v4263_v26 }
  0xec   :  { %3899 = vmatmul.mubr.bf16.vlgmr.msra.gmra.mrb[0].mxu1 %v5069_v25 }
  0xed   :  { %3902 = vmatprep.mubr.bf16.mxu1 %v5072_v27 }
  0xef   :  { %447 = vmatmul.mubr.bf16.gmra.mrb[4].mxu0 %v5069_v25 }
  0xf0   :  { %456 = vmatprep.mubr.bf16.mxu0 %v4820_v0 }
  0xf4   :  { %3903 = vmatmul.mubr.bf16.gmra.mrb[4].mxu1 %v5077_v28 }
  0xf7   :  { %457 = vmatmul.mubr.bf16.gmra.mrb[8].mxu0 %v5072_v27 }
  0xf8   :  { %466 = vmatprep.mubr.bf16.mxu0 %v4820_v0 }
  0xff   :  { %467 = vmatmul.mubr.bf16.gmra.mrb[12].mxu0 %v5077_v28 }
 0x1ba   :  { %v438_v29 = vpop.f32.mrb[0].mxu0 }
 0x1bb   :  { %v440_v30 = vpop.f32.mrb[1].mxu0 }
 0x1bc   :  { %v442_v31 = vpop.f32.mrb[2].mxu0 }
 0x1bd   :  { %v542_v32 = vpack.c.bf16 %v442_v31, %v438_v29  ;;  %v444_v33 = vpop.f32.mrb[3].mxu0 }
 0x1be   :  { %v543_v34 = vpack.c.bf16 %v444_v33, %v440_v30 }
 0x1bf   :  { %3910 = vmatprep.mubr.bf16.mxu1 %v542_v32  ;;  %v3900_v41 = vpop.f32.mrb[0].mxu1 }
 0x1c0   :  { %3906 = vmatprep.subr.bf16.mxu1 %v543_v34  ;;  %v511_v42 = vpop.f32.mrb[1].mxu1 }
 0x1c1   :  { %3907 = vmatpush3.bf16.xpose.msra.mxu1 %v543_v34  ;;  %v3901_v43 = vpop.f32.mrb[2].mxu1 }
 0x1c2   :  { %v448_v35 = vpop.f32.mrb[4].mxu0  ;;  %v547_v44 = vpack.c.bf16 %v3901_v43, %v3900_v41  ;;  %v514_v45 = vpop.f32.mrb[3].mxu1 }
 0x1c3   :  { %v450_v36 = vpop.f32.mrb[5].mxu0  ;;  %v544_v47 = vpack.c.bf16 %v514_v45, %v511_v42 }
 0x1c4   :  { %v452_v37 = vpop.f32.mrb[6].mxu0 }
 0x1c5   :  { %v545_v38 = vpack.c.bf16 %v452_v37, %v448_v35  ;;  %v454_v39 = vpop.f32.mrb[7].mxu0 }
 0x1c6   :  { %v546_v40 = vpack.c.bf16 %v454_v39, %v450_v36 }
 0x1c7   :  { %v3904_v53 = vpop.f32.mrb[4].mxu1 }
 0x1c8   :  { %3908 = vmatprep.subr.bf16.mxu1 %v546_v40  ;;  %v527_v54 = vpop.f32.mrb[5].mxu1 }
 0x1c9   :  { %3909 = vmatpush3.bf16.xpose.msra.mxu1 %v546_v40  ;;  %v3905_v55 = vpop.f32.mrb[6].mxu1 }
 0x1ca   :  { %v458_v46 = vpop.f32.mrb[8].mxu0  ;;  %3914 = vmatprep.subr.bf16.mxu1 %v544_v47  ;;  %v5084_v56 = vpack.c.bf16 %v3905_v55, %v3904_v53  ;;  %v530_v57 = vpop.f32.mrb[7].mxu1 }
 0x1cb   :  { %v460_v48 = vpop.f32.mrb[9].mxu0  ;;  %v5086_v59 = vpack.c.bf16 %v530_v57, %v527_v54 }
 0x1cc   :  { %v462_v49 = vpop.f32.mrb[10].mxu0 }
 0x1cd   :  { %v548_v50 = vpack.c.bf16 %v462_v49, %v458_v46  ;;  %v464_v51 = vpop.f32.mrb[11].mxu0 }
 0x1ce   :  { %v549_v52 = vpack.c.bf16 %v464_v51, %v460_v48 }
 0x1cf   :  { %3926 = vmatprep.mubr.bf16.mxu0 %v548_v50 }
 0x1d0   :  { %3911 = vmatmul.mubr.bf16.vlgmr.msra.gmra.mrb[8].mxu1 %v545_v38  ;;  %3922 = vmatprep.subr.bf16.mxu0 %v549_v52 }
 0x1d1   :  { %3923 = vmatpush3.bf16.xpose.msra.mxu0 %v549_v52  ;;  %3915 = vmatpush3.bf16.msra.mxu1 %v544_v47 }
 0x1d2   :  { %v468_v58 = vpop.f32.mrb[12].mxu0  ;;  %3916 = vmatprep.subr.bf16.mxu1 %v547_v44 }
 0x1d3   :  { %v470_v60 = vpop.f32.mrb[13].mxu0 }
 0x1d4   :  { %v472_v61 = vpop.f32.mrb[14].mxu0 }
 0x1d5   :  { %v551_v62 = vpack.c.bf16 %v472_v61, %v468_v58  ;;  %v474_v63 = vpop.f32.mrb[15].mxu0  ;;  %3917 = vmatpush3.bf16.msra.mxu1 %v547_v44 }
 0x1d6   :  { %v552_v1 = vpack.c.bf16 %v474_v63, %v470_v60  ;;  %3930 = vmatprep.subr.bf16.mxu1 %v5086_v59 }
 0x1d8   :  { %3924 = vmatprep.subr.bf16.mxu0 %v552_v1 }
 0x1d9   :  { %3925 = vmatpush3.bf16.xpose.msra.mxu0 %v552_v1 }
 0x1e0   :  { %3927 = vmatmul.mubr.bf16.vlgmr.msra.gmra.mrb[16].mxu0 %v551_v62 }
 0x2a3   :  { %v3912_v2 = vpop.f32.mrb[8].mxu1 }
 0x2a4   :  { %v605_v3 = vmul.f32 0.088388346, %v3912_v2  ;;  %v588_v4 = vpop.f32.mrb[9].mxu1 }
 0x2a5   :  { %v603_v5 = vmul.f32 0.088388346, %v588_v4  ;;  %v3913_v6 = vpop.f32.mrb[10].mxu1 }
 0x2a6   :  { %v606_v7 = vmul.f32 0.088388346, %v3913_v6  ;;  %v591_v8 = vpop.f32.mrb[11].mxu1  ;;  %v614_v9 = vsel %vm607_vm0, %v605_v3, -inf }
 0x2a7   :  { %v604_v10 = vmul.f32 0.088388346, %v591_v8  ;;  %615 = vmax.xlane.f32.xlu1 %v614_v9  ;;  %v608_v11 = vsel %vm607_vm0, %v603_v5, -inf  ;;  %v4264_v8 = vld [vmem:[#allocation10] sm:$0xff]   ;;  %v4265_v9 = vld [vmem:[#allocation10 + $0x8] sm:$0xff]  }
 0x2a8   :  { %609 = vmax.xlane.f32.xlu0 %v608_v11  ;;  %v617_v12 = vsel %vm607_vm0, %v606_v7, -inf  ;;  %3938 = vmatprep.subr.bf16.mxu0 %v4264_v8  ;;  %v4267_v11 = vld [vmem:[#allocation10 + $0x18] sm:$0xff]  }
 0x2a9   :  { %v611_v13 = vsel %vm607_vm0, %v604_v10, -inf  ;;  %3939 = vmatpush3.bf16.msra.mxu0 %v4264_v8  ;;  %v4287_v8 = vld [vmem:[#allocation13 + $0x50] ss:$8 sps:$4 sm:$0xff]  }
 0x2aa   :  { %3940 = vmatprep.subr.bf16.mxu0 %v4265_v9 }
 0x2ab   :  { %618 = vmax.xlane.f32.xlu1 %v617_v12  ;;  %v4268_v12 = vld [vmem:[#allocation10 + $0x20] sm:$0xff]  }
 0x2ac   :  { %612 = vmax.xlane.f32.xlu0 %v611_v13  ;;  %v4269_v13 = vld [vmem:[#allocation10 + $0x28] sm:$0xff]  }
 0x2ad   :  { %3941 = vmatpush3.bf16.msra.mxu0 %v4265_v9  ;;  %v4292_v9 = vld [vmem:[#allocation13 + $0x64] ss:$8 sps:$4 sm:$0xff]  }
 0x2b3   :  { %v3928_v14 = vpop.f32.mrb[16].mxu0 }
 0x2b4   :  { %v743_v15 = vpop.f32.mrb[17].mxu0  ;;  %v760_v19 = vmul.f32 0.088388346, %v3928_v14  ;;  %v4270_v14 = vld [vmem:[#allocation10 + $0x30] sm:$0xff]  }
 0x2b5   :  { %v758_v16 = vmul.f32 0.088388346, %v743_v15  ;;  %v3929_v17 = vpop.f32.mrb[18].mxu0 }
 0x2b6   :  { %v746_v18 = vpop.f32.mrb[19].mxu0  ;;  %v761_v22 = vmul.f32 0.088388346, %v3929_v17  ;;  %v768_v24 = vsel %vm607_vm0, %v760_v19, -inf }
 0x2b7   :  { %v759_v20 = vmul.f32 0.088388346, %v746_v18  ;;  %v762_v21 = vsel %vm607_vm0, %v758_v16, -inf }
 0x2b8   :  { %763 = vmax.xlane.f32.xlu0 %v762_v21  ;;  %v771_v26 = vsel %vm607_vm0, %v761_v22, -inf }
 0x2b9   :  { %v765_v23 = vsel %vm607_vm0, %v759_v20, -inf }
 0x2ba   :  { %766 = vmax.xlane.f32.xlu1 %v765_v23 }
 0x2bc   :  { %769 = vmax.xlane.f32.xlu0 %v768_v24 }
 0x2be   :  { %772 = vmax.xlane.f32.xlu1 %v771_v26 }
 0x334   :  { %v616_v29 = vpop.xlane.xlu1 %615 }
 0x335   :  { %v622_v30 = vsub.f32 %v605_v3, %v616_v29  ;;  %v610_v31 = vpop.xlane.xlu0 %609 }
 0x336   :  { %v620_v32 = vsub.f32 %v603_v5, %v610_v31 }
 0x337   :  { %v628_v33 = vmul.f32 1.442695, %v622_v30 }
 0x338   :  { %v624_v34 = vmul.f32 1.442695, %v620_v32  ;;  %v619_v35 = vpop.xlane.xlu1 %618 }
 0x339   :  { %v623_v36 = vsub.f32 %v606_v7, %v619_v35  ;;  %v613_v37 = vpop.xlane.xlu0 %612 }
 0x33a   :  { %4426 = vpow2.f32 %v624_v34  ;;  %v621_v38 = vsub.f32 %v604_v10, %v613_v37  ;;  %v4266_v10 = vld [vmem:[#allocation10 + $0x10] sm:$0xff]  }
 0x33b   :  { %4428 = vpow2.f32 %v628_v33  ;;  %v630_v39 = vmul.f32 1.442695, %v623_v36  ;;  %3942 = vmatprep.subr.bf16.mxu0 %v4266_v10 }
 0x33c   :  { %v626_v40 = vmul.f32 1.442695, %v621_v38  ;;  %3943 = vmatpush3.bf16.msra.mxu0 %v4266_v10  ;;  %v4290_v10 = vld [vmem:[#allocation13 + $0x60] ss:$8 sps:$4 sm:$0xff]  }
 0x33d   :  { %3944 = vmatprep.subr.bf16.mxu0 %v4267_v11 }
 0x33e   :  { %4430 = vpow2.f32 %v626_v40 }
 0x33f   :  { %4432 = vpow2.f32 %v630_v39 }
 0x340   :  { %3945 = vmatpush3.bf16.msra.mxu0 %v4267_v11  ;;  %v4295_v11 = vld [vmem:[#allocation13 + $0x74] ss:$8 sps:$4 sm:$0xff]  }
 0x341   :  { %3946 = vmatprep.subr.bf16.mxu0 %v4268_v12 }
 0x344   :  { %v5097_v41 = vpop.eup %4426  ;;  %3947 = vmatpush3.bf16.msra.mxu0 %v4268_v12  ;;  %v4293_v12 = vld [vmem:[#allocation13 + $0x70] ss:$8 sps:$4 sm:$0xff]  }
 0x345   :  { %v764_v42 = vpop.xlane.xlu0 %763  ;;  %v632_v43 = vsel %vm607_vm0, %v5097_v41, 0.0  ;;  %v5101_v44 = vpop.eup %4428  ;;  %3948 = vmatprep.subr.bf16.mxu0 %v4269_v13 }
 0x346   :  { %v774_v45 = vsub.f32 %v758_v16, %v764_v42  ;;  %633 = vadd.xlane.f32.xlu0 %v632_v43  ;;  %v638_v51 = vsel %vm607_vm0, %v5101_v44, 0.0 }
 0x347   :  { %v767_v46 = vpop.xlane.xlu1 %766 }
 0x348   :  { %v5103_v47 = vpop.eup %4430  ;;  %v778_v48 = vmul.f32 1.442695, %v774_v45  ;;  %v775_v49 = vsub.f32 %v759_v20, %v767_v46  ;;  %3949 = vmatpush3.bf16.msra.mxu0 %v4269_v13  ;;  %v4271_v45 = vld [vmem:[#allocation10 + $0x38] sm:$0xff]   ;;  %v4297_v13 = vld [vmem:[#allocation5] sm:$0xff]  }
 0x349   :  { %v770_v50 = vpop.xlane.xlu0 %769  ;;  %v635_v52 = vsel %vm607_vm0, %v5103_v47, 0.0  ;;  %v5109_v53 = vpop.eup %4432  ;;  %3950 = vmatprep.subr.bf16.mxu0 %v4270_v14 }
 0x34a   :  { %4434 = vpow2.f32 %v778_v48  ;;  %v780_v54 = vmul.f32 1.442695, %v775_v49  ;;  %v776_v55 = vsub.f32 %v760_v19, %v770_v50  ;;  %639 = vadd.xlane.f32.xlu0 %v638_v51  ;;  %636 = vadd.xlane.f32.xlu1 %v635_v52  ;;  %v641_v61 = vsel %vm607_vm0, %v5109_v53, 0.0 }
 0x34b   :  { %v773_v57 = vpop.xlane.xlu1 %772 }
 0x34c   :  { %4436 = vpow2.f32 %v780_v54  ;;  %v782_v58 = vmul.f32 1.442695, %v776_v55  ;;  %v777_v60 = vsub.f32 %v761_v22, %v773_v57  ;;  %3951 = vmatpush3.bf16.msra.mxu0 %v4270_v14  ;;  %v4300_v14 = vld [vmem:[#allocation5 + $0x8] sm:$0xff]  }
 0x34d   :  { %3952 = vmatprep.subr.bf16.mxu0 %v4271_v45 }
 0x34e   :  { %4438 = vpow2.f32 %v782_v58  ;;  %v784_v62 = vmul.f32 1.442695, %v777_v60  ;;  %642 = vadd.xlane.f32.xlu1 %v641_v61  ;;  %v5145_v58 = vld [vmem:[#allocation7] sm:$0xff] }
 0x34f   :  { %v4272_v60 = vld [vmem:[#allocation13] ss:$8 sps:$4 sm:$0xff]   ;;  %v4274_v61 = vld [vmem:[#allocation13 + $0x4] ss:$8 sps:$4 sm:$0xff]  }
 0x350   :  { %4440 = vpow2.f32 %v784_v62  ;;  %3953 = vmatpush3.bf16.msra.mxu0 %v4271_v45  ;;  %v4277_v62 = vld [vmem:[#allocation13 + $0x14] ss:$8 sps:$4 sm:$0xff]  }
 0x351   :  { %1419 = vmatprep.subr.bf16.mxu0 %v4274_v61 }
 0x354   :  { %v5113_v63 = vpop.eup %4434 }
 0x355   :  { %v786_v1 = vsel %vm607_vm0, %v5113_v63, 0.0 }
 0x356   :  { %v5117_v2 = vpop.eup %4436  ;;  %787 = vadd.xlane.f32.xlu0 %v786_v1  ;;  %v4280_v1 = vld [vmem:[#allocation13 + $0x24] ss:$8 sps:$4 sm:$0xff]  }
 0x357   :  { %v789_v3 = vsel %vm607_vm0, %v5117_v2, 0.0 }
 0x358   :  { %v5121_v4 = vpop.eup %4438  ;;  %790 = vadd.xlane.f32.xlu1 %v789_v3  ;;  %v4283_v3 = vld [vmem:[#allocation13 + $0x34] ss:$8 sps:$4 sm:$0xff]  }
 0x359   :  { %v792_v5 = vsel %vm607_vm0, %v5121_v4, 0.0 }
 0x35a   :  { %v5125_v6 = vpop.eup %4440  ;;  %793 = vadd.xlane.f32.xlu0 %v792_v5  ;;  %v4286_v5 = vld [vmem:[#allocation13 + $0x44] ss:$8 sps:$4 sm:$0xff]  }
 0x35b   :  { %v795_v7 = vsel %vm607_vm0, %v5125_v6, 0.0 }
 0x35c   :  { %796 = vadd.xlane.f32.xlu1 %v795_v7  ;;  %v4289_v7 = vld [vmem:[#allocation13 + $0x54] ss:$8 sps:$4 sm:$0xff]  }
 0x3d3   :  { %v634_v15 = vpop.xlane.xlu0 %633 }
 0x3d4   :  { %4442 = vrcp.f32 %v634_v15  ;;  %v4303_v15 = vld [vmem:[#allocation5 + $0x10] sm:$0xff]  }
 0x3d7   :  { %v640_v16 = vpop.xlane.xlu0 %639  ;;  %v637_v17 = vpop.xlane.xlu1 %636 }
 0x3d8   :  { %4444 = vrcp.f32 %v637_v17  ;;  %v4490_v17 = vld [vmem:[#allocation2] sm:$0xff]  }
 0x3d9   :  { %4446 = vrcp.f32 %v640_v16 }
 0x3db   :  { %v643_v18 = vpop.xlane.xlu1 %642 }
 0x3dc   :  { %4448 = vrcp.f32 %v643_v18  ;;  %v212_v18 = vunpack.c.l.bf16 %v4490_v17 }
 0x3de   :  { %v4443_v19 = vpop.eup %4442 }
 0x3df   :  { %v648_v23 = vmul.f32 %v4443_v19, %v5097_v41  ;;  %v215_v19 = vunpack.c.h.bf16 %v5069_v25 }
 0x3e2   :  { %v4445_v20 = vpop.eup %4444 }
 0x3e3   :  { %v788_v21 = vpop.xlane.xlu0 %787  ;;  %v4447_v22 = vpop.eup %4446  ;;  %v649_v24 = vmul.f32 %v4445_v20, %v5103_v47  ;;  %v213_v20 = vunpack.c.h.bf16 %v4490_v17 }
 0x3e4   :  { %4450 = vrcp.f32 %v788_v21  ;;  %v650_v31 = vmul.f32 %v4447_v22, %v5101_v44  ;;  %v214_v22 = vunpack.c.l.bf16 %v5069_v25 }
 0x3e5   :  { %v791_v26 = vpop.xlane.xlu1 %790  ;;  %v652_v30 = vpack.c.bf16 %v649_v24, %v648_v23 }
 0x3e6   :  { %v4449_v29 = vpop.eup %4448  ;;  %4452 = vrcp.f32 %v791_v26 }
 0x3e7   :  { %v651_v32 = vmul.f32 %v4449_v29, %v5109_v53  ;;  %v794_v33 = vpop.xlane.xlu0 %793  ;;  %3918 = vmatprep.mubr.msk.bf16.mxu1 %vm607_vm0, %v652_v30 }
 0x3e8   :  { %4454 = vrcp.f32 %v794_v33 }
 0x3e9   :  { %v797_v34 = vpop.xlane.xlu1 %796  ;;  %v653_v35 = vpack.c.bf16 %v651_v32, %v650_v31 }
 0x3ea   :  { %4456 = vrcp.f32 %v797_v34  ;;  %v216_v34 = vunpack.c.l.bf16 %v5072_v27 }
 0x3eb   :  { %3919 = vmatmul.mubr.msk.bf16.vlgmr.msra.gmra.mrb[12].mxu1 %vm607_vm0, %v653_v35  ;;  %v219_v35 = vunpack.c.h.bf16 %v5077_v28 }
 0x3ec   :  { %3931 = vmatpush3.bf16.msra.mxu1 %v5086_v59 }
 0x3ed   :  { %3932 = vmatprep.subr.bf16.mxu1 %v5084_v56 }
 0x3ee   :  { %v4451_v36 = vpop.eup %4450 }
 0x3ef   :  { %v802_v38 = vmul.f32 %v4451_v36, %v5113_v63  ;;  %v4275_v63 = vld [vmem:[#allocation13 + $0x10] ss:$8 sps:$4 sm:$0xff]   ;;  %v217_v36 = vunpack.c.h.bf16 %v5072_v27  ;;  %v4296_v27 = vld [vmem:[#allocation11] sm:$0xff]  }
 0x3f0   :  { %v4453_v37 = vpop.eup %4452  ;;  %3933 = vmatpush3.bf16.msra.mxu1 %v5084_v56 }
 0x3f1   :  { %v803_v39 = vmul.f32 %v4453_v37, %v5117_v2  ;;  %v4278_v2 = vld [vmem:[#allocation13 + $0x20] ss:$8 sps:$4 sm:$0xff]  }
 0x3f2   :  { %v4455_v40 = vpop.eup %4454 }
 0x3f3   :  { %v806_v41 = vpack.c.bf16 %v803_v39, %v802_v38  ;;  %v804_v43 = vmul.f32 %v4455_v40, %v5121_v4  ;;  %v4281_v4 = vld [vmem:[#allocation13 + $0x30] ss:$8 sps:$4 sm:$0xff]   ;;  %v218_v38 = vunpack.c.l.bf16 %v5077_v28  ;;  %v5182_v28 = vld [vmem:[#allocation7 + $0x8] sm:$0xff] }
 0x3f4   :  { %v4457_v42 = vpop.eup %4456 }
 0x3f5   :  { %v805_v44 = vmul.f32 %v4457_v42, %v5125_v6  ;;  %3934 = vmatprep.mubr.msk.bf16.mxu1 %vm607_vm0, %v806_v41  ;;  %v4284_v6 = vld [vmem:[#allocation13 + $0x40] ss:$8 sps:$4 sm:$0xff]  }
 0x3f7   :  { %v807_v59 = vpack.c.bf16 %v805_v44, %v804_v43 }
 0x3f9   :  { %3935 = vmatmul.mubr.msk.bf16.vlgmr.msra.gmra.mrb[16].mxu1 %vm607_vm0, %v807_v59 }
 0x3fa   :  { %3978 = vmatprep.mubr.msk.f32.mxu1 %vm1012_vm1, %v5145_v58 }
 0x4be   :  { %v3920_v56 = vpop.f32.mrb[12].mxu1 }
 0x4bf   :  { %v694_v46 = vpop.f32.mrb[13].mxu1 }
 0x4c0   :  { %v3921_v47 = vpop.f32.mrb[14].mxu1 }
 0x4c1   :  { %v864_v48 = vpack.c.bf16 %v3921_v47, %v3920_v56  ;;  %v697_v49 = vpop.f32.mrb[15].mxu1  ;;  %v5184_v56 = vld [vmem:[#allocation7 + $0x10] sm:$0xff]  ;;  %v5190_v47 = vld [vmem:[#allocation7 + $0x18] sm:$0xff] }
 0x4c2   :  { %v863_v50 = vpack.c.bf16 %v697_v49, %v694_v46  ;;  %v4298_v46 = vld [vmem:[#allocation11 + $0x8] sm:$0xff]   ;;  %v4299_v49 = vld [vmem:[#allocation11 + $0x10] sm:$0xff]  }
 0x4c4   :  { %3954 = vmatprep.mubr.bf16.mxu0 %v863_v50  ;;  %v5198_v50 = vld [vmem:[#allocation7 + $0x28] sm:$0xff] }
 0x4c5   :  { %3955 = vmatmul.mubr.bf16.vlgmr.msra.gmra.mrb[20].mxu0 %v864_v48  ;;  %v5192_v48 = vld [vmem:[#allocation7 + $0x20] sm:$0xff] }
 0x4c6   :  { %1420 = vmatpush1.bf16.msra.mxu0 %v4272_v60  ;;  %v4306_v60 = vld [vmem:[#allocation11 + $0x38] sm:$0xff]  }
 0x4c7   :  { %1421 = vmatprep.subr.bf16.mxu0 %v4277_v62 }
 0x4ca   :  { %1422 = vmatpush1.bf16.msra.mxu0 %v4275_v63 }
 0x4cb   :  { %1423 = vmatprep.subr.bf16.mxu0 %v4280_v1 }
 0x4cc   :  { %v3936_v51 = vpop.f32.mrb[16].mxu1 }
 0x4cd   :  { %v848_v52 = vpop.f32.mrb[17].mxu1 }
 0x4ce   :  { %v3937_v53 = vpop.f32.mrb[18].mxu1  ;;  %1424 = vmatpush1.bf16.msra.mxu0 %v4278_v2 }
 0x4cf   :  { %v866_v54 = vpack.c.bf16 %v3937_v53, %v3936_v51  ;;  %v851_v55 = vpop.f32.mrb[19].mxu1  ;;  %1425 = vmatprep.subr.bf16.mxu0 %v4283_v3  ;;  %v5200_v51 = vld [vmem:[#allocation7 + $0x30] sm:$0xff]  ;;  %v5206_v53 = vld [vmem:[#allocation7 + $0x38] sm:$0xff] }
 0x4d0   :  { %v865_v57 = vpack.c.bf16 %v851_v55, %v848_v52  ;;  %v4301_v52 = vld [vmem:[#allocation11 + $0x18] sm:$0xff]   ;;  %v4304_v55 = vld [vmem:[#allocation11 + $0x28] sm:$0xff]  }
 0x4d2   :  { %3958 = vmatprep.mubr.bf16.mxu0 %v865_v57  ;;  %1426 = vmatpush1.bf16.msra.mxu0 %v4281_v4  ;;  %v4305_v57 = vld [vmem:[#allocation11 + $0x30] sm:$0xff]  }
 0x4d3   :  { %3959 = vmatmul.mubr.bf16.gmra.mrb[24].mxu0 %v866_v54  ;;  %1427 = vmatprep.subr.bf16.mxu0 %v4286_v5  ;;  %v4302_v54 = vld [vmem:[#allocation11 + $0x20] sm:$0xff]  }
 0x4d4   :  { %1451 = vmatprep.mubr.bf16.mxu0 %v4820_v0 }
 0x4d6   :  { %1428 = vmatpush1.bf16.msra.mxu0 %v4284_v6 }
 0x4d7   :  { %1429 = vmatprep.subr.bf16.mxu0 %v4289_v7 }
 0x4da   :  { %1430 = vmatpush1.bf16.msra.mxu0 %v4287_v8 }
 0x4db   :  { %1431 = vmatprep.subr.bf16.mxu0 %v4292_v9 }
 0x4de   :  { %1432 = vmatpush1.bf16.msra.mxu0 %v4290_v10 }
 0x4df   :  { %1433 = vmatprep.subr.bf16.mxu0 %v4295_v11 }
 0x4e2   :  { %1434 = vmatpush1.bf16.msra.mxu0 %v4293_v12 }
 0x4e5   :  { %1452 = vmatmul.mubr.bf16.vlgmr.msra.gmra.mrb[28].mxu0 %v4297_v13 }
 0x4e6   :  { %1461 = vmatprep.mubr.bf16.mxu0 %v4820_v0 }
 0x4ed   :  { %1462 = vmatmul.mubr.bf16.gmra.mrb[32].mxu0 %v4300_v14 }
 0x4ee   :  { %1471 = vmatprep.mubr.bf16.mxu0 %v4820_v0 }
 0x4f5   :  { %1472 = vmatmul.mubr.bf16.gmra.mrb[36].mxu0 %v4303_v15 }
 0x4f6   :  { %1481 = vmatprep.mubr.bf16.mxu0 %v4820_v0 }
 0x598   :  { %v3956_v16 = vpop.f32.mrb[20].mxu0 }
 0x599   :  { %v965_v21 = vpop.f32.mrb[21].mxu0  ;;  %v5160_v31 = vadd.f32 %v3956_v16, %v214_v22 }
 0x59a   :  { %v3957_v23 = vpop.f32.mrb[22].mxu0  ;;  %v5154_v26 = vadd.f32 %v965_v21, %v212_v18 }
 0x59b   :  { %v968_v24 = vpop.f32.mrb[23].mxu0  ;;  %v5156_v29 = vadd.f32 %v3957_v23, %v215_v19 }
 0x59c   :  { %v5158_v30 = vadd.f32 %v968_v24, %v213_v20 }
 0x59d   :  { %v4162_v33 = vpack.c.bf16 %v5156_v29, %v5160_v31 }
 0x59e   :  { %v4158_v32 = vpack.c.bf16 %v5158_v30, %v5154_v26 }
 0x5a0   :  { %4159 = vmatprep.subr.bf16.mxu1 %v4158_v32 }
 0x5a1   :  { %4161 = vmatpush3.bf16.msra.mxu1 %v4158_v32 }
 0x5a2   :  { %4163 = vmatprep.subr.bf16.mxu1 %v4162_v33 }
 0x5a5   :  { %4165 = vmatpush3.bf16.msra.mxu1 %v4162_v33 }
 0x5a6   :  { %v3960_v25 = vpop.f32.mrb[24].mxu0 }
 0x5a7   :  { %v981_v37 = vpop.f32.mrb[25].mxu0  ;;  %v5176_v44 = vadd.f32 %v3960_v25, %v218_v38 }
 0x5a8   :  { %v3961_v39 = vpop.f32.mrb[26].mxu0  ;;  %v5170_v41 = vadd.f32 %v981_v37, %v216_v34 }
 0x5a9   :  { %v984_v40 = vpop.f32.mrb[27].mxu0  ;;  %v5172_v42 = vadd.f32 %v3961_v39, %v219_v35 }
 0x5aa   :  { %v5174_v43 = vadd.f32 %v984_v40, %v217_v36 }
 0x5ab   :  { %v4170_v45 = vpack.c.bf16 %v5172_v42, %v5176_v44 }
 0x5ac   :  { %v4166_v59 = vpack.c.bf16 %v5174_v43, %v5170_v41 }
 0x5ae   :  { %4167 = vmatprep.subr.bf16.mxu1 %v4166_v59 }
 0x5af   :  { %4169 = vmatpush3.bf16.msra.mxu1 %v4166_v59 }
 0x5b0   :  { %4171 = vmatprep.subr.bf16.mxu1 %v4170_v45 }
 0x5b3   :  { %4173 = vmatpush3.bf16.msra.mxu1 %v4170_v45 }
 0x5b4   :  { %3990 = vmatprep.subr.bf16.mxu1 %v4296_v27 }
 0x5b6   :  { %3979 = vmatmul.mubr.msk.f32.vlgmr.msra.gmra.mrb[20].mxu1 %vm1012_vm1, %v5182_v28 }
 0x5b7   :  { %3981 = vmatprep.mubr.msk.f32.mxu1 %vm1012_vm1, %v5184_v56  ;;  %3991 = vmatpush3.bf16.msra.mxu1 %v4296_v27 }
 0x5b8   :  { %3992 = vmatprep.subr.bf16.mxu1 %v4298_v46  ;;  %v1453_v61 = vpop.f32.mrb[28].mxu0 }
 0x5b9   :  { %v1455_v62 = vpop.f32.mrb[29].mxu0 }
 0x5ba   :  { %3982 = vmatmul.mubr.msk.f32.gmra.mrb[22].mxu1 %vm1012_vm1, %v5190_v47  ;;  %v1457_v63 = vpop.f32.mrb[30].mxu0 }
 0x5bb   :  { %3984 = vmatprep.mubr.msk.f32.mxu1 %vm1012_vm1, %v5192_v48  ;;  %3993 = vmatpush3.bf16.msra.mxu1 %v4298_v46  ;;  %v1512_v1 = vpack.c.bf16 %v1457_v63, %v1453_v61  ;;  %v1459_v2 = vpop.f32.mrb[31].mxu0 }
 0x5bc   :  { %3994 = vmatprep.subr.bf16.mxu1 %v4299_v49  ;;  %v1513_v3 = vpack.c.bf16 %v1459_v2, %v1455_v62 }
 0x5be   :  { %3985 = vmatmul.mubr.msk.f32.gmra.mrb[24].mxu1 %vm1012_vm1, %v5198_v50 }
 0x5bf   :  { %3987 = vmatprep.mubr.msk.f32.mxu1 %vm1012_vm1, %v5200_v51  ;;  %3995 = vmatpush3.bf16.msra.mxu1 %v4299_v49 }
 0x5c0   :  { %3996 = vmatprep.subr.bf16.mxu1 %v4301_v52  ;;  %v1463_v4 = vpop.f32.mrb[32].mxu0 }
 0x5c1   :  { %v1465_v5 = vpop.f32.mrb[33].mxu0 }
 0x5c2   :  { %3988 = vmatmul.mubr.msk.f32.gmra.mrb[26].mxu1 %vm1012_vm1, %v5206_v53  ;;  %v1467_v6 = vpop.f32.mrb[34].mxu0 }
 0x5c3   :  { %3997 = vmatpush3.bf16.msra.mxu1 %v4301_v52  ;;  %v1514_v7 = vpack.c.bf16 %v1467_v6, %v1463_v4  ;;  %v1469_v8 = vpop.f32.mrb[35].mxu0  ;;  %v4307_v52 = vld [vmem:[#allocation5 + $0x18] sm:$0xff]  }
 0x5c4   :  { %3998 = vmatprep.subr.bf16.mxu1 %v4302_v54  ;;  %v1515_v9 = vpack.c.bf16 %v1469_v8, %v1465_v5  ;;  %1482 = vmatmul.mubr.bf16.gmra.mrb[40].mxu0 %v4307_v52 }
 0x5c5   :  { %1491 = vmatprep.mubr.bf16.mxu0 %v4820_v0 }
 0x5c7   :  { %3999 = vmatpush3.bf16.msra.mxu1 %v4302_v54  ;;  %v4308_v54 = vld [vmem:[#allocation5 + $0x20] sm:$0xff]  }
 0x5c8   :  { %4000 = vmatprep.subr.bf16.mxu1 %v4304_v55  ;;  %v1473_v10 = vpop.f32.mrb[36].mxu0 }
 0x5c9   :  { %v1475_v11 = vpop.f32.mrb[37].mxu0 }
 0x5ca   :  { %v1477_v12 = vpop.f32.mrb[38].mxu0 }
 0x5cb   :  { %4001 = vmatpush3.bf16.msra.mxu1 %v4304_v55  ;;  %v1516_v13 = vpack.c.bf16 %v1477_v12, %v1473_v10  ;;  %v1479_v36 = vpop.f32.mrb[39].mxu0  ;;  %v4309_v55 = vld [vmem:[#allocation5 + $0x28] sm:$0xff]  }
 0x5cc   :  { %4002 = vmatprep.subr.bf16.mxu1 %v4305_v57  ;;  %v1517_v37 = vpack.c.bf16 %v1479_v36, %v1475_v11  ;;  %1492 = vmatmul.mubr.bf16.gmra.mrb[44].mxu0 %v4308_v54 }
 0x5cd   :  { %1501 = vmatprep.mubr.bf16.mxu0 %v4820_v0 }
 0x5cf   :  { %4003 = vmatpush3.bf16.msra.mxu1 %v4305_v57 }
 0x5d0   :  { %4004 = vmatprep.subr.bf16.mxu1 %v4306_v60 }
 0x5d3   :  { %4005 = vmatpush3.bf16.msra.mxu1 %v4306_v60 }
 0x5d4   :  { %4014 = vmatprep.subr.bf16.mxu1 %v1512_v1  ;;  %1502 = vmatmul.mubr.bf16.gmra.mrb[48].mxu0 %v4309_v55 }
 0x689   :  { %v5210_v14 = vpop.f32.mrb[20].mxu1 }
 0x68a   :  { %v5214_v15 = vsub.f32 %v5158_v30, %v5210_v14  ;;  %v5216_v16 = vpop.f32.mrb[21].mxu1 }
 0x68b   :  { %v5220_v17 = vsub.f32 %v5154_v26, %v5216_v16 }
 0x68d   :  { %v1150_v18 = vpack.c.bf16 %v5214_v15, %v5220_v17  ;;  %v5224_v19 = vpop.f32.mrb[22].mxu1 }
 0x68e   :  { %v5228_v20 = vsub.f32 %v5156_v29, %v5224_v19  ;;  %v5230_v21 = vpop.f32.mrb[23].mxu1 }
 0x68f   :  { %v5234_v22 = vsub.f32 %v5160_v31, %v5230_v21  ;;  %4006 = vmatprep.mubr.bf16.mxu1 %v1150_v18 }
 0x691   :  { %v1151_v23 = vpack.c.bf16 %v5228_v20, %v5234_v22  ;;  %v5238_v24 = vpop.f32.mrb[24].mxu1 }
 0x692   :  { %v5242_v26 = vsub.f32 %v5174_v43, %v5238_v24  ;;  %v5244_v30 = vpop.f32.mrb[25].mxu1 }
 0x693   :  { %v5248_v29 = vsub.f32 %v5170_v41, %v5244_v30  ;;  %4007 = vmatmul.mubr.bf16.vlgmr.msra.gmra.mrb[28].mxu1 %v1151_v23 }
 0x694   :  { %4015 = vmatpush3.bf16.xpose.msra.mxu1 %v1512_v1 }
 0x695   :  { %v1152_v31 = vpack.c.bf16 %v5242_v26, %v5248_v29  ;;  %v5252_v32 = vpop.f32.mrb[26].mxu1  ;;  %4016 = vmatprep.subr.bf16.mxu1 %v1514_v7 }
 0x696   :  { %v5256_v33 = vsub.f32 %v5172_v42, %v5252_v32  ;;  %v5258_v25 = vpop.f32.mrb[27].mxu1 }
 0x697   :  { %v5262_v34 = vsub.f32 %v5176_v44, %v5258_v25  ;;  %4010 = vmatprep.mubr.bf16.mxu1 %v1152_v31  ;;  %v1483_v55 = vpop.f32.mrb[40].mxu0 }
 0x699   :  { %v1153_v35 = vpack.c.bf16 %v5256_v33, %v5262_v34 }
 0x69b   :  { %4011 = vmatmul.mubr.bf16.gmra.mrb[32].mxu1 %v1153_v35 }
 0x69c   :  { %4017 = vmatpush3.bf16.xpose.msra.mxu1 %v1514_v7 }
 0x69d   :  { %4018 = vmatprep.subr.bf16.mxu1 %v1516_v13 }
 0x6a4   :  { %4019 = vmatpush3.bf16.xpose.msra.mxu1 %v1516_v13 }
 0x6a5   :  { %4024 = vmatprep.subr.bf16.mxu1 %v1513_v3 }
 0x766   :  { %v4008_v38 = vpop.f32.mrb[28].mxu1 }
 0x767   :  { %v1252_v39 = vpop.f32.mrb[29].mxu1 }
 0x768   :  { %v4009_v40 = vpop.f32.mrb[30].mxu1 }
 0x769   :  { %v1284_v41 = vpack.c.bf16 %v4009_v40, %v4008_v38  ;;  %v1255_v42 = vpop.f32.mrb[31].mxu1 }
 0x76a   :  { %v1283_v43 = vpack.c.bf16 %v1255_v42, %v1252_v39 }
 0x76c   :  { %4020 = vmatprep.mubr.bf16.mxu1 %v1283_v43 }
 0x76d   :  { %4021 = vmatmul.mubr.bf16.vlgmr.msra.gmra.mrb[36].mxu1 %v1284_v41 }
 0x76e   :  { %4025 = vmatpush3.bf16.msra.mxu1 %v1513_v3  ;;  %v5266_v44 = vpop.f32.mrb[32].mxu1 }
 0x76f   :  { %4026 = vmatprep.subr.bf16.mxu1 %v1515_v9  ;;  %v5268_v59 = vpop.f32.mrb[33].mxu1 }
 0x770   :  { %v5270_v45 = vpop.f32.mrb[34].mxu1 }
 0x771   :  { %v1286_v27 = vpack.c.bf16 %v5270_v45, %v5266_v44  ;;  %v5274_v46 = vpop.f32.mrb[35].mxu1  ;;  %v4317_v44 = vld [vmem:[#allocation14 + $0x38] sm:$0xff]  }
 0x772   :  { %v1285_v49 = vpack.c.bf16 %v5274_v46, %v5268_v59  ;;  %4027 = vmatpush3.bf16.msra.mxu1 %v1515_v9  ;;  %v4314_v59 = vld [vmem:[#allocation14 + $0x20] sm:$0xff]   ;;  %v4315_v46 = vld [vmem:[#allocation14 + $0x28] sm:$0xff]  }
 0x773   :  { %4028 = vmatprep.subr.bf16.mxu1 %v1517_v37 }
 0x776   :  { %4029 = vmatpush3.bf16.msra.mxu1 %v1517_v37 }
 0x840   :  { %v4022_v57 = vpop.f32.mrb[36].mxu1 }
 0x841   :  { %v1558_v60 = vpop.f32.mrb[37].mxu1  ;;  %v1575_v1 = vmul.f32 0.088388346, %v4022_v57  ;;  %v1485_v57 = vpop.f32.mrb[41].mxu0 }
 0x842   :  { %v1573_v61 = vmul.f32 0.088388346, %v1558_v60  ;;  %v4023_v62 = vpop.f32.mrb[38].mxu1  ;;  %v1487_v60 = vpop.f32.mrb[42].mxu0 }
 0x843   :  { %v1561_v63 = vpop.f32.mrb[39].mxu1  ;;  %v1576_v4 = vmul.f32 0.088388346, %v4023_v62  ;;  %v1584_v6 = vsel %vm1577_vm2, %v1575_v1, -inf }
 0x844   :  { %v1574_v2 = vmul.f32 0.088388346, %v1561_v63  ;;  %v1578_v3 = vsel %vm1577_vm2, %v1573_v61, -inf  ;;  %v1518_v63 = vpack.c.bf16 %v1487_v60, %v1483_v55 }
 0x845   :  { %1579 = vmax.xlane.f32.xlu0 %v1578_v3  ;;  %v1587_v7 = vsel %vm1577_vm2, %v1576_v4, -inf }
 0x846   :  { %v1581_v5 = vsel %vm1577_vm2, %v1574_v2, -inf  ;;  %4034 = vmatprep.subr.bf16.mxu1 %v1518_v63 }
 0x847   :  { %1582 = vmax.xlane.f32.xlu1 %v1581_v5 }
 0x849   :  { %1585 = vmax.xlane.f32.xlu0 %v1584_v6 }
 0x84b   :  { %1588 = vmax.xlane.f32.xlu1 %v1587_v7 }
 0x8d2   :  { %v1580_v8 = vpop.xlane.xlu0 %1579 }
 0x8d3   :  { %v1590_v9 = vsub.f32 %v1573_v61, %v1580_v8  ;;  %v1489_v61 = vpop.f32.mrb[43].mxu0 }
 0x8d4   :  { %v1583_v10 = vpop.xlane.xlu1 %1582  ;;  %v1519_v62 = vpack.c.bf16 %v1489_v61, %v1485_v57 }
 0x8d5   :  { %v1594_v11 = vmul.f32 1.442695, %v1590_v9  ;;  %v1591_v12 = vsub.f32 %v1574_v2, %v1583_v10 }
 0x8d6   :  { %v1586_v13 = vpop.xlane.xlu0 %1585  ;;  %4044 = vmatprep.subr.bf16.mxu0 %v1519_v62 }
 0x8d7   :  { %4458 = vpow2.f32 %v1594_v11  ;;  %v1596_v18 = vmul.f32 1.442695, %v1591_v12  ;;  %v1592_v23 = vsub.f32 %v1575_v1, %v1586_v13  ;;  %4045 = vmatpush3.bf16.msra.mxu0 %v1519_v62  ;;  %v1493_v1 = vpop.f32.mrb[44].mxu0 }
 0x8d8   :  { %v1589_v31 = vpop.xlane.xlu1 %1588  ;;  %v1495_v2 = vpop.f32.mrb[45].mxu0 }
 0x8d9   :  { %4460 = vpow2.f32 %v1596_v18  ;;  %v1598_v35 = vmul.f32 1.442695, %v1592_v23  ;;  %v1593_v36 = vsub.f32 %v1576_v4, %v1589_v31  ;;  %v1497_v3 = vpop.f32.mrb[46].mxu0 }
 0x8da   :  { %v1520_v4 = vpack.c.bf16 %v1497_v3, %v1493_v1  ;;  %v1499_v5 = vpop.f32.mrb[47].mxu0 }
 0x8db   :  { %4462 = vpow2.f32 %v1598_v35  ;;  %v1600_v37 = vmul.f32 1.442695, %v1593_v36  ;;  %v1521_v6 = vpack.c.bf16 %v1499_v5, %v1495_v2  ;;  %v1503_v7 = vpop.f32.mrb[48].mxu0 }
 0x8dc   :  { %v1505_v8 = vpop.f32.mrb[49].mxu0 }
 0x8dd   :  { %4464 = vpow2.f32 %v1600_v37  ;;  %4046 = vmatprep.subr.bf16.mxu0 %v1521_v6  ;;  %v1507_v9 = vpop.f32.mrb[50].mxu0 }
 0x8de   :  { %4047 = vmatpush3.bf16.msra.mxu0 %v1521_v6  ;;  %v1522_v10 = vpack.c.bf16 %v1507_v9, %v1503_v7  ;;  %v1509_v11 = vpop.f32.mrb[51].mxu0 }
 0x8df   :  { %v1523_v12 = vpack.c.bf16 %v1509_v11, %v1505_v8 }
 0x8e1   :  { %v4459_v38 = vpop.eup %4458  ;;  %4048 = vmatprep.subr.bf16.mxu0 %v1523_v12 }
 0x8e2   :  { %v1602_v39 = vsel %vm1577_vm2, %v4459_v38, 0.0  ;;  %4049 = vmatpush3.bf16.msra.mxu0 %v1523_v12 }
 0x8e3   :  { %v4461_v40 = vpop.eup %4460  ;;  %1603 = vadd.xlane.f32.xlu0 %v1602_v39 }
 0x8e4   :  { %v1605_v41 = vsel %vm1577_vm2, %v4461_v40, 0.0 }
 0x8e5   :  { %v4463_v42 = vpop.eup %4462  ;;  %1606 = vadd.xlane.f32.xlu1 %v1605_v41 }
 0x8e6   :  { %v1608_v43 = vsel %vm1577_vm2, %v4463_v42, 0.0 }
 0x8e7   :  { %v4465_v52 = vpop.eup %4464  ;;  %1609 = vadd.xlane.f32.xlu0 %v1608_v43 }
 0x8e8   :  { %v1611_v54 = vsel %vm1577_vm2, %v4465_v52, 0.0 }
 0x8e9   :  { %1612 = vadd.xlane.f32.xlu1 %v1611_v54 }
 0x970   :  { %v1604_v13 = vpop.xlane.xlu0 %1603 }
 0x971   :  { %4466 = vrcp.f32 %v1604_v13 }
 0x972   :  { %v1607_v18 = vpop.xlane.xlu1 %1606 }
 0x973   :  { %4468 = vrcp.f32 %v1607_v18 }
 0x974   :  { %v1610_v23 = vpop.xlane.xlu0 %1609 }
 0x975   :  { %4470 = vrcp.f32 %v1610_v23 }
 0x976   :  { %v1613_v31 = vpop.xlane.xlu1 %1612 }
 0x977   :  { %4472 = vrcp.f32 %v1613_v31 }
 0x97b   :  { %v4467_v35 = vpop.eup %4466 }
 0x97c   :  { %v1618_v37 = vmul.f32 %v4467_v35, %v4459_v38  ;;  %v4310_v38 = vld [vmem:[#allocation14] sm:$0xff]  }
 0x97d   :  { %v4469_v36 = vpop.eup %4468 }
 0x97e   :  { %v1619_v39 = vmul.f32 %v4469_v36, %v4461_v40  ;;  %v4311_v40 = vld [vmem:[#allocation14 + $0x8] sm:$0xff]  }
 0x97f   :  { %v4471_v41 = vpop.eup %4470 }
 0x980   :  { %v1622_v43 = vpack.c.bf16 %v1619_v39, %v1618_v37  ;;  %v1620_v55 = vmul.f32 %v4471_v41, %v4463_v42  ;;  %v4312_v42 = vld [vmem:[#allocation14 + $0x10] sm:$0xff]  }
 0x981   :  { %v4473_v54 = vpop.eup %4472 }
 0x982   :  { %v1621_v57 = vmul.f32 %v4473_v54, %v4465_v52  ;;  %4030 = vmatprep.mubr.msk.bf16.mxu1 %vm1577_vm2, %v1622_v43  ;;  %v4313_v52 = vld [vmem:[#allocation14 + $0x18] sm:$0xff]  }
 0x984   :  { %v1623_v60 = vpack.c.bf16 %v1621_v57, %v1620_v55 }
 0x986   :  { %4031 = vmatmul.mubr.msk.bf16.vlgmr.msra.gmra.mrb[40].mxu1 %vm1577_vm2, %v1623_v60 }
 0x987   :  { %4035 = vmatpush3.bf16.xpose.msra.mxu1 %v1518_v63  ;;  %4040 = vmatprep.mubr.bf16.mxu1 %v1285_v49  ;;  %v4316_v49 = vld [vmem:[#allocation14 + $0x30] sm:$0xff]  }
 0x988   :  { %4036 = vmatprep.subr.bf16.mxu1 %v1520_v4 }
 0x98f   :  { %4037 = vmatpush3.bf16.xpose.msra.mxu1 %v1520_v4 }
 0x990   :  { %4038 = vmatprep.subr.bf16.mxu1 %v1522_v10 }
 0x997   :  { %4039 = vmatpush3.bf16.xpose.msra.mxu1 %v1522_v10 }
 0x998   :  { %4054 = vmatprep.subr.bf16.mxu1 %v4310_v38 }
 0x99e   :  { %4041 = vmatmul.mubr.bf16.vlgmr.msra.gmra.mrb[44].mxu1 %v1286_v27 }
 0x99f   :  { %4055 = vmatpush3.bf16.msra.mxu1 %v4310_v38 }
 0x9a0   :  { %4056 = vmatprep.subr.bf16.mxu1 %v4311_v40 }
 0x9a3   :  { %4057 = vmatpush3.bf16.msra.mxu1 %v4311_v40 }
 0x9a4   :  { %4058 = vmatprep.subr.bf16.mxu1 %v4312_v42 }
 0x9a7   :  { %4059 = vmatpush3.bf16.msra.mxu1 %v4312_v42 }
 0x9a8   :  { %4060 = vmatprep.subr.bf16.mxu1 %v4313_v52 }
 0x9ab   :  { %4061 = vmatpush3.bf16.msra.mxu1 %v4313_v52 }
 0x9ac   :  { %4062 = vmatprep.subr.bf16.mxu1 %v4314_v59 }
 0x9af   :  { %4063 = vmatpush3.bf16.msra.mxu1 %v4314_v59 }
 0x9b0   :  { %4064 = vmatprep.subr.bf16.mxu1 %v4315_v46 }
 0x9b3   :  { %4065 = vmatpush3.bf16.msra.mxu1 %v4315_v46 }
 0x9b4   :  { %4066 = vmatprep.subr.bf16.mxu1 %v4316_v49 }
 0x9b7   :  { %4067 = vmatpush3.bf16.msra.mxu1 %v4316_v49 }
 0x9b8   :  { %4068 = vmatprep.subr.bf16.mxu1 %v4317_v44 }
 0x9bb   :  { %4069 = vmatpush3.bf16.msra.mxu1 %v4317_v44 }
 0xa59   :  { %v4032_v45 = vpop.f32.mrb[40].mxu1 }
 0xa5a   :  { %v1664_v27 = vpop.f32.mrb[41].mxu1 }
 0xa5b   :  { %v4033_v61 = vpop.f32.mrb[42].mxu1 }
 0xa5c   :  { %v1834_v62 = vpack.c.bf16 %v4033_v61, %v4032_v45  ;;  %v1667_v63 = vpop.f32.mrb[43].mxu1 }
 0xa5d   :  { %v1833_v1 = vpack.c.bf16 %v1667_v63, %v1664_v27 }
 0xa5f   :  { %4070 = vmatprep.mubr.bf16.mxu1 %v1833_v1 }
 0xa60   :  { %4071 = vmatmul.mubr.bf16.vlgmr.msra.gmra.mrb[48].mxu1 %v1834_v62 }
 0xa71   :  { %v4042_v2 = vpop.f32.mrb[44].mxu1 }
 0xa72   :  { %v1713_v3 = vpop.f32.mrb[45].mxu1  ;;  %v1730_v7 = vmul.f32 0.088388346, %v4042_v2 }
 0xa73   :  { %v1728_v4 = vmul.f32 0.088388346, %v1713_v3  ;;  %v4043_v5 = vpop.f32.mrb[46].mxu1 }
 0xa74   :  { %v1716_v6 = vpop.f32.mrb[47].mxu1  ;;  %v1731_v10 = vmul.f32 0.088388346, %v4043_v5  ;;  %v1738_v12 = vsel %vm1577_vm2, %v1730_v7, -inf }
 0xa75   :  { %v1729_v8 = vmul.f32 0.088388346, %v1716_v6  ;;  %v1732_v9 = vsel %vm1577_vm2, %v1728_v4, -inf }
 0xa76   :  { %1733 = vmax.xlane.f32.xlu0 %v1732_v9  ;;  %v1741_v13 = vsel %vm1577_vm2, %v1731_v10, -inf }
 0xa77   :  { %v1735_v11 = vsel %vm1577_vm2, %v1729_v8, -inf }
 0xa78   :  { %1736 = vmax.xlane.f32.xlu1 %v1735_v11 }
 0xa7a   :  { %1739 = vmax.xlane.f32.xlu0 %v1738_v12 }
 0xa7c   :  { %1742 = vmax.xlane.f32.xlu1 %v1741_v13 }
 0xb03   :  { %v1734_v18 = vpop.xlane.xlu0 %1733 }
 0xb04   :  { %v1744_v23 = vsub.f32 %v1728_v4, %v1734_v18 }
 0xb05   :  { %v1737_v31 = vpop.xlane.xlu1 %1736 }
 0xb06   :  { %v1748_v35 = vmul.f32 1.442695, %v1744_v23  ;;  %v1745_v36 = vsub.f32 %v1729_v8, %v1737_v31 }
 0xb07   :  { %v1740_v37 = vpop.xlane.xlu0 %1739 }
 0xb08   :  { %4474 = vpow2.f32 %v1748_v35  ;;  %v1750_v39 = vmul.f32 1.442695, %v1745_v36  ;;  %v1746_v41 = vsub.f32 %v1730_v7, %v1740_v37 }
 0xb09   :  { %v1743_v43 = vpop.xlane.xlu1 %1742 }
 0xb0a   :  { %4476 = vpow2.f32 %v1750_v39  ;;  %v1752_v54 = vmul.f32 1.442695, %v1746_v41  ;;  %v1747_v55 = vsub.f32 %v1731_v10, %v1743_v43  ;;  %v4323_v43 = vld [vmem:[#allocation16 + $0xc] ss:$16 sps:$4 sm:$0xff]  }
 0xb0b   :  { %2364 = vmatprep.subr.bf16.mxu1 %v4323_v43  ;;  %v4368_v43 = vld [vmem:[#allocation17] sm:$0xff]  }
 0xb0c   :  { %4478 = vpow2.f32 %v1752_v54  ;;  %v1754_v57 = vmul.f32 1.442695, %v1747_v55  ;;  %v4329_v54 = vld [vmem:[#allocation16 + $0x2c] ss:$16 sps:$4 sm:$0xff]   ;;  %v4327_v55 = vld [vmem:[#allocation16 + $0x28] ss:$16 sps:$4 sm:$0xff]  }
 0xb0e   :  { %4480 = vpow2.f32 %v1754_v57  ;;  %v4333_v57 = vld [vmem:[#allocation16 + $0x48] ss:$16 sps:$4 sm:$0xff]  }
 0xb12   :  { %v4475_v60 = vpop.eup %4474 }
 0xb13   :  { %v1756_v38 = vsel %vm1577_vm2, %v4475_v60, 0.0 }
 0xb14   :  { %v4477_v40 = vpop.eup %4476  ;;  %1757 = vadd.xlane.f32.xlu0 %v1756_v38  ;;  %v4339_v38 = vld [vmem:[#allocation16 + $0x68] ss:$16 sps:$4 sm:$0xff]  }
 0xb15   :  { %v1759_v42 = vsel %vm1577_vm2, %v4477_v40, 0.0 }
 0xb16   :  { %v4479_v52 = vpop.eup %4478  ;;  %1760 = vadd.xlane.f32.xlu1 %v1759_v42  ;;  %v4345_v42 = vld [vmem:[#allocation16 + $0x88] ss:$16 sps:$4 sm:$0xff]  }
 0xb17   :  { %v1762_v59 = vsel %vm1577_vm2, %v4479_v52, 0.0 }
 0xb18   :  { %v4481_v46 = vpop.eup %4480  ;;  %1763 = vadd.xlane.f32.xlu0 %v1762_v59  ;;  %v4351_v59 = vld [vmem:[#allocation16 + $0xa8] ss:$16 sps:$4 sm:$0xff]  }
 0xb19   :  { %v1765_v49 = vsel %vm1577_vm2, %v4481_v46, 0.0 }
 0xb1a   :  { %1766 = vadd.xlane.f32.xlu1 %v1765_v49  ;;  %v4357_v49 = vld [vmem:[#allocation16 + $0xc8] ss:$16 sps:$4 sm:$0xff]  }
 0xb33   :  { %v4072_v44 = vpop.f32.mrb[48].mxu1 }
 0xb34   :  { %v1935_v45 = vpop.f32.mrb[49].mxu1  ;;  %v5317_v18 = vadd.f32 %v4072_v44, %v5234_v22  ;;  %v4321_v22 = vld [vmem:[#allocation16 + $0x8] ss:$16 sps:$4 sm:$0xff]  }
 0xb35   :  { %v4073_v27 = vpop.f32.mrb[50].mxu1  ;;  %v5305_v62 = vadd.f32 %v1935_v45, %v5220_v17  ;;  %2365 = vmatpush1.bf16.msra.mxu1 %v4321_v22 }
 0xb36   :  { %v1938_v61 = vpop.f32.mrb[51].mxu1  ;;  %v5313_v11 = vadd.f32 %v4073_v27, %v5228_v20  ;;  %2366 = vmatprep.subr.bf16.mxu1 %v4329_v54  ;;  %v4369_v54 = vld [vmem:[#allocation17 + $0x80] sm:$0xff]  }
 0xb37   :  { %v5308_v63 = vadd.f32 %v1938_v61, %v5214_v15 }
 0xb38   :  { %v4178_v31 = vpack.c.bf16 %v5313_v11, %v5317_v18 }
 0xb39   :  { %v4174_v1 = vpack.c.bf16 %v5308_v63, %v5305_v62  ;;  %2367 = vmatpush1.bf16.msra.mxu1 %v4327_v55 }
 0xb3b   :  { %4175 = vmatprep.subr.bf16.mxu0 %v4174_v1 }
 0xba1   :  { %v1758_v2 = vpop.xlane.xlu0 %1757 }
 0xba2   :  { %4482 = vrcp.f32 %v1758_v2 }
 0xba3   :  { %v1761_v3 = vpop.xlane.xlu1 %1760 }
 0xba4   :  { %4484 = vrcp.f32 %v1761_v3 }
 0xba5   :  { %v1764_v4 = vpop.xlane.xlu0 %1763 }
 0xba6   :  { %4486 = vrcp.f32 %v1764_v4 }
 0xba7   :  { %v1767_v5 = vpop.xlane.xlu1 %1766 }
 0xba8   :  { %4488 = vrcp.f32 %v1767_v5 }
 0xbac   :  { %v4483_v6 = vpop.eup %4482 }
 0xbad   :  { %v1772_v8 = vmul.f32 %v4483_v6, %v4475_v60  ;;  %v4341_v60 = vld [vmem:[#allocation16 + $0x6c] ss:$16 sps:$4 sm:$0xff]  }
 0xbae   :  { %v4485_v7 = vpop.eup %4484 }
 0xbaf   :  { %v1773_v17 = vmul.f32 %v4485_v7, %v4477_v40  ;;  %v4347_v40 = vld [vmem:[#allocation16 + $0x8c] ss:$16 sps:$4 sm:$0xff]   ;;  %v4318_v7 = vld [vmem:[#allocation16] ss:$16 sps:$4 sm:$0xff]  }
 0xbb0   :  { %v4487_v9 = vpop.eup %4486 }
 0xbb1   :  { %v1776_v10 = vpack.c.bf16 %v1773_v17, %v1772_v8  ;;  %v1774_v12 = vmul.f32 %v4487_v9, %v4479_v52  ;;  %v4353_v52 = vld [vmem:[#allocation16 + $0xac] ss:$16 sps:$4 sm:$0xff]   ;;  %v4330_v8 = vld [vmem:[#allocation16 + $0x40] ss:$16 sps:$4 sm:$0xff]   ;;  %v4338_v17 = vld [vmem:[#allocation16 + $0x64] ss:$16 sps:$4 sm:$0xff]  }
 0xbb2   :  { %v4489_v15 = vpop.eup %4488  ;;  %v4348_v9 = vld [vmem:[#allocation16 + $0xa0] ss:$16 sps:$4 sm:$0xff]  }
 0xbb3   :  { %v1775_v13 = vmul.f32 %v4489_v15, %v4481_v46  ;;  %4050 = vmatprep.mubr.msk.bf16.mxu0 %vm1577_vm2, %v1776_v10  ;;  %v4359_v46 = vld [vmem:[#allocation16 + $0xcc] ss:$16 sps:$4 sm:$0xff]   ;;  %v4354_v10 = vld [vmem:[#allocation16 + $0xc0] ss:$16 sps:$4 sm:$0xff]  }
 0xbb4   :  { %v4365_v15 = vld [vmem:[#allocation16 + $0xec] ss:$16 sps:$4 sm:$0xff]  }
 0xbb5   :  { %v1777_v23 = vpack.c.bf16 %v1775_v13, %v1774_v12  ;;  %v4360_v12 = vld [vmem:[#allocation16 + $0xe0] ss:$16 sps:$4 sm:$0xff]   ;;  %v4363_v13 = vld [vmem:[#allocation16 + $0xe8] ss:$16 sps:$4 sm:$0xff]  }
 0xbb7   :  { %4051 = vmatmul.mubr.msk.bf16.vlgmr.msra.gmra.mrb[52].mxu0 %vm1577_vm2, %v1777_v23  ;;  %v4367_v23 = vld [vmem:[#allocation17 + $0xc0] sm:$0xff]  }
 0xbb8   :  { %4177 = vmatpush3.bf16.msra.mxu0 %v4174_v1  ;;  %4094 = vmatprep.mubr.msk.f32.mxu0 %vm1012_vm1, %v5145_v58  ;;  %v4335_v58 = vld [vmem:[#allocation16 + $0x4c] ss:$16 sps:$4 sm:$0xff]  }
 0xbb9   :  { %4179 = vmatprep.subr.bf16.mxu0 %v4178_v31  ;;  %2368 = vmatprep.subr.bf16.mxu1 %v4335_v58  ;;  %v4370_v58 = vld [vmem:[#allocation17 + $0x48] sm:$0xff]  }
 0xbba   :  { %2369 = vmatpush1.bf16.msra.mxu1 %v4333_v57 }
 0xbbb   :  { %2370 = vmatprep.subr.bf16.mxu1 %v4341_v60  ;;  %v4372_v60 = vld [vmem:[#allocation17 + $0x8] sm:$0xff]  }
 0xbbc   :  { %4181 = vmatpush3.bf16.msra.mxu0 %v4178_v31 }
 0xbbe   :  { %2371 = vmatpush1.bf16.msra.mxu1 %v4339_v38  ;;  %v4373_v38 = vld [vmem:[#allocation17 + $0x88] sm:$0xff]  }
 0xbbf   :  { %2372 = vmatprep.subr.bf16.mxu1 %v4347_v40 }
 0xbc2   :  { %2373 = vmatpush1.bf16.msra.mxu1 %v4345_v42  ;;  %v4374_v42 = vld [vmem:[#allocation17 + $0x50] sm:$0xff]  }
 0xbc3   :  { %2374 = vmatprep.subr.bf16.mxu1 %v4353_v52  ;;  %v4375_v52 = vld [vmem:[#allocation17 + $0xd0] sm:$0xff]  }
 0xbc6   :  { %2375 = vmatpush1.bf16.msra.mxu1 %v4351_v59 }
 0xbc7   :  { %2376 = vmatprep.subr.bf16.mxu1 %v4359_v46  ;;  %v4376_v46 = vld [vmem:[#allocation17 + $0x10] sm:$0xff]  }
 0xbca   :  { %2377 = vmatpush1.bf16.msra.mxu1 %v4357_v49  ;;  %v4377_v49 = vld [vmem:[#allocation17 + $0x90] sm:$0xff]  }
 0xbcb   :  { %2378 = vmatprep.subr.bf16.mxu1 %v4365_v15 }
 0xbce   :  { %2379 = vmatpush1.bf16.msra.mxu1 %v4363_v13 }
 0xbcf   :  { %3774 = vmatprep.subr.bf16.mxu1 %v4367_v23 }
 0xc8a   :  { %v4052_v20 = vpop.f32.mrb[52].mxu0 }
 0xc8b   :  { %v1818_v35 = vpop.f32.mrb[53].mxu0 }
 0xc8c   :  { %v4053_v36 = vpop.f32.mrb[54].mxu0 }
 0xc8d   :  { %v1836_v37 = vpack.c.bf16 %v4053_v36, %v4052_v20  ;;  %v1821_v39 = vpop.f32.mrb[55].mxu0 }
 0xc8e   :  { %v1835_v41 = vpack.c.bf16 %v1821_v39, %v1818_v35 }
 0xc90   :  { %4074 = vmatprep.mubr.bf16.mxu1 %v1835_v41 }
 0xc91   :  { %4075 = vmatmul.mubr.bf16.gmra.mrb[52].mxu1 %v1836_v37 }
 0xc92   :  { %2396 = vmatprep.mubr.bf16.mxu1 %v4820_v0 }
 0xd64   :  { %v4076_v44 = vpop.f32.mrb[52].mxu1 }
 0xd65   :  { %v1951_v45 = vpop.f32.mrb[53].mxu1  ;;  %v5335_v4 = vadd.f32 %v4076_v44, %v5262_v34  ;;  %v4332_v34 = vld [vmem:[#allocation16 + $0x44] ss:$16 sps:$4 sm:$0xff]  }
 0xd66   :  { %v4077_v27 = vpop.f32.mrb[54].mxu1  ;;  %v5326_v1 = vadd.f32 %v1951_v45, %v5248_v29  ;;  %v4320_v29 = vld [vmem:[#allocation16 + $0x4] ss:$16 sps:$4 sm:$0xff]   ;;  %v4378_v45 = vld [vmem:[#allocation17 + $0x58] sm:$0xff]  }
 0xd67   :  { %v1954_v61 = vpop.f32.mrb[55].mxu1  ;;  %v5329_v2 = vadd.f32 %v4077_v27, %v5256_v33  ;;  %v4326_v33 = vld [vmem:[#allocation16 + $0x24] ss:$16 sps:$4 sm:$0xff]   ;;  %v4379_v27 = vld [vmem:[#allocation17 + $0xd8] sm:$0xff]  }
 0xd68   :  { %v5332_v3 = vadd.f32 %v1954_v61, %v5242_v26  ;;  %v4324_v26 = vld [vmem:[#allocation16 + $0x20] ss:$16 sps:$4 sm:$0xff]  }
 0xd69   :  { %v4186_v6 = vpack.c.bf16 %v5329_v2, %v5335_v4 }
 0xd6a   :  { %v4182_v5 = vpack.c.bf16 %v5332_v3, %v5326_v1 }
 0xd6c   :  { %4183 = vmatprep.subr.bf16.mxu0 %v4182_v5 }
 0xd6d   :  { %4185 = vmatpush3.bf16.msra.mxu0 %v4182_v5  ;;  %v4380_v5 = vld [vmem:[#allocation17 + $0x18] sm:$0xff]  }
 0xd6e   :  { %4187 = vmatprep.subr.bf16.mxu0 %v4186_v6 }
 0xd71   :  { %4189 = vmatpush3.bf16.msra.mxu0 %v4186_v6  ;;  %v4381_v6 = vld [vmem:[#allocation17 + $0x98] sm:$0xff]  }
 0xd72   :  { %2291 = vmatprep.subr.bf16.mxu0 %v4320_v29  ;;  %v4383_v29 = vld [vmem:[#allocation17 + $0xe0] sm:$0xff]  }
 0xd74   :  { %4095 = vmatmul.mubr.msk.f32.vlgmr.msra.gmra.mrb[56].mxu0 %vm1012_vm1, %v5182_v28  ;;  %v4336_v28 = vld [vmem:[#allocation16 + $0x60] ss:$16 sps:$4 sm:$0xff]  }
 0xd75   :  { %4097 = vmatprep.mubr.msk.f32.mxu0 %vm1012_vm1, %v5184_v56  ;;  %2292 = vmatpush1.bf16.msra.mxu0 %v4318_v7  ;;  %v4344_v56 = vld [vmem:[#allocation16 + $0x84] ss:$16 sps:$4 sm:$0xff]  }
 0xd76   :  { %2293 = vmatprep.subr.bf16.mxu0 %v4326_v33  ;;  %v4384_v33 = vld [vmem:[#allocation17 + $0x20] sm:$0xff]  }
 0xd78   :  { %4098 = vmatmul.mubr.msk.f32.gmra.mrb[58].mxu0 %vm1012_vm1, %v5190_v47  ;;  %v4342_v47 = vld [vmem:[#allocation16 + $0x80] ss:$16 sps:$4 sm:$0xff]  }
 0xd79   :  { %4100 = vmatprep.mubr.msk.f32.mxu0 %vm1012_vm1, %v5192_v48  ;;  %2294 = vmatpush1.bf16.msra.mxu0 %v4324_v26  ;;  %v4350_v48 = vld [vmem:[#allocation16 + $0xa4] ss:$16 sps:$4 sm:$0xff]  }
 0xd7a   :  { %2295 = vmatprep.subr.bf16.mxu0 %v4332_v34  ;;  %v4385_v26 = vld [vmem:[#allocation17 + $0xa0] sm:$0xff]  }
 0xd7c   :  { %4101 = vmatmul.mubr.msk.f32.gmra.mrb[60].mxu0 %vm1012_vm1, %v5198_v50  ;;  %v4356_v50 = vld [vmem:[#allocation16 + $0xc4] ss:$16 sps:$4 sm:$0xff]  }
 0xd7d   :  { %4103 = vmatprep.mubr.msk.f32.mxu0 %vm1012_vm1, %v5200_v51  ;;  %2296 = vmatpush1.bf16.msra.mxu0 %v4330_v8  ;;  %v4362_v51 = vld [vmem:[#allocation16 + $0xe4] ss:$16 sps:$4 sm:$0xff]  }
 0xd7e   :  { %2297 = vmatprep.subr.bf16.mxu0 %v4338_v17  ;;  %v4388_v17 = vld [vmem:[#allocation17 + $0x28] sm:$0xff]  }
 0xd80   :  { %4104 = vmatmul.mubr.msk.f32.gmra.mrb[62].mxu0 %vm1012_vm1, %v5206_v53  ;;  %v4366_v53 = vld [vmem:[#allocation17 + $0x40] sm:$0xff]  }
 0xd81   :  { %2298 = vmatpush1.bf16.msra.mxu0 %v4336_v28  ;;  %2323 = vmatprep.mubr.bf16.mxu0 %v4820_v0  ;;  %v4389_v28 = vld [vmem:[#allocation17 + $0xa8] sm:$0xff]  }
 0xd82   :  { %2299 = vmatprep.subr.bf16.mxu0 %v4344_v56 }
 0xd85   :  { %2300 = vmatpush1.bf16.msra.mxu0 %v4342_v47  ;;  %v4391_v47 = vld [vmem:[#allocation17 + $0xf0] sm:$0xff]  }
 0xd86   :  { %2301 = vmatprep.subr.bf16.mxu0 %v4350_v48  ;;  %v4393_v48 = vld [vmem:[#allocation17 + $0xb0] sm:$0xff]  }
 0xd89   :  { %2302 = vmatpush1.bf16.msra.mxu0 %v4348_v9  ;;  %v4395_v9 = vld [vmem:[#allocation17 + $0xf8] sm:$0xff]  }
 0xd8a   :  { %2303 = vmatprep.subr.bf16.mxu0 %v4356_v50  ;;  %v4396_v50 = vld [vmem:[#allocation17 + $0x38] sm:$0xff]  }
 0xd8d   :  { %2304 = vmatpush1.bf16.msra.mxu0 %v4354_v10  ;;  %v4397_v10 = vld [vmem:[#allocation17 + $0xb8] sm:$0xff]  }
 0xd8e   :  { %2305 = vmatprep.subr.bf16.mxu0 %v4362_v51 }
 0xd91   :  { %2306 = vmatpush1.bf16.msra.mxu0 %v4360_v12 }
 0xd92   :  { %3734 = vmatprep.subr.bf16.mxu0 %v4366_v53 }
 0xe47   :  { %v4096_v31 = vpop.f32.mrb[56].mxu0 }
 0xe48   :  { %v5357_v20 = vsub.f32 %v5308_v63, %v4096_v31  ;;  %v5360_v35 = vadd.f32 %v4096_v31, %v5210_v14  ;;  %v2040_v36 = vpop.f32.mrb[57].mxu0  ;;  %v4371_v14 = vld [vmem:[#allocation17 + $0xc8] sm:$0xff]  }
 0xe49   :  { %v5363_v37 = vsub.f32 %v5305_v62, %v2040_v36  ;;  %v5366_v39 = vadd.f32 %v2040_v36, %v5216_v16 }
 0xe4b   :  { %v2095_v41 = vpack.c.bf16 %v5357_v20, %v5363_v37  ;;  %v4099_v22 = vpop.f32.mrb[58].mxu0 }
 0xe4c   :  { %v5371_v55 = vadd.f32 %v4099_v22, %v5224_v19  ;;  %v2050_v63 = vpop.f32.mrb[59].mxu0  ;;  %v5379_v16 = vsub.f32 %v5313_v11, %v4099_v22 }
 0xe4d   :  { %v5374_v57 = vadd.f32 %v2050_v63, %v5230_v21  ;;  %2324 = vmatmul.mubr.bf16.vlgmr.msra.gmra.mrb[64].mxu0 %v2095_v41  ;;  %2397 = vmatmul.mubr.bf16.vlgmr.msra.gmra.mrb[56].mxu1 %v2095_v41  ;;  %v5382_v62 = vsub.f32 %v5317_v18, %v2050_v63 }
 0xe4e   :  { %2333 = vmatprep.mubr.bf16.mxu0 %v4820_v0  ;;  %2406 = vmatprep.mubr.bf16.mxu1 %v4820_v0 }
 0xe4f   :  { %v4102_v19 = vpop.f32.mrb[60].mxu0  ;;  %3735 = vmatpush3.bf16.msra.mxu0 %v4368_v43  ;;  %3775 = vmatpush3.bf16.msra.mxu1 %v4369_v54  ;;  %v2096_v11 = vpack.c.bf16 %v5379_v16, %v5382_v62 }
 0xe50   :  { %v5385_v21 = vadd.f32 %v4102_v19, %v5238_v24  ;;  %v2060_v40 = vpop.f32.mrb[61].mxu0  ;;  %3736 = vmatprep.subr.bf16.mxu0 %v4370_v58  ;;  %3776 = vmatprep.subr.bf16.mxu1 %v4371_v14 }
 0xe51   :  { %v5388_v59 = vadd.f32 %v2060_v40, %v5244_v30  ;;  %v5401_v30 = vsub.f32 %v5332_v3, %v4102_v19  ;;  %v4386_v3 = vld [vmem:[#allocation17 + $0x68] sm:$0xff]  }
 0xe53   :  { %v4105_v18 = vpop.f32.mrb[62].mxu0  ;;  %3737 = vmatpush3.bf16.msra.mxu0 %v4372_v60  ;;  %3777 = vmatpush3.bf16.msra.mxu1 %v4373_v38 }
 0xe54   :  { %v5393_v44 = vadd.f32 %v4105_v18, %v5252_v32  ;;  %v2070_v24 = vpop.f32.mrb[63].mxu0  ;;  %3738 = vmatprep.subr.bf16.mxu0 %v4374_v42  ;;  %3778 = vmatprep.subr.bf16.mxu1 %v4375_v52  ;;  %v5404_v32 = vsub.f32 %v5326_v1, %v2060_v40  ;;  %v4387_v1 = vld [vmem:[#allocation17 + $0xe8] sm:$0xff]   ;;  %v5411_v34 = vsub.f32 %v5329_v2, %v4105_v18  ;;  %v4392_v2 = vld [vmem:[#allocation17 + $0x30] sm:$0xff]  }
 0xe55   :  { %v5396_v61 = vadd.f32 %v2070_v24, %v5258_v25  ;;  %2334 = vmatmul.mubr.bf16.gmra.mrb[68].mxu0 %v2096_v11  ;;  %2407 = vmatmul.mubr.bf16.gmra.mrb[60].mxu1 %v2096_v11  ;;  %v4382_v25 = vld [vmem:[#allocation17 + $0x60] sm:$0xff]   ;;  %v5414_v8 = vsub.f32 %v5335_v4, %v2070_v24  ;;  %v4394_v4 = vld [vmem:[#allocation17 + $0x78] sm:$0xff]  }
 0xe56   :  { %2343 = vmatprep.mubr.bf16.mxu0 %v4820_v0  ;;  %2416 = vmatprep.mubr.bf16.mxu1 %v4820_v0  ;;  %v2097_v7 = vpack.c.bf16 %v5401_v30, %v5404_v32 }
 0xe57   :  { %3739 = vmatpush3.bf16.msra.mxu0 %v4376_v46  ;;  %3779 = vmatpush3.bf16.msra.mxu1 %v4377_v49  ;;  %v2098_v56 = vpack.c.bf16 %v5411_v34, %v5414_v8 }
 0xe58   :  { %3740 = vmatprep.subr.bf16.mxu0 %v4378_v45  ;;  %3780 = vmatprep.subr.bf16.mxu1 %v4379_v27 }
 0xe5b   :  { %3741 = vmatpush3.bf16.msra.mxu0 %v4380_v5  ;;  %3781 = vmatpush3.bf16.msra.mxu1 %v4381_v6 }
 0xe5c   :  { %3742 = vmatprep.subr.bf16.mxu0 %v4382_v25  ;;  %3782 = vmatprep.subr.bf16.mxu1 %v4383_v29 }
 0xe5d   :  { %2344 = vmatmul.mubr.bf16.gmra.mrb[72].mxu0 %v2097_v7  ;;  %2417 = vmatmul.mubr.bf16.gmra.mrb[64].mxu1 %v2097_v7 }
 0xe5e   :  { %2353 = vmatprep.mubr.bf16.mxu0 %v4820_v0  ;;  %2426 = vmatprep.mubr.bf16.mxu1 %v4820_v0  ;;  %v4390_v0 = vld [vmem:[#allocation17 + $0x70] sm:$0xff]  }
 0xe5f   :  { %3743 = vmatpush3.bf16.msra.mxu0 %v4384_v33  ;;  %3783 = vmatpush3.bf16.msra.mxu1 %v4385_v26 }
 0xe60   :  { %3744 = vmatprep.subr.bf16.mxu0 %v4386_v3  ;;  %3784 = vmatprep.subr.bf16.mxu1 %v4387_v1 }
 0xe63   :  { %3745 = vmatpush3.bf16.msra.mxu0 %v4388_v17  ;;  %3785 = vmatpush3.bf16.msra.mxu1 %v4389_v28 }
 0xe64   :  { %3746 = vmatprep.subr.bf16.mxu0 %v4390_v0  ;;  %3786 = vmatprep.subr.bf16.mxu1 %v4391_v47 }
 0xe65   :  { %2354 = vmatmul.mubr.bf16.gmra.mrb[76].mxu0 %v2098_v56  ;;  %2427 = vmatmul.mubr.bf16.gmra.mrb[68].mxu1 %v2098_v56 }
 0xe67   :  { %3747 = vmatpush3.bf16.msra.mxu0 %v4392_v2  ;;  %3787 = vmatpush3.bf16.msra.mxu1 %v4393_v48 }
 0xe68   :  { %3748 = vmatprep.subr.bf16.mxu0 %v4394_v4  ;;  %3788 = vmatprep.subr.bf16.mxu1 %v4395_v9 }
 0xe6b   :  { %3749 = vmatpush3.bf16.msra.mxu0 %v4396_v50  ;;  %3789 = vmatpush3.bf16.msra.mxu1 %v4397_v10 }
 0xf20   :  { %v2325_v51 = vpop.f32.mrb[64].mxu0  ;;  %v2398_v15 = vpop.f32.mrb[56].mxu1 }
 0xf21   :  { %v2327_v12 = vpop.f32.mrb[65].mxu0  ;;  %v2400_v13 = vpop.f32.mrb[57].mxu1  ;;  %v2437_v31 = vmax.f32 %v2325_v51, 0.0  ;;  %v2439_v36 = vmax.f32 %v2398_v15, 0.0 }
 0xf22   :  { %v2329_v53 = vpop.f32.mrb[66].mxu0  ;;  %v2402_v23 = vpop.f32.mrb[58].mxu1  ;;  %v2438_v63 = vmax.f32 %v2327_v12, 0.0  ;;  %v2440_v58 = vmax.f32 %v2400_v13, 0.0 }
 0xf23   :  { %v2441_v41 = vmax.f32 %v2329_v53, 0.0  ;;  %v2443_v22 = vmax.f32 %v2402_v23, 0.0  ;;  %v2331_v43 = vpop.f32.mrb[67].mxu0  ;;  %v2404_v54 = vpop.f32.mrb[59].mxu1 }
 0xf24   :  { %v2442_v14 = vmax.f32 %v2331_v43, 0.0  ;;  %v2444_v19 = vmax.f32 %v2404_v54, 0.0 }
 0xf25   :  { %v2469_v60 = vpack.c.bf16 %v2441_v41, %v2437_v31  ;;  %v2471_v38 = vpack.c.bf16 %v2443_v22, %v2439_v36 }
 0xf26   :  { %v2470_v40 = vpack.c.bf16 %v2442_v14, %v2438_v63  ;;  %v2472_v42 = vpack.c.bf16 %v2444_v19, %v2440_v58 }
 0xf28   :  { %v2335_v52 = vpop.f32.mrb[68].mxu0  ;;  %v2408_v11 = vpop.f32.mrb[60].mxu1  ;;  %2773 = vmatprep.mubr.bf16.mxu0 %v2470_v40  ;;  %2838 = vmatprep.mubr.bf16.mxu1 %v2472_v42 }
 0xf29   :  { %v2337_v18 = vpop.f32.mrb[69].mxu0  ;;  %v2410_v46 = vpop.f32.mrb[61].mxu1  ;;  %2774 = vmatmul.mubr.bf16.vlgmr.msra.gmra.mrb[80].mxu0 %v2469_v60  ;;  %2839 = vmatmul.mubr.bf16.vlgmr.msra.gmra.mrb[72].mxu1 %v2471_v38  ;;  %v2445_v45 = vmax.f32 %v2335_v52, 0.0  ;;  %v2447_v27 = vmax.f32 %v2408_v11, 0.0 }
 0xf2a   :  { %v2339_v49 = vpop.f32.mrb[70].mxu0  ;;  %v2412_v24 = vpop.f32.mrb[62].mxu1  ;;  %v2446_v7 = vmax.f32 %v2337_v18, 0.0  ;;  %v2448_v33 = vmax.f32 %v2410_v46, 0.0 }
 0xf2b   :  { %v2449_v5 = vmax.f32 %v2339_v49, 0.0  ;;  %v2451_v6 = vmax.f32 %v2412_v24, 0.0  ;;  %v2341_v25 = vpop.f32.mrb[71].mxu0  ;;  %v2414_v29 = vpop.f32.mrb[63].mxu1 }
 0xf2c   :  { %v2450_v26 = vmax.f32 %v2341_v25, 0.0  ;;  %v2452_v3 = vmax.f32 %v2414_v29, 0.0 }
 0xf2d   :  { %v2473_v1 = vpack.c.bf16 %v2449_v5, %v2445_v45  ;;  %v2475_v17 = vpack.c.bf16 %v2451_v6, %v2447_v27 }
 0xf2e   :  { %v2474_v28 = vpack.c.bf16 %v2450_v26, %v2446_v7  ;;  %v2476_v56 = vpack.c.bf16 %v2452_v3, %v2448_v33  ;;  %v4491_v7 = vld [vmem:[#allocation7] sm:$0xff]  ;;  %v4401_v3 = vld [vmem:[#allocation19 + $0x48] sm:$0xff]  }
 0xf2f   :  { %v4398_v33 = vld [vmem:[#allocation19 + $0x40] sm:$0xff]  }
 0xf30   :  { %v2345_v0 = vpop.f32.mrb[72].mxu0  ;;  %v2418_v47 = vpop.f32.mrb[64].mxu1  ;;  %2781 = vmatprep.mubr.bf16.mxu0 %v2474_v28  ;;  %2846 = vmatprep.mubr.bf16.mxu1 %v2476_v56  ;;  %v4399_v26 = vld [vmem:[#allocation19] sm:$0xff]   ;;  %v4405_v28 = vld [vmem:[#allocation19 + $0x10] sm:$0xff]   ;;  %v4407_v56 = vld [vmem:[#allocation19 + $0x58] sm:$0xff]  }
 0xf31   :  { %v2347_v2 = vpop.f32.mrb[73].mxu0  ;;  %v2420_v48 = vpop.f32.mrb[65].mxu1  ;;  %2782 = vmatmul.mubr.bf16.gmra.mrb[84].mxu0 %v2473_v1  ;;  %2847 = vmatmul.mubr.bf16.gmra.mrb[76].mxu1 %v2475_v17  ;;  %v2453_v50 = vmax.f32 %v2345_v0, 0.0  ;;  %v2455_v10 = vmax.f32 %v2418_v47, 0.0  ;;  %v4402_v1 = vld [vmem:[#allocation19 + $0x8] sm:$0xff]   ;;  %v4404_v17 = vld [vmem:[#allocation19 + $0x50] sm:$0xff]  }
 0xf32   :  { %v2349_v4 = vpop.f32.mrb[74].mxu0  ;;  %v2422_v9 = vpop.f32.mrb[66].mxu1  ;;  %v2454_v53 = vmax.f32 %v2347_v2, 0.0  ;;  %v2456_v23 = vmax.f32 %v2420_v48, 0.0  ;;  %3830 = vmatprep.subr.bf16.mxu1 %v4398_v33  ;;  %v4408_v0 = vld [vmem:[#allocation19 + $0x18] sm:$0xff]   ;;  %v4410_v47 = vld [vmem:[#allocation19 + $0x60] sm:$0xff]  }
 0xf33   :  { %v2457_v51 = vmax.f32 %v2349_v4, 0.0  ;;  %v2459_v15 = vmax.f32 %v2422_v9, 0.0  ;;  %v2351_v12 = vpop.f32.mrb[75].mxu0  ;;  %v2424_v13 = vpop.f32.mrb[67].mxu1  ;;  %3831 = vmatpush3.bf16.msra.mxu1 %v4399_v26  ;;  %v4411_v2 = vld [vmem:[#allocation19 + $0x20] sm:$0xff]  }
 0xf34   :  { %v2458_v31 = vmax.f32 %v2351_v12, 0.0  ;;  %v2460_v36 = vmax.f32 %v2424_v13, 0.0  ;;  %3832 = vmatprep.subr.bf16.mxu1 %v4401_v3 }
 0xf35   :  { %v2477_v41 = vpack.c.bf16 %v2457_v51, %v2453_v50  ;;  %v2479_v22 = vpack.c.bf16 %v2459_v15, %v2455_v10 }
 0xf36   :  { %v2478_v43 = vpack.c.bf16 %v2458_v31, %v2454_v53  ;;  %v2480_v54 = vpack.c.bf16 %v2460_v36, %v2456_v23 }
 0xf37   :  { %3833 = vmatpush3.bf16.msra.mxu1 %v4402_v1 }
 0xf38   :  { %v2355_v63 = vpop.f32.mrb[76].mxu0  ;;  %v2428_v58 = vpop.f32.mrb[68].mxu1  ;;  %2789 = vmatprep.mubr.bf16.mxu0 %v2478_v43  ;;  %2854 = vmatprep.mubr.bf16.mxu1 %v2480_v54 }
 0xf39   :  { %v2357_v14 = vpop.f32.mrb[77].mxu0  ;;  %v2430_v19 = vpop.f32.mrb[69].mxu1  ;;  %2790 = vmatmul.mubr.bf16.gmra.mrb[88].mxu0 %v2477_v41  ;;  %2855 = vmatmul.mubr.bf16.gmra.mrb[80].mxu1 %v2479_v22  ;;  %v2461_v40 = vmax.f32 %v2355_v63, 0.0  ;;  %v2463_v42 = vmax.f32 %v2428_v58, 0.0 }
 0xf3a   :  { %v2359_v60 = vpop.f32.mrb[78].mxu0  ;;  %v2432_v38 = vpop.f32.mrb[70].mxu1  ;;  %v2462_v49 = vmax.f32 %v2357_v14, 0.0  ;;  %v2464_v24 = vmax.f32 %v2430_v19, 0.0  ;;  %3834 = vmatprep.subr.bf16.mxu1 %v4404_v17 }
 0xf3b   :  { %v2465_v52 = vmax.f32 %v2359_v60, 0.0  ;;  %v2467_v11 = vmax.f32 %v2432_v38, 0.0  ;;  %v2361_v18 = vpop.f32.mrb[79].mxu0  ;;  %v2434_v46 = vpop.f32.mrb[71].mxu1  ;;  %3835 = vmatpush3.bf16.msra.mxu1 %v4405_v28 }
 0xf3c   :  { %v2466_v45 = vmax.f32 %v2361_v18, 0.0  ;;  %v2468_v27 = vmax.f32 %v2434_v46, 0.0  ;;  %3836 = vmatprep.subr.bf16.mxu1 %v4407_v56 }
 0xf3d   :  { %v2481_v5 = vpack.c.bf16 %v2465_v52, %v2461_v40  ;;  %v2483_v6 = vpack.c.bf16 %v2467_v11, %v2463_v42 }
 0xf3e   :  { %v2482_v25 = vpack.c.bf16 %v2466_v45, %v2462_v49  ;;  %v2484_v29 = vpack.c.bf16 %v2468_v27, %v2464_v24 }
 0xf3f   :  { %3837 = vmatpush3.bf16.msra.mxu1 %v4408_v0 }
 0xf40   :  { %2797 = vmatprep.mubr.bf16.mxu0 %v2482_v25  ;;  %2862 = vmatprep.mubr.bf16.mxu1 %v2484_v29 }
 0xf41   :  { %2798 = vmatmul.mubr.bf16.gmra.mrb[92].mxu0 %v2481_v5  ;;  %2863 = vmatmul.mubr.bf16.gmra.mrb[84].mxu1 %v2483_v6 }
 0xf42   :  { %4122 = vmatprep.mubr.msk.f32.mxu0 %vm1012_vm1, %v4491_v7  ;;  %3838 = vmatprep.subr.bf16.mxu1 %v4410_v47 }
 0xf43   :  { %3839 = vmatpush3.bf16.msra.mxu1 %v4411_v2 }
 0xffc   :  { %v3750_v48 = vpop.f32.mrb[80].mxu0  ;;  %v3790_v4 = vpop.f32.mrb[72].mxu1 }
 0xffd   :  { %v3751_v9 = vpop.f32.mrb[81].mxu0  ;;  %v3791_v50 = vpop.f32.mrb[73].mxu1 }
 0xffe   :  { %v3752_v10 = vadd.f32 %v3751_v9, %v3750_v48  ;;  %v3792_v51 = vadd.f32 %v3791_v50, %v3790_v4  ;;  %v3753_v15 = vpop.f32.mrb[82].mxu0  ;;  %v3793_v12 = vpop.f32.mrb[74].mxu1 }
 0xfff   :  { %v3754_v13 = vpop.f32.mrb[83].mxu0  ;;  %v3794_v53 = vpop.f32.mrb[75].mxu1 }
0x1000   :  { %v2841_v23 = vadd.f32 %v3792_v51, %v3752_v10  ;;  %v3755_v31 = vadd.f32 %v3754_v13, %v3753_v15  ;;  %v3795_v36 = vadd.f32 %v3794_v53, %v3793_v12 }
0x1002   :  { %v2844_v41 = vadd.f32 %v3795_v36, %v3755_v31  ;;  %v5420_v22 = vadd.f32 %v2841_v23, %v5363_v37 }
0x1004   :  { %v5423_v43 = vadd.f32 %v2844_v41, %v5357_v20  ;;  %v3756_v54 = vpop.f32.mrb[84].mxu0  ;;  %v3796_v63 = vpop.f32.mrb[76].mxu1 }
0x1005   :  { %v3757_v58 = vpop.f32.mrb[85].mxu0  ;;  %v3797_v14 = vpop.f32.mrb[77].mxu1 }
0x1006   :  { %v3758_v19 = vadd.f32 %v3757_v58, %v3756_v54  ;;  %v3798_v60 = vadd.f32 %v3797_v14, %v3796_v63  ;;  %v3759_v38 = vpop.f32.mrb[86].mxu0  ;;  %v3799_v40 = vpop.f32.mrb[78].mxu1  ;;  %v4190_v42 = vpack.c.bf16 %v5423_v43, %v5420_v22  ;;  %v4400_v54 = vld [vmem:[#allocation19 + $0x80] sm:$0xff]   ;;  %v4403_v63 = vld [vmem:[#allocation19 + $0x88] sm:$0xff]   ;;  %v4493_v14 = vld [vmem:[#allocation7 + $0x10] sm:$0xff] }
0x1007   :  { %v3760_v52 = vpop.f32.mrb[87].mxu0  ;;  %v3800_v11 = vpop.f32.mrb[79].mxu1  ;;  %v4492_v58 = vld [vmem:[#allocation7 + $0x8] sm:$0xff] }
0x1008   :  { %v2849_v18 = vadd.f32 %v3798_v60, %v3758_v19  ;;  %v3761_v46 = vadd.f32 %v3760_v52, %v3759_v38  ;;  %v3801_v37 = vadd.f32 %v3800_v11, %v3799_v40  ;;  %4191 = vmatprep.subr.bf16.mxu0 %v4190_v42  ;;  %v4494_v19 = vld [vmem:[#allocation7 + $0x18] sm:$0xff]  ;;  %v4496_v38 = vld [vmem:[#allocation7 + $0x28] sm:$0xff]  ;;  %v4497_v40 = vld [vmem:[#allocation7 + $0x30] sm:$0xff] }
0x1009   :  { %4193 = vmatpush3.bf16.msra.mxu0 %v4190_v42  ;;  %v4409_v60 = vld [vmem:[#allocation19 + $0x98] sm:$0xff]   ;;  %v4412_v42 = vld [vmem:[#allocation19 + $0xa0] sm:$0xff]   ;;  %v4413_v11 = vld [vmem:[#allocation19 + $0x68] sm:$0xff]  }
0x100a   :  { %v2852_v20 = vadd.f32 %v3801_v37, %v3761_v46  ;;  %v5428_v49 = vadd.f32 %v2849_v18, %v5382_v62  ;;  %v4498_v52 = vld [vmem:[#allocation7 + $0x38] sm:$0xff]  ;;  %v4414_v18 = vld [vmem:[#allocation19 + $0x28] sm:$0xff]   ;;  %3840 = vmatprep.subr.bf16.mxu1 %v4413_v11  ;;  %v4416_v37 = vld [vmem:[#allocation19 + $0x70] sm:$0xff]  }
0x100b   :  { %v4415_v46 = vld [vmem:[#allocation19 + $0xa8] sm:$0xff]   ;;  %3841 = vmatpush3.bf16.msra.mxu1 %v4414_v18 }
0x100c   :  { %v5431_v24 = vadd.f32 %v2852_v20, %v5379_v16  ;;  %v3762_v45 = vpop.f32.mrb[88].mxu0  ;;  %v3802_v27 = vpop.f32.mrb[80].mxu1  ;;  %v4417_v20 = vld [vmem:[#allocation19 + $0x30] sm:$0xff]   ;;  %3842 = vmatprep.subr.bf16.mxu1 %v4416_v37 }
0x100d   :  { %v3763_v5 = vpop.f32.mrb[89].mxu0  ;;  %v3803_v6 = vpop.f32.mrb[81].mxu1 }
0x100e   :  { %v3764_v25 = vadd.f32 %v3763_v5, %v3762_v45  ;;  %v3804_v29 = vadd.f32 %v3803_v6, %v3802_v27  ;;  %v3765_v7 = vpop.f32.mrb[90].mxu0  ;;  %v3805_v33 = vpop.f32.mrb[82].mxu1  ;;  %v4194_v26 = vpack.c.bf16 %v5431_v24, %v5428_v49  ;;  %v4418_v45 = vld [vmem:[#allocation19 + $0xb0] sm:$0xff]   ;;  %v4419_v27 = vld [vmem:[#allocation19 + $0x78] sm:$0xff]  }
0x100f   :  { %v3766_v3 = vpop.f32.mrb[91].mxu0  ;;  %v3806_v1 = vpop.f32.mrb[83].mxu1  ;;  %3843 = vmatpush3.bf16.msra.mxu1 %v4417_v20  ;;  %v4420_v5 = vld [vmem:[#allocation19 + $0x38] sm:$0xff]  }
0x1010   :  { %v2857_v17 = vadd.f32 %v3804_v29, %v3764_v25  ;;  %v3767_v28 = vadd.f32 %v3766_v3, %v3765_v7  ;;  %v3807_v62 = vadd.f32 %v3806_v1, %v3805_v33  ;;  %4195 = vmatprep.subr.bf16.mxu0 %v4194_v26  ;;  %3844 = vmatprep.subr.bf16.mxu1 %v4419_v27  ;;  %v4421_v6 = vld [vmem:[#allocation19 + $0xb8] sm:$0xff]   ;;  %v3004_v25 = vlaneseq }
0x1011   :  { %4197 = vmatpush3.bf16.msra.mxu0 %v4194_v26 }
0x1012   :  { %v2860_v16 = vadd.f32 %v3807_v62, %v3767_v28  ;;  %v5436_v56 = vadd.f32 %v2857_v17, %v5404_v32  ;;  %v5458_v29 = vshrl.u32 %v3004_v25, 7 }
0x1013   :  { %3845 = vmatpush3.bf16.msra.mxu1 %v4420_v5 }
0x1014   :  { %v5439_v0 = vadd.f32 %v2860_v16, %v5401_v30  ;;  %v3768_v47 = vpop.f32.mrb[92].mxu0  ;;  %v3808_v2 = vpop.f32.mrb[84].mxu1  ;;  %vm3006_vm3 = vcmp.lt.s32.totalorder %v5458_v29, 1  ;;  %vm3015_vm4 = vcmp.lt.s32.totalorder %v5458_v29, 7 }
0x1015   :  { %v3769_v48 = vpop.f32.mrb[93].mxu0  ;;  %v3809_v4 = vpop.f32.mrb[85].mxu1 }
0x1016   :  { %v3770_v9 = vadd.f32 %v3769_v48, %v3768_v47  ;;  %v3810_v50 = vadd.f32 %v3809_v4, %v3808_v2  ;;  %v3771_v10 = vpop.f32.mrb[94].mxu0  ;;  %v3811_v51 = vpop.f32.mrb[86].mxu1  ;;  %v4198_v15 = vpack.c.bf16 %v5439_v0, %v5436_v56 }
0x1017   :  { %v3772_v12 = vpop.f32.mrb[95].mxu0  ;;  %v3812_v13 = vpop.f32.mrb[87].mxu1 }
0x1018   :  { %v2865_v53 = vadd.f32 %v3810_v50, %v3770_v9  ;;  %v3773_v23 = vadd.f32 %v3772_v12, %v3771_v10  ;;  %v3813_v32 = vadd.f32 %v3812_v13, %v3811_v51  ;;  %4199 = vmatprep.subr.bf16.mxu0 %v4198_v15 }
0x1019   :  { %4201 = vmatpush3.bf16.msra.mxu0 %v4198_v15 }
0x101a   :  { %v2868_v30 = vadd.f32 %v3813_v32, %v3773_v23  ;;  %v5444_v31 = vadd.f32 %v2865_v53, %v5414_v8  ;;  %v4406_v8 = vld [vmem:[#allocation19 + $0x90] sm:$0xff]  }
0x101c   :  { %v5447_v36 = vadd.f32 %v2868_v30, %v5411_v34  ;;  %v4495_v34 = vld [vmem:[#allocation7 + $0x20] sm:$0xff] }
0x101e   :  { %v4202_v41 = vpack.c.bf16 %v5447_v36, %v5444_v31 }
0x1020   :  { %4203 = vmatprep.subr.bf16.mxu0 %v4202_v41 }
0x1021   :  { %4205 = vmatpush3.bf16.msra.mxu0 %v4202_v41 }
0x1022   :  { %4134 = vmatprep.subr.bf16.mxu0 %v4400_v54 }
0x1024   :  { %4123 = vmatmul.mubr.msk.f32.vlgmr.msra.gmra.mrb[96].mxu0 %vm1012_vm1, %v4492_v58 }
0x1025   :  { %4125 = vmatprep.mubr.msk.f32.mxu0 %vm1012_vm1, %v4493_v14  ;;  %4135 = vmatpush3.bf16.msra.mxu0 %v4400_v54 }
0x1026   :  { %4136 = vmatprep.subr.bf16.mxu0 %v4403_v63 }
0x1028   :  { %4126 = vmatmul.mubr.msk.f32.gmra.mrb[98].mxu0 %vm1012_vm1, %v4494_v19 }
0x1029   :  { %4128 = vmatprep.mubr.msk.f32.mxu0 %vm1012_vm1, %v4495_v34  ;;  %4137 = vmatpush3.bf16.msra.mxu0 %v4403_v63 }
0x102a   :  { %4138 = vmatprep.subr.bf16.mxu0 %v4406_v8 }
0x102c   :  { %4129 = vmatmul.mubr.msk.f32.gmra.mrb[100].mxu0 %vm1012_vm1, %v4496_v38 }
0x102d   :  { %4131 = vmatprep.mubr.msk.f32.mxu0 %vm1012_vm1, %v4497_v40  ;;  %4139 = vmatpush3.bf16.msra.mxu0 %v4406_v8 }
0x102e   :  { %4140 = vmatprep.subr.bf16.mxu0 %v4409_v60 }
0x1030   :  { %4132 = vmatmul.mubr.msk.f32.gmra.mrb[102].mxu0 %vm1012_vm1, %v4498_v52 }
0x1031   :  { %4141 = vmatpush3.bf16.msra.mxu0 %v4409_v60 }
0x1032   :  { %4142 = vmatprep.subr.bf16.mxu0 %v4412_v42 }
0x1035   :  { %4143 = vmatpush3.bf16.msra.mxu0 %v4412_v42 }
0x1036   :  { %4144 = vmatprep.subr.bf16.mxu0 %v4415_v46 }
0x1039   :  { %4145 = vmatpush3.bf16.msra.mxu0 %v4415_v46 }
0x103a   :  { %4146 = vmatprep.subr.bf16.mxu0 %v4418_v45 }
0x103d   :  { %4147 = vmatpush3.bf16.msra.mxu0 %v4418_v45 }
0x103e   :  { %4148 = vmatprep.subr.bf16.mxu0 %v4421_v6 }
0x1041   :  { %4149 = vmatpush3.bf16.msra.mxu0 %v4421_v6 }
0x10f7   :  { %v4124_v7 = vpop.f32.mrb[96].mxu0 }
0x10f8   :  { %v2985_v33 = vsub.f32 %v5423_v43, %v4124_v7  ;;  %v2993_v26 = vadd.f32 %v4124_v7, %v5360_v35  ;;  %v2945_v3 = vpop.f32.mrb[97].mxu0 }
0x10f9   :  { %v2984_v1 = vsub.f32 %v5420_v22, %v2945_v3  ;;  %v2992_v17 = vadd.f32 %v2945_v3, %v5366_v39 }
0x10fa   :  { %v3001_v28 = vrot.slane %v2993_v26, 7  ;;  %v3012_v62 = vrot.slane %v2993_v26, 1  ;;  %3371 = vst [vmem:[#allocation20 + $0x8] sm:$0xff] %v2985_v33 }
0x10fb   :  { %v3000_v16 = vrot.slane %v2992_v17, 7  ;;  %v3011_v47 = vrot.slane %v2992_v17, 1  ;;  %3370 = vst [vmem:[#allocation20] sm:$0xff] %v2984_v1  ;;  %v4127_v2 = vpop.f32.mrb[98].mxu0  ;;  %v3037_v48 = vpack.c.bf16 %v2993_v26, %v2992_v17 }
0x10fc   :  { %v2987_v43 = vsub.f32 %v5431_v24, %v4127_v2  ;;  %v2995_v35 = vadd.f32 %v4127_v2, %v5371_v55  ;;  %v2955_v4 = vpop.f32.mrb[99].mxu0 }
0x10fd   :  { %v3009_v39 = vsel %vm3006_vm3, %v3000_v16, %v3001_v28  ;;  %v2986_v22 = vsub.f32 %v5428_v49, %v2955_v4  ;;  %v2994_v9 = vadd.f32 %v2955_v4, %v5374_v57  ;;  %3272 = vmatprep.mubr.bf16.mxu1 %v3037_v48  ;;  %v3018_v50 = vsel %vm3015_vm4, %v3011_v47, %v3012_v62 }
0x10fe   :  { %v3003_v10 = vrot.slane %v2995_v35, 7  ;;  %v3014_v51 = vrot.slane %v2995_v35, 1  ;;  %3373 = vst [vmem:[#allocation20 + $0x18] sm:$0xff] %v2987_v43 }
0x10ff   :  { %v3002_v15 = vrot.slane %v2994_v9, 7  ;;  %v3013_v12 = vrot.slane %v2994_v9, 1  ;;  %3372 = vst [vmem:[#allocation20 + $0x10] sm:$0xff] %v2986_v22  ;;  %v4130_v24 = vpop.f32.mrb[100].mxu0  ;;  %v3040_v55 = vpack.c.bf16 %v2995_v35, %v2994_v9 }
0x1100   :  { %v3010_v13 = vsel %vm3006_vm3, %v3003_v10, %v3000_v16  ;;  %v3019_v49 = vsel %vm3015_vm4, %v3014_v51, %v3011_v47  ;;  %v2989_v57 = vsub.f32 %v5439_v0, %v4130_v24  ;;  %v2997_v53 = vadd.f32 %v4130_v24, %v5385_v21  ;;  %v2965_v23 = vpop.f32.mrb[101].mxu0 }
0x1101   :  { %v3036_v32 = vpack.c.bf16 %v3009_v39, %v3010_v13  ;;  %v3016_v30 = vsel %vm3015_vm4, %v3013_v12, %v3014_v51  ;;  %v2988_v41 = vsub.f32 %v5436_v56, %v2965_v23  ;;  %v2996_v54 = vadd.f32 %v2965_v23, %v5388_v59 }
0x1102   :  { %v3041_v63 = vpack.c.bf16 %v3019_v49, %v3016_v30  ;;  %v3021_v58 = vrot.slane %v2997_v53, 7  ;;  %v3029_v14 = vrot.slane %v2997_v53, 1  ;;  %3375 = vst [vmem:[#allocation20 + $0x28] sm:$0xff] %v2989_v57  ;;  %v3017_v8 = vsel %vm3015_vm4, %v3012_v62, %v3013_v12 }
0x1103   :  { %v3020_v19 = vrot.slane %v2996_v54, 7  ;;  %v3028_v0 = vrot.slane %v2996_v54, 1  ;;  %3374 = vst [vmem:[#allocation20 + $0x20] sm:$0xff] %v2988_v41  ;;  %v4133_v21 = vpop.f32.mrb[102].mxu0  ;;  %3273 = vmatmul.mubr.bf16.vlgmr.msra.gmra.mrb[88].mxu1 %v3036_v32  ;;  %v3038_v34 = vpack.c.bf16 %v3017_v8, %v3018_v50  ;;  %v3007_v60 = vsel %vm3006_vm3, %v3002_v15, %v3003_v10 }
0x1104   :  { %v2991_v56 = vsub.f32 %v5447_v36, %v4133_v21  ;;  %v2999_v59 = vadd.f32 %v4133_v21, %v5393_v44  ;;  %v2975_v38 = vpop.f32.mrb[103].mxu0  ;;  %3280 = vmatprep.mubr.bf16.mxu1 %v3040_v55  ;;  %v3008_v40 = vsel %vm3006_vm3, %v3001_v28, %v3002_v15  ;;  %v3043_v42 = vpack.c.bf16 %v2997_v53, %v2996_v54 }
0x1105   :  { %v2990_v52 = vsub.f32 %v5444_v31, %v2975_v38  ;;  %v2998_v11 = vadd.f32 %v2975_v38, %v5396_v61  ;;  %4150 = vmatprep.mubr.bf16.mxu0 %v3038_v34  ;;  %v3039_v18 = vpack.c.bf16 %v3007_v60, %v3008_v40  ;;  %v3034_v46 = vsel %vm3015_vm4, %v3028_v0, %v3029_v14 }
0x1106   :  { %v3023_v37 = vrot.slane %v2999_v59, 7  ;;  %v3031_v20 = vrot.slane %v2999_v59, 1  ;;  %3377 = vst [vmem:[#allocation20 + $0x38] sm:$0xff] %v2991_v56  ;;  %4151 = vmatmul.mubr.bf16.vlgmr.msra.gmra.mrb[104].mxu0 %v3041_v63  ;;  %v3026_v44 = vsel %vm3006_vm3, %v3020_v19, %v3021_v58 }
0x1107   :  { %v3022_v36 = vrot.slane %v2998_v11, 7  ;;  %v3030_v45 = vrot.slane %v2998_v11, 1  ;;  %3376 = vst [vmem:[#allocation20 + $0x30] sm:$0xff] %v2990_v52  ;;  %v3046_v27 = vpack.c.bf16 %v2999_v59, %v2998_v11 }
0x1108   :  { %v3035_v31 = vsel %vm3015_vm4, %v3031_v20, %v3028_v0  ;;  %v3027_v61 = vsel %vm3006_vm3, %v3023_v37, %v3020_v19 }
0x1109   :  { %v3033_v5 = vsel %vm3015_vm4, %v3029_v14, %v3030_v45  ;;  %v3032_v6 = vsel %vm3015_vm4, %v3030_v45, %v3031_v20  ;;  %v3042_v25 = vpack.c.bf16 %v3026_v44, %v3027_v61  ;;  %v3024_v7 = vsel %vm3006_vm3, %v3022_v36, %v3023_v37 }
0x110a   :  { %v3044_v33 = vpack.c.bf16 %v3033_v5, %v3034_v46  ;;  %v3047_v26 = vpack.c.bf16 %v3035_v31, %v3032_v6  ;;  %v3025_v3 = vsel %vm3006_vm3, %v3021_v58, %v3022_v36 }
0x110b   :  { %3281 = vmatmul.mubr.bf16.gmra.mrb[92].mxu1 %v3039_v18  ;;  %v3045_v1 = vpack.c.bf16 %v3024_v7, %v3025_v3 }
0x110c   :  { %3288 = vmatprep.mubr.bf16.mxu1 %v3043_v42  ;;  %4154 = vmatprep.mubr.bf16.mxu0 %v3044_v33 }
0x110e   :  { %4155 = vmatmul.mubr.bf16.gmra.mrb[108].mxu0 %v3047_v26 }
0x1113   :  { %3289 = vmatmul.mubr.bf16.gmra.mrb[96].mxu1 %v3042_v25 }
0x1114   :  { %3296 = vmatprep.mubr.bf16.mxu1 %v3046_v27 }
0x111b   :  { %3297 = vmatmul.mubr.bf16.gmra.mrb[100].mxu1 %v3045_v1 }
0x111c   :  { %4752 = shalt.err (!%p4749_p8)
}
0x111d   :  { %s4753_s23 = scalar_lea.hbm %s5551_s11, 1024 }
0x111e   :  { %p4754_p9 = scmp.ne.s32.totalorder %s5551_s11, %s4753_s23  ;;  %p4757_p10 = scmp.lt.u32.totalorder %s4753_s23, %s5551_s11 }
0x1120   :  { %p4759_p11 = pnand %p4757_p10, %p4754_p9 }
0x1122   :  { %4762 = shalt.err (!%p4759_p11)
}
0x1123   :  { %3397 = dma.vmem_to_hbm [thread:$0]  %s3392_s15, 1024, %s5551_s11, [#allocation4], %s4812_s0, %s4812_s0, %s4813_s26  }
0x1124   :  { %s4822_s11 = smov [#allocation21]  }
0x1125   :  { %s3403_s14 = sshll.u32 %s4822_s11, 4  ;;  %s3404_s14 = int_to_ptr.vmem [resolvable:$true] %s3403_s14 }
0x1126   :  { %s4763_s1 = scalar_lea.vmem %s3404_s14, 1024  ;;  %p4768_p13 = scmp.lt.s32.totalorder %s3404_s14, %s3404_s14 }
0x1127   :  { %p4764_p12 = scmp.ne.s32.totalorder %s3404_s14, %s4763_s1  ;;  %p4769_p0 = scmp.lt.s32.totalorder %s4763_s1, %s4763_s1 }
0x1129   :  { %p4770_p1 = por %p4769_p0, %p4768_p13 }
0x112b   :  { %p4771_p2 = pnand %p4770_p1, %p4764_p12 }
0x11d6   :  { %v3846_v29 = vpop.f32.mrb[88].mxu1 }
0x11d7   :  { %v3847_v17 = vpop.f32.mrb[89].mxu1 }
0x11d8   :  { %v3848_v28 = vadd.f32 %v3847_v17, %v3846_v29  ;;  %v3849_v62 = vpop.f32.mrb[90].mxu1 }
0x11d9   :  { %v4152_v16 = vpop.f32.mrb[104].mxu0  ;;  %v3850_v47 = vpop.f32.mrb[91].mxu1 }
0x11da   :  { %v3851_v2 = vadd.f32 %v3850_v47, %v3849_v62  ;;  %v3339_v48 = vpop.f32.mrb[105].mxu0 }
0x11db   :  { %v3340_v43 = vadd.f32 %v3848_v28, %v3339_v48  ;;  %v4153_v35 = vpop.f32.mrb[106].mxu0 }
0x11dc   :  { %v3342_v4 = vpop.f32.mrb[107].mxu0 }
0x11dd   :  { %3378 = vst [vmem:[#allocation21] sm:$0xff] %v3340_v43  ;;  %v3343_v39 = vadd.f32 %v3851_v2, %v3342_v4 }
0x11de   :  { %v3852_v22 = vpop.f32.mrb[92].mxu1 }
0x11df   :  { %3379 = vst [vmem:[#allocation21 + $0x8] sm:$0xff] %v3343_v39  ;;  %v3853_v9 = vpop.f32.mrb[93].mxu1 }
0x11e0   :  { %v3854_v50 = vadd.f32 %v3853_v9, %v3852_v22  ;;  %v3855_v10 = vpop.f32.mrb[94].mxu1 }
0x11e1   :  { %v4156_v51 = vpop.f32.mrb[108].mxu0  ;;  %v3856_v15 = vpop.f32.mrb[95].mxu1 }
0x11e2   :  { %v3348_v12 = vadd.f32 %v4152_v16, %v3854_v50  ;;  %v3857_v24 = vadd.f32 %v3856_v15, %v3855_v10  ;;  %v3355_v55 = vpop.f32.mrb[109].mxu0 }
0x11e3   :  { %v4157_v13 = vpop.f32.mrb[110].mxu0 }
0x11e4   :  { %3380 = vst [vmem:[#allocation21 + $0x10] sm:$0xff] %v3348_v12  ;;  %v3351_v49 = vadd.f32 %v4153_v35, %v3857_v24  ;;  %v3358_v57 = vpop.f32.mrb[111].mxu0 }
0x11e6   :  { %3381 = vst [vmem:[#allocation21 + $0x18] sm:$0xff] %v3351_v49  ;;  %v3858_v53 = vpop.f32.mrb[96].mxu1 }
0x11e7   :  { %v3859_v23 = vpop.f32.mrb[97].mxu1 }
0x11e8   :  { %v3860_v32 = vadd.f32 %v3859_v23, %v3858_v53  ;;  %v3861_v30 = vpop.f32.mrb[98].mxu1 }
0x11e9   :  { %v3862_v41 = vpop.f32.mrb[99].mxu1 }
0x11ea   :  { %v3356_v54 = vadd.f32 %v3860_v32, %v3355_v55  ;;  %v3863_v63 = vadd.f32 %v3862_v41, %v3861_v30 }
0x11ec   :  { %3382 = vst [vmem:[#allocation21 + $0x20] sm:$0xff] %v3356_v54  ;;  %v3359_v58 = vadd.f32 %v3863_v63, %v3358_v57 }
0x11ee   :  { %3383 = vst [vmem:[#allocation21 + $0x28] sm:$0xff] %v3359_v58  ;;  %v3864_v14 = vpop.f32.mrb[100].mxu1 }
0x11ef   :  { %v3865_v8 = vpop.f32.mrb[101].mxu1 }
0x11f0   :  { %v3866_v19 = vadd.f32 %v3865_v8, %v3864_v14  ;;  %v3867_v0 = vpop.f32.mrb[102].mxu1 }
0x11f1   :  { %v3868_v21 = vpop.f32.mrb[103].mxu1 }
0x11f2   :  { %v3364_v34 = vadd.f32 %v4156_v51, %v3866_v19  ;;  %v3869_v60 = vadd.f32 %v3868_v21, %v3867_v0 }
0x11f4   :  { %3384 = vst [vmem:[#allocation21 + $0x30] sm:$0xff] %v3364_v34  ;;  %v3367_v56 = vadd.f32 %v4157_v13, %v3869_v60 }
0x11f6   :  { %3385 = vst [vmem:[#allocation21 + $0x38] sm:$0xff] %v3367_v56 }
0x11f7   :  { %4774 = shalt.err (!%p4771_p2)
}
0x11f8   :  { %s4775_s7 = scalar_lea.hbm %s5552_s12, 1024 }
0x11f9   :  { %p4776_p3 = scmp.ne.s32.totalorder %s5552_s12, %s4775_s7  ;;  %p4779_p4 = scmp.lt.u32.totalorder %s4775_s7, %s5552_s12 }
0x11fb   :  { %p4781_p5 = pnand %p4779_p4, %p4776_p3 }
0x11fd   :  { %4784 = shalt.err (!%p4781_p5)
}
0x11fe   :  { %3409 = dma.vmem_to_hbm [thread:$0]  %s3404_s14, 1024, %s5552_s12, [#allocation22], %s4812_s0, %s4812_s0, %s4813_s26  }
0x11ff   :  { %4797 = dma.done.wait [#allocation4], 1024  }
0x1200   :  { %4798 = vsyncadd [#allocation4], 4294966272 }
0x1201   :  { %4799 = dma.done.wait [#allocation22], 1024  }
0x1202   :  { %4800 = vsyncadd [#allocation22], 4294966272 }
0x1203   :  { %3416 = vsyncpa [#allocation3], 1 }
0x1204   :  { %3417 = vsyncpa [#allocation6], 1 }
0x1205   :  { %3418 = vsyncpa [#allocation9], 1 }
0x1206   :  { %3419 = vsyncpa [#allocation12], 1 }
0x1207   :  { %3420 = vsyncpa [#allocation15], 1 }
0x1208   :  { %3421 = vsyncpa [#allocation18], 1 }
0x1209   :  { %3422 = vsyncpa [#allocation4], 1 }
0x120a   :  { %3423 = vsyncpa [#allocation22], 1 }

</bundles_post_ra>
